<compile_context>
chip_gen: v7x
topology: tpu7x:2x2x1
jax: 0.10.0
libtpu: 0.0.40
codegen_flags: <defaults>
</compile_context>

<pallas_src>
import math

import jax
import jax.numpy as jnp
import numpy as np
from jax.experimental import pallas as pl
from jax.experimental.pallas import tpu as pltpu


_MASK_VALUE = -1e30                    # large finite negative (NaN-safe)
_VMEM_LIMIT = 32 * 1024 * 1024         # fits v5e/v6e (128 MiB) and v7x (64 MiB)


def _pick_tile(dim, prefs):
    """Largest preferred tile that divides dim, else the full dim."""
    for p in prefs:
        if dim % p == 0:
            return p
    return dim


# ----------------------------------------------------------------------------
# Tiled MXU matmul:  y[M, N] = x[M, K] @ w_t[K, N]   (weights pre-transposed).
# ----------------------------------------------------------------------------
def _matmul_kernel(x_ref, w_ref, o_ref, acc_ref):
    @pl.when(pl.program_id(2) == 0)
    def _():
        acc_ref[...] = jnp.zeros(acc_ref.shape, jnp.float32)

    acc_ref[...] += jnp.dot(x_ref[...], w_ref[...],
                            preferred_element_type=jnp.float32)

    @pl.when(pl.program_id(2) == pl.num_programs(2) - 1)
    def _():
        o_ref[...] = acc_ref[...].astype(o_ref.dtype)


def linear_wt(x, w_t):
    """y = x @ w_t with w_t the pre-transposed [in, out] weight (no bias)."""
    *lead, K = x.shape
    K2, N = w_t.shape
    assert K == K2
    M = int(np.prod(lead)) if lead else 1
    x2 = x.reshape(M, K)

    # Prefer 512/256 tiles (v6e/v7x have 256-wide MXUs); fall back for small dims.
    tm = _pick_tile(M, (512, 256, 128, 64, 32, 16, 8))
    tn = _pick_tile(N, (512, 256, 128))
    tk = _pick_tile(K, (512, 256, 128))
    grid = (M // tm, N // tn, K // tk)

    out = pl.pallas_call(
        _matmul_kernel,
        out_shape=jax.ShapeDtypeStruct((M, N), x.dtype),
        grid_spec=pltpu.PrefetchScalarGridSpec(
            num_scalar_prefetch=0,
            grid=grid,
            in_specs=[
                pl.BlockSpec((tm, tk), lambda i, j, k: (i, k)),
                pl.BlockSpec((tk, tn), lambda i, j, k: (k, j)),
            ],
            out_specs=pl.BlockSpec((tm, tn), lambda i, j, k: (i, j)),
            scratch_shapes=[pltpu.VMEM((tm, tn), jnp.float32)],
        ),
        compiler_params=pltpu.CompilerParams(
            dimension_semantics=("parallel", "parallel", "arbitrary"),
            vmem_limit_bytes=_VMEM_LIMIT,
        ),
    )(x2, w_t)
    return out.reshape(*lead, N)


# ----------------------------------------------------------------------------
# GQA-fused flash attention: causal, online softmax.
#   q : [B, Hkv, n_rep, S, D]   k, v : [B, Hkv, S, D]
# ----------------------------------------------------------------------------
def _make_flash_kernel(scale, n_rep, tq, tkv, head_dim):
    m_rows = n_rep * tq

    def kernel(q_ref, k_ref, v_ref, o_ref, qs_ref, m_ref, l_ref, acc_ref):
        qi = pl.program_id(2)
        ki = pl.program_id(3)

        @pl.when(ki == 0)
        def _():
            # Fold 1/sqrt(D) into q once per q-block (reused across all ki).
            qs_ref[...] = (q_ref[...].reshape(m_rows, head_dim)
                           * scale).astype(qs_ref.dtype)
            m_ref[...] = jnp.full(m_ref.shape, _MASK_VALUE, jnp.float32)
            l_ref[...] = jnp.zeros(l_ref.shape, jnp.float32)
            acc_ref[...] = jnp.zeros(acc_ref.shape, jnp.float32)

        # Skip KV blocks that lie entirely above the causal diagonal.
        @pl.when(ki * tkv <= qi * tq + (tq - 1))
        def _():
            k = k_ref[...]                                     # (tkv, D)
            v = v_ref[...]                                     # (tkv, D)
            # Native-dtype MXU matmul, f32 accumulate: (m_rows, tkv)
            s = jax.lax.dot_general(
                qs_ref[...], k, (((1,), (1,)), ((), ())),
                preferred_element_type=jnp.float32)
            # Causal mask: col <= row  <=>  (j - i) <= qi*tq - ki*tkv.
            # offs is grid-invariant (constant); per block only cmp + select.
            offs = (
                jax.lax.broadcasted_iota(jnp.int32, (n_rep, tq, tkv), 2)
                - jax.lax.broadcasted_iota(jnp.int32, (n_rep, tq, tkv), 1)
            ).reshape(m_rows, tkv)
            s = jnp.where(offs <= qi * tq - ki * tkv, s, _MASK_VALUE)

            # Online softmax update (f32 state).
            m_prev = m_ref[...]
            m_new = jnp.maximum(m_prev, jnp.max(s, axis=-1, keepdims=True))
            alpha = jnp.exp(m_prev - m_new)
            p = jnp.exp(s - m_new)
            l_ref[...] = alpha * l_ref[...] + jnp.sum(p, axis=-1, keepdims=True)
            acc_ref[...] = alpha * acc_ref[...] + jnp.dot(
                p.astype(v.dtype), v, preferred_element_type=jnp.float32)
            m_ref[...] = m_new

        @pl.when(ki == pl.num_programs(3) - 1)
        def _():
            inv_l = pl.reciprocal(l_ref[...], approx=True)
            o_ref[...] = (acc_ref[...] * inv_l).reshape(
                n_rep, tq, head_dim).astype(o_ref.dtype)

    return kernel


def causal_gqa_attention(q, k, v):
    """q: [B, Hkv, n_rep, S, D]; k/v: [B, Hkv, S, D] -> [B, Hkv, n_rep, S, D]."""
    B, Hkv, n_rep, S, D = q.shape
    assert k.shape == (B, Hkv, S, D) and v.shape == (B, Hkv, S, D)
    scale = 1.0 / math.sqrt(D)

    tq = _pick_tile(S, (256, 128, 64, 32, 16, 8))
    tkv = _pick_tile(S, (512, 256, 128, 64, 32, 16, 8))
    # TODO(synk): pad/mask path for S not a multiple of 8 (falls back to full-S tiles).
    grid = (B, Hkv, S // tq, S // tkv)
    m_rows = n_rep * tq

    return pl.pallas_call(
        _make_flash_kernel(scale, n_rep, tq, tkv, D),
        out_shape=jax.ShapeDtypeStruct((B, Hkv, n_rep, S, D), q.dtype),
        grid_spec=pltpu.PrefetchScalarGridSpec(
            num_scalar_prefetch=0,
            grid=grid,
            in_specs=[
                # Whole GQA group of q heads per step -> K/V fetched once per
                # group instead of once per q head.
                pl.BlockSpec((None, None, n_rep, tq, D),
                             lambda b, g, qi, ki: (b, g, 0, qi, 0)),
                pl.BlockSpec((None, None, tkv, D),
                             lambda b, g, qi, ki: (b, g, ki, 0)),
                pl.BlockSpec((None, None, tkv, D),
                             lambda b, g, qi, ki: (b, g, ki, 0)),
            ],
            out_specs=pl.BlockSpec((None, None, n_rep, tq, D),
                                   lambda b, g, qi, ki: (b, g, 0, qi, 0)),
            scratch_shapes=[
                pltpu.VMEM((m_rows, D), q.dtype),       # pre-scaled q
                pltpu.VMEM((m_rows, 1), jnp.float32),   # running max m
                pltpu.VMEM((m_rows, 1), jnp.float32),   # running sum l
                pltpu.VMEM((m_rows, D), jnp.float32),   # output accumulator
            ],
        ),
        compiler_params=pltpu.CompilerParams(
            dimension_semantics=("parallel", "parallel", "parallel",
                                 "arbitrary"),
            vmem_limit_bytes=_VMEM_LIMIT,
        ),
    )(q, k, v)


# ----------------------------------------------------------------------------
# Full Attention.forward (dropout=0, use_cache=False, attention_mask=None).
# ----------------------------------------------------------------------------
def prepare_weights(wq, wk, wv, wo):
    """Done once at init (hoisted out of the forward path): fuse q/k/v weights
    and pre-transpose to the [in, out] layout the matmul kernel contracts."""
    w_qkv_t = jnp.concatenate([wq, wk, wv], axis=0).T   # [hidden, (H+2Hkv)*D]
    wo_t = wo.T                                          # [H*D, hidden]
    return w_qkv_t, wo_t


def attention_forward(x, w_qkv_t, wo_t, n_heads, n_kv_heads):
    B, S, hidden = x.shape
    head_dim = hidden // n_heads
    assert n_heads % n_kv_heads == 0
    n_rep = n_heads // n_kv_heads
    q_dim = n_heads * head_dim
    kv_dim = n_kv_heads * head_dim

    # Fused q/k/v projection: x read once, single pallas_call.
    qkv = linear_wt(x, w_qkv_t)                     # [B, S, (H + 2*Hkv)*D]
    xq = qkv[..., :q_dim]
    xk = qkv[..., q_dim:q_dim + kv_dim]
    xv = qkv[..., q_dim + kv_dim:]

    # TODO(synk): fold these head-major layout changes into the projection /
    # attention out_specs to drop the remaining XLA transposes.
    q = xq.reshape(B, S, n_kv_heads, n_rep, head_dim).transpose(0, 2, 3, 1, 4)
    k = xk.reshape(B, S, n_kv_heads, head_dim).transpose(0, 2, 1, 3)
    v = xv.reshape(B, S, n_kv_heads, head_dim).transpose(0, 2, 1, 3)

    attn = causal_gqa_attention(q, k, v)            # [B, Hkv, n_rep, S, D]
    attn = attn.transpose(0, 3, 1, 2, 4).reshape(B, S, n_heads * head_dim)

    out = linear_wt(attn, wo_t)
    # dropout p=0.0 -> identity; use_cache=False -> past_kv=None.
    # TODO(synk): padding attention_mask and KV-cache concat not implemented.
    return out, None


# ----------------------------------------------------------------------------
# Pure-JAX reference (mirrors the PyTorch module semantics).
# ----------------------------------------------------------------------------
def attention_reference(x, wq, wk, wv, wo, n_heads, n_kv_heads):
    B, S, hidden = x.shape
    head_dim = hidden // n_heads
    n_rep = n_heads // n_kv_heads
    xq = x @ wq.T
    xk = x @ wk.T
    xv = x @ wv.T
    q = xq.reshape(B, S, n_heads, head_dim)
    k = xk.reshape(B, S, n_kv_heads, head_dim)
    v = xv.reshape(B, S, n_kv_heads, head_dim)
    k = jnp.repeat(k, n_rep, axis=2)
    v = jnp.repeat(v, n_rep, axis=2)
    q, k, v = (t.transpose(0, 2, 1, 3) for t in (q, k, v))
    scores = jnp.einsum("bhqd,bhkd->bhqk", q, k) / math.sqrt(head_dim)
    mask = jnp.triu(jnp.full((S, S), -jnp.inf, jnp.float32), k=1)
    scores = scores + mask[None, None]
    p = jax.nn.softmax(scores.astype(jnp.float32), axis=-1).astype(q.dtype)
    out = jnp.einsum("bhqk,bhkd->bhqd", p, v)
    out = out.transpose(0, 2, 1, 3).reshape(B, S, n_heads * head_dim)
    return out @ wo.T


if __name__ == "__main__":
    # Exact f32 matmuls in the pure-JAX reference (avoids bf16-pass noise).
    jax.config.update("jax_default_matmul_precision", "highest")

    # Small shapes consistent with MiniMindConfig defaults:
    # hidden_size=512, num_attention_heads=8, num_key_value_heads=2.
    batch, seq_len = 2, 8
    hidden, n_heads, n_kv_heads = 512, 8, 2
    head_dim = hidden // n_heads

    key = jax.random.PRNGKey(0)
    kx, kq, kk, kv_, ko = jax.random.split(key, 5)
    x = jax.random.normal(kx, (batch, seq_len, hidden), dtype=jnp.float32)
    bound = 1.0 / math.sqrt(hidden)
    wq = jax.random.uniform(kq, (n_heads * head_dim, hidden), jnp.float32, -bound, bound)
    wk = jax.random.uniform(kk, (n_kv_heads * head_dim, hidden), jnp.float32, -bound, bound)
    wv = jax.random.uniform(kv_, (n_kv_heads * head_dim, hidden), jnp.float32, -bound, bound)
    wo = jax.random.uniform(ko, (hidden, n_heads * head_dim), jnp.float32, -bound, bound)

    # Weight fusion/transpose hoisted to init (not in the forward path).
    w_qkv_t, wo_t = prepare_weights(wq, wk, wv, wo)

    out, past_kv = attention_forward(x, w_qkv_t, wo_t, n_heads, n_kv_heads)
    out = jax.block_until_ready(out)

    ref = attention_reference(x, wq, wk, wv, wo, n_heads, n_kv_heads)
    assert out.shape == (batch, seq_len, hidden)
    assert past_kv is None
    max_err = float(jnp.max(jnp.abs(out - ref)))
    assert jnp.allclose(out, ref, atol=5e-3, rtol=5e-3), (
        f"mismatch vs reference (max abs err {max_err})")

    print("KERNEL_OK")
</pallas_src>

<mosaic_0001>
module attributes {stable_mosaic.version = 11 : i64} {
  func.func @_matmul_kernel(%arg0: i32, %arg1: i32, %arg2: i32, %arg3: memref<16x512xf32, #tpu.memory_space<vmem>>, %arg4: memref<512x256xf32, #tpu.memory_space<vmem>>, %arg5: memref<16x256xf32, #tpu.memory_space<vmem>>, %arg6: memref<16x256xf32, #tpu.memory_space<vmem>>) attributes {dimension_semantics = [#tpu.dimension_semantics<parallel>, #tpu.dimension_semantics<parallel>, #tpu.dimension_semantics<arbitrary>], iteration_bounds = array<i64: 1, 3, 1>, scalar_prefetch = 0 : i64, scratch_operands = 1 : i64, tpu.core_type = #tpu.core_type<tc>, window_params = [{transform_indices = @transform_0, window_bounds = array<i64: 16, 512>}, {transform_indices = @transform_1, window_bounds = array<i64: 512, 256>}, {transform_indices = @transform_2, window_bounds = array<i64: 16, 256>}]} {
    %c0_i32 = arith.constant 0 : i32
    %0 = arith.cmpi eq, %arg2, %c0_i32 : i32
    %1 = arith.extui %0 : i1 to i32
    %c0_i32_0 = arith.constant 0 : i32
    %2 = arith.cmpi ne, %1, %c0_i32_0 : i32
    scf.if %2 {
      %cst_10 = arith.constant 0.000000e+00 : f32
      %12 = vector.broadcast %cst_10 : f32 to vector<16x256xf32>
      %c0_11 = arith.constant 0 : index
      %c0_12 = arith.constant 0 : index
      %13 = vector.load %arg6[%c0_11, %c0_12] : memref<16x256xf32, #tpu.memory_space<vmem>>, vector<16x256xf32>
      tpu.vector_store %arg6[%c0_11, %c0_12], %12 {strides = array<i32>} : memref<16x256xf32, #tpu.memory_space<vmem>>, vector<16x256xf32>,
    } else {
    }
    %c0 = arith.constant 0 : index
    %c0_1 = arith.constant 0 : index
    %3 = vector.load %arg6[%c0, %c0_1] : memref<16x256xf32, #tpu.memory_space<vmem>>, vector<16x256xf32>
    %c0_2 = arith.constant 0 : index
    %c0_3 = arith.constant 0 : index
    %4 = vector.load %arg3[%c0_2, %c0_3] : memref<16x512xf32, #tpu.memory_space<vmem>>, vector<16x512xf32>
    %c0_4 = arith.constant 0 : index
    %c0_5 = arith.constant 0 : index
    %5 = vector.load %arg4[%c0_4, %c0_5] : memref<512x256xf32, #tpu.memory_space<vmem>>, vector<512x256xf32>
    %cst = arith.constant dense<0.000000e+00> : vector<16x256xf32>
    %6 = tpu.matmul %4, %5, %cst {dimension_numbers = #tpu.dot_dimension_numbers<[1], [0], [0], [1], [0, 0, 1, 1], [], []>, precision = #tpu.contract_precision<fp32>} : vector<16x512xf32>, vector<512x256xf32>, vector<16x256xf32> -> vector<16x256xf32>
    %7 = arith.addf %3, %6 : vector<16x256xf32>
    %c0_6 = arith.constant 0 : index
    %c0_7 = arith.constant 0 : index
    %8 = vector.load %arg6[%c0_6, %c0_7] : memref<16x256xf32, #tpu.memory_space<vmem>>, vector<16x256xf32>
    tpu.vector_store %arg6[%c0_6, %c0_7], %7 {strides = array<i32>} : memref<16x256xf32, #tpu.memory_space<vmem>>, vector<16x256xf32>,
    %c0_i32_8 = arith.constant 0 : i32
    %9 = arith.cmpi eq, %arg2, %c0_i32_8 : i32
    %10 = arith.extui %9 : i1 to i32
    %c0_i32_9 = arith.constant 0 : i32
    %11 = arith.cmpi ne, %10, %c0_i32_9 : i32
    scf.if %11 {
      %c0_10 = arith.constant 0 : index
      %c0_11 = arith.constant 0 : index
      %12 = vector.load %arg6[%c0_10, %c0_11] : memref<16x256xf32, #tpu.memory_space<vmem>>, vector<16x256xf32>
      %c0_12 = arith.constant 0 : index
      %c0_13 = arith.constant 0 : index
      %13 = vector.load %arg5[%c0_12, %c0_13] : memref<16x256xf32, #tpu.memory_space<vmem>>, vector<16x256xf32>
      tpu.vector_store %arg5[%c0_12, %c0_13], %12 {strides = array<i32>} : memref<16x256xf32, #tpu.memory_space<vmem>>, vector<16x256xf32>,
    } else {
    }
    return
  }
  func.func @transform_0(%arg0: i32, %arg1: i32, %arg2: i32) -> (i32, i32) {
    %c0_i32 = arith.constant 0 : i32
    return %arg0, %arg2 : i32, i32
  }
  func.func @transform_1(%arg0: i32, %arg1: i32, %arg2: i32) -> (i32, i32) {
    %c0_i32 = arith.constant 0 : i32
    return %arg2, %arg1 : i32, i32
  }
  func.func @transform_2(%arg0: i32, %arg1: i32, %arg2: i32) -> (i32, i32) {
    %c0_i32 = arith.constant 0 : i32
    return %arg0, %arg1 : i32, i32
  }
}

</mosaic_0001>

<bundles_post_ra>
// kernel: tpu_custom_call.1
= control target key start
LH: loop header
LB: loop body
LE: loop exit
PB: predicated region body
PF: predicated region fallthrough
CT: control target
= control target key end

     0   :  { %7 = vsyncpa [#allocation4], 0  ;;  %s6304_s0 = inlined_call_operand.hbm [shape: f32[16,512], index: 0, kind: input, shape index: {}]   ;;  %s6305_s1 = inlined_call_operand.hbm [shape: f32[512,768], index: 1, kind: input, shape index: {}]   ;;  %s6306_s2 = inlined_call_operand.hbm [shape: f32[16,768], index: 2, kind: output, shape index: {}]  }
   0x1   :  { %8 = vsyncpa [#allocation7], 0 }
   0x2   :  { %10 = vsyncpa [#allocation7 + $0x1], 0 }
   0x3   :  { %11 = vsyncpa [#allocation5], 0 }
   0x4   :  { %13 = vsyncpa [#allocation5 + $0x1], 0  ;;  %s4289_s9 = smov 0   ;;  %s4291_s10 = smov 0  }
   0x5   :  { %s4293_s11 = smov 0   ;;  %s4295_s12 = smov 0  }
   0x6   :  { %s4297_s13 = smov 0   ;;  %s4299_s14 = smov 0  }
   0x7 LB: > { %s3205_s15 = sadd.s32 4294967295, %s4261_s14   ;;  %s3206_s16 = sadd.s32 4294967294, %s4261_s14   ;;  %s4261_s14 = sphi %s4299_s14, %s19_s14   ;;  %s4257_s13 = sphi %s4297_s13, %s7652_s13   ;;  %s4253_s12 = sphi %s4295_s12, %s7651_s12   ;;  %s4249_s11 = sphi %s4293_s11, %s7650_s11   ;;  %s4245_s10 = sphi %s4291_s10, %s7649_s10   ;;  %s4241_s9 = sphi %s4289_s9, %s7648_s9  }
   0x8   : > { %p82_p0 = scmp.ne.s32.totalorder %s4249_s11, %s4245_s10  ;;  %p83_p1 = scmp.eq.s32.totalorder %s4261_s14, 0 }
   0x9   : > { %p88_p2 = scmp.ne.s32.totalorder %s4245_s10, %s4241_s9  ;;  %p4326_p3 = scmp.eq.s32.totalorder %s3205_s15, 0 }
   0xa   : > { %p4330_p4 = por %p83_p1, %p82_p0  ;;  %p114_p5 = scmp.eq.s32.totalorder %s3205_s15, 2 }
   0xb   : > { %s6840_s17 = scalar_select %p4326_p3, 1, 0 }
   0xc   : > { %p4336_p6 = por %p4326_p3, %p88_p2  ;;  %p120_p7 = scmp.eq.s32.totalorder %s3206_s16, 2 }
   0xd   : > { %p4340_p8 = por %p114_p5, %p82_p0  ;;  %p3207_p9 = scmp.ge.s32.totalorder %s4261_s14, 1 }
   0xe   : > { %s6842_s19 = scalar_select %p4336_p6, 1, 0 }
   0xf   : > { %s6843_s20 = scalar_select %p4340_p8, 1, 0 }
  0x10   : > { %p4345_p10 = por %p120_p7, %p88_p2  ;;  %p127_p11 = scmp.lt.s32.totalorder %s4261_s14, 4 }
  0x11   : > { %s4263_s23 = smov [#allocation3]   ;;  %p4057_p0 = scmp.lt.s32.totalorder %s4261_s14, 3 }
  0x12   : > { %s6844_s21 = scalar_select %p4345_p10, 1, 0 }
  0x13   : > { %p4350_p12 = pnand %p3207_p9, %p127_p11  ;;  %s145_s24 = sshll.u32 %s4263_s23, 4  ;;  %s146_s24 = int_to_ptr.vmem [resolvable:$true] %s145_s24 }
  0x14   : > { %p4365_p2 = pnand %p4057_p0, %p4330_p4  ;;  %s34_s27 = sadd.s32 1, %s4257_s13 }
  0x15   : > { %s6845_s22 = scalar_select %p4350_p12, 1, 0 }
  0x16   : > { %p4044_p13 = pneg %p4350_p12  ;;  %s4117_s30 = scalar_lea.hbm %s6304_s0, 1024 }
  0x17   : > { %s6847_s26 = scalar_select %p4365_p2, 1, 0 }
  0x18   : > { %p4359_p1 = pnand %p4044_p13, %p4326_p3  ;;  %p4118_p5 = scmp.ne.s32.totalorder %s6304_s0, %s4117_s30 }
  0x19   : > { %p4124_p4 = scmp.lt.u32.totalorder %s4117_s30, %s6304_s0 }
  0x1a   : > { %p4119_p7 = pneg %p4359_p1 }
  0x1c   : > { %p4120_p9 = pnand %p4119_p7, %p4118_p5 }
  0x1e   : > { %p4121_p11 = pneg %p4120_p9 }
  0x20   : > { %p4126_p13 = pnand %p4124_p4, %p4121_p11 }
  0x22   : > { %4129 = shalt.err (!%p4126_p13)
}
  0x23   : > { %s4130_s7 = scalar_lea.vmem %s146_s24, 1024  ;;  %p4138_p6 = scmp.lt.s32.totalorder %s146_s24, %s146_s24 }
  0x24   : > { %p4131_p0 = scmp.ne.s32.totalorder %s146_s24, %s4130_s7  ;;  %p4139_p3 = scmp.lt.s32.totalorder %s4130_s7, %s4130_s7 }
  0x26   : > { %p4133_p10 = pnand %p4131_p0, %p4119_p7  ;;  %p4140_p12 = por %p4139_p3, %p4138_p6 }
  0x28   : > { %p4134_p8 = pneg %p4133_p10 }
  0x2a   : > { %p4141_p2 = pnand %p4140_p12, %p4134_p8 }
  0x2c   : > { %4144 = shalt.err (!%p4141_p2)
}
  0x2d   : > { %s4264_s8 = smov 512   ;;  %s4265_s15 = smov 32  }
  0x2e   : > { %4047 = dma.hbm_to_vmem [thread:$0]  (!%p4359_p1), %s6304_s0, 1024, %s146_s24, [#allocation4], %s4264_s8, %s4264_s8, %s4265_s15  }
  0x2f   : > { %p36_p5 = scmp.ge.s32.totalorder %s34_s27, 3  ;;  %s75_s23 = sadd.s32 1, %s4249_s11 }
  0x30   : > { %s159_s28 = sand.u32 1, %s4249_s11   ;;  %s3222_s3 = sshll.u32 %s4257_s13, 8 }
  0x31   : > { %s7654_s27 = smov (%p36_p5, %s34_s27), 0  ;;  %s3210_s29 = sshll.u32 %s159_s28, 10 }
  0x32   : > { %s71_s30 = ssub.s32 %s4257_s13, %s7654_s27  ;;  %s4396_s25 = scalar_lea.hbm %s6305_s1, %s3222_s3 }
  0x33   : > { %p73_p3 = scmp.eq.s32.totalorder %s71_s30, 0  ;;  %s163_s24 = scalar_lea.vmem [#allocation6], %s3210_s29 }
  0x34   : > { %s173_s6 = sshll.u32 %s163_s24, 4  ;;  %s4403_s8 = scalar_lea.sflag [#allocation7], %s159_s28  ;;  %s4401_s6 = int_to_ptr.vmem [resolvable:$true] %s173_s6 }
  0x35   : > { %s4399_s7 = scalar_select %p73_p3, %s4249_s11, %s75_s23  }
  0x36   : > { %s4145_s15 = scalar_lea.hbm %s4396_s25, 16384  ;;  %p6848_p8 = scmp.ne.s32.totalorder %s6847_s26, 0 }
  0x37   : > { %p4146_p6 = scmp.ne.s32.totalorder %s4396_s25, %s4145_s15  ;;  %s4150_s30 = scalar_lea.hbm %s6305_s1, 49152 }
  0x38   : > { %p4147_p10 = pneg %p6848_p8  ;;  %p4151_p2 = scmp.lt.u32.totalorder %s4396_s25, %s6305_s1 }
  0x39   : > { %p4152_p7 = scmp.lt.u32.totalorder %s4150_s30, %s4145_s15  ;;  %p4154_p11 = scmp.lt.u32.totalorder %s4145_s15, %s4396_s25 }
  0x3a   : > { %p4148_p12 = pnand %p4147_p10, %p4146_p6 }
  0x3b   : > { %p4153_p9 = por %p4152_p7, %p4151_p2 }
  0x3c   : > { %p4149_p1 = pneg %p4148_p12 }
  0x3d   : > { %p4155_p4 = por %p4154_p11, %p4153_p9 }
  0x3f   : > { %p4156_p13 = pnand %p4155_p4, %p4149_p1 }
  0x41   : > { %4159 = shalt.err (!%p4156_p13)
}
  0x42   : > { %s4160_s23 = scalar_lea.vmem %s4401_s6, 16384  ;;  %s4266_s28 = smov [#allocation6]  }
  0x43   : > { %p4161_p0 = scmp.ne.s32.totalorder %s4401_s6, %s4160_s23  ;;  %s4165_s4 = sshll.u32 %s4266_s28, 4  ;;  %s4166_s4 = int_to_ptr.vmem [resolvable:$false] %s4165_s4 }
  0x44   : > { %s4167_s5 = scalar_lea.vmem %s4166_s4, 32768  ;;  %p4168_p6 = scmp.lt.s32.totalorder %s4401_s6, %s4166_s4 }
  0x45   : > { %p4163_p5 = pnand %p4161_p0, %p4147_p10  ;;  %p4169_p12 = scmp.lt.s32.totalorder %s4167_s5, %s4160_s23 }
  0x47   : > { %p4164_p3 = pneg %p4163_p5  ;;  %p4170_p2 = por %p4169_p12, %p4168_p6 }
  0x49   : > { %p4171_p7 = pnand %p4170_p2, %p4164_p3 }
  0x4b   : > { %4174 = shalt.err (!%p4171_p7)
}
  0x4c   : > { %s4267_s24 = smov 768   ;;  %s4268_s15 = smov 256  }
  0x4d   : > { %s4269_s16 = smov 16   ;;  %p6849_p10 = scmp.ne.s32.totalorder %s6845_s22, 0 }
  0x4e   : > { %4051 = dma.hbm_to_vmem [thread:$0]  (!%p6848_p8), %s4396_s25, 16384, %s4401_s6, %s4403_s8, %s4267_s24, %s4268_s15, %s4269_s16  }
  0x4f   : > { %185 = sbr.rel (%p6849_p10) target bundleno = 810 (0x32a), region = 28 }
  0x56   : > { %p6850_p1 = scmp.ne.s32.totalorder %s6840_s17, 0 }
  0x58   : > { %4228 = dma.done.wait (%p6850_p1), [#allocation4], 1024  }
  0x59   : > { %4230 = vsyncadd (%p6850_p1), [#allocation4], 4294966272  ;;  %s4438_s18 = sand.u32 1, %s4245_s10   ;;  %p6851_p8 = scmp.ne.s32.totalorder %s6842_s19, 0 }
  0x5a   : > { %s3215_s30 = sshll.u32 %s4438_s18, 10  ;;  %s192_s29 = scalar_lea.sflag [#allocation7], %s4438_s18 }
  0x5b   : > { %s4442_s3 = scalar_lea.vmem [#allocation6], %s3215_s30 }
  0x5c   : > { %4232 = dma.done.wait (%p6851_p8), %s192_s29, 16384  }
  0x5d   : > { %4234 = vsyncadd (%p6851_p8), %s192_s29, 4294950912  ;;  %v243_v0 = vld [vmem:[%s4442_s3 + $0x8] sm:$0xff]  ;;  %v245_v1 = vld [vmem:[%s4442_s3 + $0x18] sm:$0xff]  ;;  %s3216_s17 = sshll.u32 %s4438_s18, 5  ;;  %s3223_s26 = sshll.u32 %s4253_s12, 8 }
  0x5e   : > { %v307_v2 = vld [vmem:[%s4442_s3 + $0x208] sm:$0xff]  ;;  %v370_v3 = vand.u32 4294901760, %v243_v0  ;;  %v374_v4 = vand.u32 4294901760, %v245_v1  ;;  %v309_v5 = vld [vmem:[%s4442_s3 + $0x218] sm:$0xff]  ;;  %v242_v7 = vld [vmem:[%s4442_s3] sm:$0xff]  ;;  %s215_s19 = scalar_lea.vmem [#allocation8], %s3216_s17  ;;  %s6256_s8 = scalar_lea.hbm %s6306_s2, %s3223_s26 }
  0x5f   : > { %v1716_v6 = vand.u32 4294901760, %v307_v2  ;;  %v244_v8 = vld [vmem:[%s4442_s3 + $0x10] sm:$0xff]  ;;  %v1720_v9 = vand.u32 4294901760, %v309_v5  ;;  %v372_v10 = vand.u32 4294901760, %v242_v7  ;;  %v306_v12 = vld [vmem:[%s4442_s3 + $0x200] sm:$0xff]  ;;  %v247_v14 = vld [vmem:[%s4442_s3 + $0x28] sm:$0xff] }
  0x60   : > { %v376_v11 = vand.u32 4294901760, %v244_v8  ;;  %v308_v13 = vld [vmem:[%s4442_s3 + $0x210] sm:$0xff]  ;;  %v4457_v15 = vpack.c.bf16 %v374_v4, %v370_v3  ;;  %v4459_v16 = vsub.f32 %v243_v0, %v370_v3  ;;  %v4461_v17 = vsub.f32 %v245_v1, %v374_v4  ;;  %v249_v19 = vld [vmem:[%s4442_s3 + $0x38] sm:$0xff]  ;;  %v311_v20 = vld [vmem:[%s4442_s3 + $0x228] sm:$0xff]  ;;  %s3098_s22 = sshll.u32 %s215_s19, 4  ;;  %s3082_s23 = scalar_lea.sflag [#allocation5], %s4438_s18  ;;  %s6251_s22 = int_to_ptr.vmem [resolvable:$true] %s3098_s22 }
  0x61   : > { %v4463_v18 = vsub.f32 %v307_v2, %v1716_v6  ;;  %v313_v21 = vld [vmem:[%s4442_s3 + $0x238] sm:$0xff]  ;;  %v4468_v22 = vpack.c.bf16 %v1720_v9, %v1716_v6  ;;  %v4470_v23 = vsub.f32 %v309_v5, %v1720_v9  ;;  %v4474_v25 = vsub.f32 %v242_v7, %v372_v10  ;;  %v246_v26 = vld [vmem:[%s4442_s3 + $0x20] sm:$0xff]  ;;  %v248_v31 = vld [vmem:[%s4442_s3 + $0x30] sm:$0xff]  ;;  %s4175_s12 = scalar_lea.vmem %s6251_s22, 512  ;;  %p7646_p11 = scmp.ne.s32.totalorder %s6843_s20, 0 }
  0x62   : > { %6852 = vst [vmem:[#allocation12_spill] sm:$0xff] %v4457_v15  ;;  %6853 = vst [vmem:[#allocation13_spill] sm:$0xff] %v4459_v16  ;;  %v4472_v24 = vpack.c.bf16 %v376_v11, %v372_v10  ;;  %3225 = vmatprep.subr.bf16.mxu1 %v4457_v15  ;;  %v4478_v27 = vsub.f32 %v244_v8, %v376_v11  ;;  %v1718_v28 = vand.u32 4294901760, %v306_v12  ;;  %v1722_v29 = vand.u32 4294901760, %v308_v13  ;;  %v310_v36 = vld [vmem:[%s4442_s3 + $0x220] sm:$0xff]  ;;  %v312_v37 = vld [vmem:[%s4442_s3 + $0x230] sm:$0xff]  ;;  %p4176_p9 = scmp.ne.s32.totalorder %s6251_s22, %s4175_s12 }
  0x63   : > { %6854 = vst [vmem:[#allocation14_spill] sm:$0xff] %v4461_v17  ;;  %6855 = vst [vmem:[#allocation15_spill] sm:$0xff] %v4463_v18  ;;  %v378_v30 = vand.u32 4294901760, %v247_v14  ;;  %3609 = vmatprep.subr.bf16.mxu0 %v4468_v22  ;;  %v382_v32 = vand.u32 4294901760, %v249_v19  ;;  %v1724_v33 = vand.u32 4294901760, %v311_v20  ;;  %v1728_v34 = vand.u32 4294901760, %v313_v21 }
  0x64   : > { %6856 = vst [vmem:[#allocation16_spill] sm:$0xff] %v4468_v22  ;;  %6857 = vst [vmem:[#allocation17_spill] sm:$0xff] %v4470_v23  ;;  %3227 = vmatpush1.bf16.msra.mxu1 %v4472_v24  ;;  %v380_v35 = vand.u32 4294901760, %v246_v26  ;;  %v4485_v38 = vpack.c.bf16 %v1722_v29, %v1718_v28  ;;  %v4487_v39 = vsub.f32 %v306_v12, %v1718_v28  ;;  %v251_v42 = vld [vmem:[%s4442_s3 + $0x48] sm:$0xff]  ;;  %v253_v43 = vld [vmem:[%s4442_s3 + $0x58] sm:$0xff]  ;;  %v384_v51 = vand.u32 4294901760, %v248_v31  ;;  %p4177_p4 = pnand %p4176_p9, %p7646_p11 }
  0x65   : > { %6858 = vst [vmem:[#allocation18_spill] sm:$0xff] %v4472_v24  ;;  %6859 = vst [vmem:[#allocation19_spill] sm:$0xff] %v4474_v25  ;;  %v4489_v40 = vsub.f32 %v308_v13, %v1722_v29  ;;  %v4491_v41 = vsub.f32 %v247_v14, %v378_v30  ;;  %v315_v44 = vld [vmem:[%s4442_s3 + $0x248] sm:$0xff]  ;;  %v4496_v45 = vpack.c.bf16 %v382_v32, %v378_v30  ;;  %v317_v49 = vld [vmem:[%s4442_s3 + $0x258] sm:$0xff]  ;;  %v1726_v53 = vand.u32 4294901760, %v310_v36  ;;  %s4270_s28 = smov [#allocation8]  }
  0x66   : > { %6860 = vst [vmem:[#allocation20_spill] sm:$0xff] %v4478_v27  ;;  %6861 = vst [vmem:[#allocation21_spill] sm:$0xff] %v4485_v38  ;;  %v4498_v46 = vsub.f32 %v249_v19, %v382_v32  ;;  %v4500_v47 = vpack.c.bf16 %v1728_v34, %v1724_v33  ;;  %v4502_v48 = vsub.f32 %v311_v20, %v1724_v33  ;;  %3611 = vmatpush1.bf16.msra.mxu0 %v4485_v38  ;;  %v250_v58 = vld [vmem:[%s4442_s3 + $0x40] sm:$0xff]  ;;  %v252_v59 = vld [vmem:[%s4442_s3 + $0x50] sm:$0xff]  ;;  %p4178_p13 = pneg %p4177_p4  ;;  %s4179_s4 = sshll.u32 %s4270_s28, 4  ;;  %s4180_s4 = int_to_ptr.vmem [resolvable:$false] %s4179_s4 }
  0x67   : > { %6862 = vst [vmem:[#allocation22_spill] sm:$0xff] %v4487_v39  ;;  %6863 = vst [vmem:[#allocation23_spill] sm:$0xff] %v4489_v40  ;;  %v4506_v50 = vsub.f32 %v313_v21, %v1728_v34  ;;  %v4508_v52 = vsub.f32 %v246_v26, %v380_v35  ;;  %3229 = vmatprep.subr.bf16.mxu1 %v4496_v45  ;;  %v1730_v54 = vand.u32 4294901760, %v312_v37  ;;  %v386_v55 = vand.u32 4294901760, %v251_v42  ;;  %v314_v0 = vld [vmem:[%s4442_s3 + $0x240] sm:$0xff]  ;;  %v316_v1 = vld [vmem:[%s4442_s3 + $0x250] sm:$0xff]  ;;  %p4182_p0 = scmp.lt.s32.totalorder %s6251_s22, %s4180_s4 }
  0x68   : > { %6864 = vst [vmem:[#allocation24_spill] sm:$0xff] %v4491_v41  ;;  %6865 = vst [vmem:[#allocation25_spill] sm:$0xff] %v4496_v45  ;;  %3613 = vmatprep.subr.bf16.mxu0 %v4500_v47  ;;  %v390_v56 = vand.u32 4294901760, %v253_v43  ;;  %v1732_v57 = vand.u32 4294901760, %v315_v44  ;;  %v4514_v60 = vpack.c.bf16 %v384_v51, %v380_v35  ;;  %v4516_v61 = vsub.f32 %v248_v31, %v384_v51  ;;  %v255_v2 = vld [vmem:[%s4442_s3 + $0x68] sm:$0xff]  ;;  %v257_v7 = vld [vmem:[%s4442_s3 + $0x78] sm:$0xff] }
  0x69   : > { %6866 = vst [vmem:[#allocation26_spill] sm:$0xff] %v4498_v46  ;;  %6867 = vst [vmem:[#allocation27_spill] sm:$0xff] %v4500_v47  ;;  %v4518_v62 = vsub.f32 %v310_v36, %v1726_v53  ;;  %v1736_v63 = vand.u32 4294901760, %v317_v49  ;;  %v4523_v3 = vpack.c.bf16 %v1730_v54, %v1726_v53  ;;  %v4525_v4 = vsub.f32 %v312_v37, %v1730_v54  ;;  %v319_v8 = vld [vmem:[%s4442_s3 + $0x268] sm:$0xff]  ;;  %v321_v9 = vld [vmem:[%s4442_s3 + $0x278] sm:$0xff]  ;;  %s4181_s5 = scalar_lea.vmem %s4180_s4, 1024 }
  0x6a   : > { %6868 = vst [vmem:[#allocation28_spill] sm:$0xff] %v4502_v48  ;;  %6869 = vst [vmem:[#allocation29_spill] sm:$0xff] %v4506_v50  ;;  %v4527_v5 = vpack.c.bf16 %v390_v56, %v386_v55  ;;  %v4529_v6 = vsub.f32 %v251_v42, %v386_v55  ;;  %3231 = vmatpush1.bf16.msra.mxu1 %v4514_v60  ;;  %v4535_v10 = vsub.f32 %v253_v43, %v390_v56  ;;  %v254_v31 = vld [vmem:[%s4442_s3 + $0x60] sm:$0xff]  ;;  %v256_v36 = vld [vmem:[%s4442_s3 + $0x70] sm:$0xff]  ;;  %p4183_p5 = scmp.lt.s32.totalorder %s4181_s5, %s4175_s12 }
  0x6b   : > { %6870 = vst [vmem:[#allocation30_spill] sm:$0xff] %v4508_v52  ;;  %6871 = vst [vmem:[#allocation31_spill] sm:$0xff] %v4514_v60  ;;  %v4537_v11 = vpack.c.bf16 %v1736_v63, %v1732_v57  ;;  %v4539_v12 = vsub.f32 %v315_v44, %v1732_v57  ;;  %v4541_v13 = vsub.f32 %v317_v49, %v1736_v63  ;;  %3615 = vmatpush1.bf16.msra.mxu0 %v4523_v3  ;;  %v318_v37 = vld [vmem:[%s4442_s3 + $0x260] sm:$0xff]  ;;  %v320_v42 = vld [vmem:[%s4442_s3 + $0x270] sm:$0xff] }
  0x6c   : > { %6872 = vst [vmem:[#allocation32_spill] sm:$0xff] %v4516_v61  ;;  %6873 = vst [vmem:[#allocation33_spill] sm:$0xff] %v4518_v62  ;;  %3233 = vmatprep.subr.bf16.mxu1 %v4527_v5  ;;  %v388_v14 = vand.u32 4294901760, %v250_v58  ;;  %v392_v19 = vand.u32 4294901760, %v252_v59  ;;  %v1734_v20 = vand.u32 4294901760, %v314_v0  ;;  %v1738_v21 = vand.u32 4294901760, %v316_v1  ;;  %p4184_p3 = por %p4183_p5, %p4182_p0 }
  0x6d   : > { %6874 = vst [vmem:[#allocation34_spill] sm:$0xff] %v4523_v3  ;;  %6875 = vst [vmem:[#allocation35_spill] sm:$0xff] %v4525_v4  ;;  %3617 = vmatprep.subr.bf16.mxu0 %v4537_v11  ;;  %v394_v26 = vand.u32 4294901760, %v255_v2  ;;  %v398_v28 = vand.u32 4294901760, %v257_v7  ;;  %v1740_v29 = vand.u32 4294901760, %v319_v8  ;;  %v1744_v30 = vand.u32 4294901760, %v321_v9 }
  0x6e   : > { %6876 = vst [vmem:[#allocation36_spill] sm:$0xff] %v4527_v5  ;;  %6877 = vst [vmem:[#allocation37_spill] sm:$0xff] %v4529_v6  ;;  %v4547_v32 = vpack.c.bf16 %v392_v19, %v388_v14  ;;  %v4549_v33 = vsub.f32 %v250_v58, %v388_v14  ;;  %v4551_v34 = vsub.f32 %v252_v59, %v392_v19  ;;  %v259_v53 = vld [vmem:[%s4442_s3 + $0x88] sm:$0xff]  ;;  %v261_v54 = vld [vmem:[%s4442_s3 + $0x98] sm:$0xff]  ;;  %v396_v59 = vand.u32 4294901760, %v254_v31  ;;  %p4185_p6 = pnand %p4184_p3, %p4178_p13 }
  0x6f   : > { %6878 = vst [vmem:[#allocation38_spill] sm:$0xff] %v4535_v10  ;;  %6879 = vst [vmem:[#allocation39_spill] sm:$0xff] %v4537_v11  ;;  %v4553_v35 = vpack.c.bf16 %v1738_v21, %v1734_v20  ;;  %v4558_v43 = vsub.f32 %v314_v0, %v1734_v20  ;;  %v4560_v44 = vsub.f32 %v316_v1, %v1738_v21  ;;  %v323_v55 = vld [vmem:[%s4442_s3 + $0x288] sm:$0xff]  ;;  %v400_v0 = vand.u32 4294901760, %v256_v36  ;;  %v325_v14 = vld [vmem:[%s4442_s3 + $0x298] sm:$0xff] }
  0x70   : > { %6880 = vst [vmem:[#allocation40_spill] sm:$0xff] %v4539_v12  ;;  %6881 = vst [vmem:[#allocation41_spill] sm:$0xff] %v4541_v13  ;;  %v4562_v49 = vpack.c.bf16 %v398_v28, %v394_v26  ;;  %v4564_v51 = vsub.f32 %v255_v2, %v394_v26  ;;  %3235 = vmatpush1.bf16.msra.mxu1 %v4547_v32  ;;  %v4571_v56 = vsub.f32 %v257_v7, %v398_v28  ;;  %v258_v21 = vld [vmem:[%s4442_s3 + $0x80] sm:$0xff]  ;;  %v260_v26 = vld [vmem:[%s4442_s3 + $0x90] sm:$0xff] }
  0x71   : > { %6882 = vst [vmem:[#allocation42_spill] sm:$0xff] %v4547_v32  ;;  %6883 = vst [vmem:[#allocation43_spill] sm:$0xff] %v4549_v33  ;;  %3619 = vmatpush1.bf16.msra.mxu0 %v4553_v35  ;;  %v4573_v57 = vpack.c.bf16 %v1744_v30, %v1740_v29  ;;  %v4575_v58 = vsub.f32 %v319_v8, %v1740_v29  ;;  %v4578_v63 = vsub.f32 %v321_v9, %v1744_v30  ;;  %v322_v28 = vld [vmem:[%s4442_s3 + $0x280] sm:$0xff]  ;;  %v263_v32 = vld [vmem:[%s4442_s3 + $0xa8] sm:$0xff] }
  0x72   : > { %6884 = vst [vmem:[#allocation44_spill] sm:$0xff] %v4551_v34  ;;  %6885 = vst [vmem:[#allocation45_spill] sm:$0xff] %v4553_v35  ;;  %3237 = vmatprep.subr.bf16.mxu1 %v4562_v49  ;;  %v1742_v1 = vand.u32 4294901760, %v318_v37  ;;  %v1746_v2 = vand.u32 4294901760, %v320_v42  ;;  %v4582_v7 = vsub.f32 %v254_v31, %v396_v59  ;;  %v402_v19 = vand.u32 4294901760, %v259_v53  ;;  %v265_v11 = vld [vmem:[%s4442_s3 + $0xb8] sm:$0xff] }
  0x73   : > { %6886 = vst [vmem:[#allocation46_spill] sm:$0xff] %v4558_v43  ;;  %6887 = vst [vmem:[#allocation47_spill] sm:$0xff] %v4560_v44  ;;  %3621 = vmatprep.subr.bf16.mxu0 %v4573_v57  ;;  %v406_v20 = vand.u32 4294901760, %v261_v54  ;;  %v1748_v8 = vand.u32 4294901760, %v323_v55  ;;  %v4587_v29 = vpack.c.bf16 %v400_v0, %v396_v59  ;;  %v4589_v9 = vsub.f32 %v256_v36, %v400_v0  ;;  %v262_v60 = vld [vmem:[%s4442_s3 + $0xa0] sm:$0xff]  ;;  %v264_v47 = vld [vmem:[%s4442_s3 + $0xb0] sm:$0xff] }
  0x74   : > { %6888 = vst [vmem:[#allocation48_spill] sm:$0xff] %v4562_v49  ;;  %6889 = vst [vmem:[#allocation49_spill] sm:$0xff] %v4564_v51  ;;  %v4591_v30 = vpack.c.bf16 %v1746_v2, %v1742_v1  ;;  %v4593_v35 = vsub.f32 %v318_v37, %v1742_v1  ;;  %v324_v49 = vld [vmem:[%s4442_s3 + $0x290] sm:$0xff]  ;;  %v4598_v31 = vsub.f32 %v320_v42, %v1746_v2  ;;  %v1752_v36 = vand.u32 4294901760, %v325_v14  ;;  %v327_v2 = vld [vmem:[%s4442_s3 + $0x2a8] sm:$0xff] }
  0x75   : > { %6890 = vst [vmem:[#allocation50_spill] sm:$0xff] %v4571_v56  ;;  %6891 = vst [vmem:[#allocation51_spill] sm:$0xff] %v4573_v57  ;;  %v4600_v57 = vpack.c.bf16 %v406_v20, %v402_v19  ;;  %v4602_v3 = vsub.f32 %v259_v53, %v402_v19  ;;  %v4604_v5 = vsub.f32 %v261_v54, %v406_v20  ;;  %3239 = vmatpush1.bf16.msra.mxu1 %v4587_v29  ;;  %v329_v19 = vld [vmem:[%s4442_s3 + $0x2b8] sm:$0xff]  ;;  %v328_v15 = vld [vmem:[%s4442_s3 + $0x2b0] sm:$0xff] }
  0x76   : > { %6892 = vst [vmem:[#allocation52_spill] sm:$0xff] %v4575_v58  ;;  %6893 = vst [vmem:[#allocation53_spill] sm:$0xff] %v4578_v63  ;;  %3623 = vmatpush1.bf16.msra.mxu0 %v4591_v30  ;;  %v4608_v37 = vsub.f32 %v323_v55, %v1748_v8  ;;  %v404_v59 = vand.u32 4294901760, %v258_v21  ;;  %v408_v42 = vand.u32 4294901760, %v260_v26  ;;  %v1750_v0 = vand.u32 4294901760, %v322_v28 }
  0x77   : > { %6894 = vst [vmem:[#allocation54_spill] sm:$0xff] %v4582_v7  ;;  %6895 = vst [vmem:[#allocation55_spill] sm:$0xff] %v4587_v29  ;;  %3241 = vmatprep.subr.bf16.mxu1 %v4600_v57  ;;  %v1754_v1 = vand.u32 4294901760, %v324_v49  ;;  %v410_v53 = vand.u32 4294901760, %v263_v32  ;;  %v414_v54 = vand.u32 4294901760, %v265_v11  ;;  %v4613_v20 = vpack.c.bf16 %v1752_v36, %v1748_v8  ;;  %v267_v8 = vld [vmem:[%s4442_s3 + $0xc8] sm:$0xff] }
  0x78   : > { %6896 = vst [vmem:[#allocation56_spill] sm:$0xff] %v4589_v9  ;;  %6897 = vst [vmem:[#allocation57_spill] sm:$0xff] %v4591_v30  ;;  %v4615_v30 = vsub.f32 %v325_v14, %v1752_v36  ;;  %v4617_v55 = vpack.c.bf16 %v408_v42, %v404_v59  ;;  %v4619_v29 = vsub.f32 %v258_v21, %v404_v59  ;;  %v1756_v36 = vand.u32 4294901760, %v327_v2 }
  0x79   : > { %6898 = vst [vmem:[#allocation58_spill] sm:$0xff] %v4593_v35  ;;  %6899 = vst [vmem:[#allocation59_spill] sm:$0xff] %v4598_v31  ;;  %v4624_v38 = vsub.f32 %v260_v26, %v408_v42  ;;  %v4626_v45 = vpack.c.bf16 %v1754_v1, %v1750_v0  ;;  %v4628_v24 = vsub.f32 %v322_v28, %v1750_v0  ;;  %3625 = vmatprep.subr.bf16.mxu0 %v4613_v20 }
  0x7a   : > { %6900 = vst [vmem:[#allocation60_spill] sm:$0xff] %v4600_v57  ;;  %6901 = vst [vmem:[#allocation61_spill] sm:$0xff] %v4602_v3  ;;  %v326_v57 = vld [vmem:[%s4442_s3 + $0x2a0] sm:$0xff]  ;;  %v4630_v22 = vsub.f32 %v324_v49, %v1754_v1  ;;  %3243 = vmatpush1.bf16.msra.mxu1 %v4617_v55  ;;  %v4637_v14 = vpack.c.bf16 %v414_v54, %v410_v53  ;;  %v4639_v21 = vsub.f32 %v263_v32, %v410_v53  ;;  %v331_v53 = vld [vmem:[%s4442_s3 + $0x2c8] sm:$0xff] }
  0x7b   : > { %6902 = vst [vmem:[#allocation62_spill] sm:$0xff] %v4604_v5  ;;  %6903 = vst [vmem:[#allocation63_spill] sm:$0xff] %v4608_v37  ;;  %v269_v37 = vld [vmem:[%s4442_s3 + $0xd8] sm:$0xff]  ;;  %v4641_v26 = vsub.f32 %v265_v11, %v414_v54  ;;  %3627 = vmatpush1.bf16.msra.mxu0 %v4626_v45  ;;  %v1760_v49 = vand.u32 4294901760, %v329_v19  ;;  %v412_v28 = vand.u32 4294901760, %v262_v60  ;;  %v416_v59 = vand.u32 4294901760, %v264_v47 }
  0x7c   : > { %6904 = vst [vmem:[#allocation64_spill] sm:$0xff] %v4613_v20  ;;  %6905 = vst [vmem:[#allocation65_spill] sm:$0xff] %v4615_v30  ;;  %v1758_v42 = vand.u32 4294901760, %v326_v57  ;;  %3245 = vmatprep.subr.bf16.mxu1 %v4637_v14  ;;  %v4645_v0 = vsub.f32 %v327_v2, %v1756_v36  ;;  %v1762_v1 = vand.u32 4294901760, %v328_v15  ;;  %v418_v32 = vand.u32 4294901760, %v267_v8  ;;  %v333_v54 = vld [vmem:[%s4442_s3 + $0x2d8] sm:$0xff] }
  0x7d   : > { %6906 = vst [vmem:[#allocation66_spill] sm:$0xff] %v4617_v55  ;;  %6907 = vst [vmem:[#allocation67_spill] sm:$0xff] %v4619_v29  ;;  %v422_v11 = vand.u32 4294901760, %v269_v37  ;;  %v4651_v55 = vsub.f32 %v329_v19, %v1760_v49  ;;  %v4653_v20 = vpack.c.bf16 %v416_v59, %v412_v28  ;;  %v330_v2 = vld [vmem:[%s4442_s3 + $0x2c0] sm:$0xff]  ;;  %v332_v29 = vld [vmem:[%s4442_s3 + $0x2d0] sm:$0xff] }
  0x7e   : > { %6908 = vst [vmem:[#allocation68_spill] sm:$0xff] %v4624_v38  ;;  %6909 = vst [vmem:[#allocation69_spill] sm:$0xff] %v4626_v45  ;;  %v4649_v45 = vpack.c.bf16 %v1760_v49, %v1756_v36  ;;  %v4666_v38 = vsub.f32 %v328_v15, %v1762_v1  ;;  %v271_v36 = vld [vmem:[%s4442_s3 + $0xe8] sm:$0xff]  ;;  %v273_v30 = vld [vmem:[%s4442_s3 + $0xf8] sm:$0xff]  ;;  %v4675_v19 = vsub.f32 %v267_v8, %v418_v32  ;;  %v1764_v49 = vand.u32 4294901760, %v331_v53 }
  0x7f   : > { %6910 = vst [vmem:[#allocation70_spill] sm:$0xff] %v4628_v24  ;;  %6911 = vst [vmem:[#allocation71_spill] sm:$0xff] %v4630_v22  ;;  %v4662_v22 = vpack.c.bf16 %v1762_v1, %v1758_v42  ;;  %v4664_v24 = vsub.f32 %v326_v57, %v1758_v42  ;;  %3247 = vmatpush1.bf16.msra.mxu1 %v4653_v20  ;;  %v1768_v15 = vand.u32 4294901760, %v333_v54  ;;  %v1770_v1 = vand.u32 4294901760, %v332_v29 }
  0x80   : > { %6912 = vst [vmem:[#allocation72_spill] sm:$0xff] %v4637_v14  ;;  %6913 = vst [vmem:[#allocation73_spill] sm:$0xff] %v4639_v21  ;;  %v266_v21 = vld [vmem:[%s4442_s3 + $0xc0] sm:$0xff]  ;;  %v268_v14 = vld [vmem:[%s4442_s3 + $0xd0] sm:$0xff]  ;;  %3629 = vmatprep.subr.bf16.mxu0 %v4649_v45  ;;  %v4681_v42 = vsub.f32 %v331_v53, %v1764_v49  ;;  %v426_v8 = vand.u32 4294901760, %v271_v36 }
  0x81   : > { %6914 = vst [vmem:[#allocation74_spill] sm:$0xff] %v4641_v26  ;;  %6915 = vst [vmem:[#allocation75_spill] sm:$0xff] %v4645_v0  ;;  %v4655_v26 = vsub.f32 %v262_v60, %v412_v28  ;;  %v4660_v0 = vsub.f32 %v264_v47, %v416_v59  ;;  %v4673_v60 = vpack.c.bf16 %v422_v11, %v418_v32  ;;  %3631 = vmatpush1.bf16.msra.mxu0 %v4662_v22  ;;  %v335_v32 = vld [vmem:[%s4442_s3 + $0x2e8] sm:$0xff]  ;;  %v334_v53 = vld [vmem:[%s4442_s3 + $0x2e0] sm:$0xff] }
  0x82   : > { %6916 = vst [vmem:[#allocation76_spill] sm:$0xff] %v4649_v45  ;;  %6917 = vst [vmem:[#allocation77_spill] sm:$0xff] %v4651_v55  ;;  %v4677_v47 = vsub.f32 %v269_v37, %v422_v11  ;;  %v420_v57 = vand.u32 4294901760, %v266_v21  ;;  %v424_v28 = vand.u32 4294901760, %v268_v14  ;;  %v1766_v59 = vand.u32 4294901760, %v330_v2  ;;  %v337_v11 = vld [vmem:[%s4442_s3 + $0x2f8] sm:$0xff] }
  0x83   : > { %6918 = vst [vmem:[#allocation78_spill] sm:$0xff] %v4653_v20  ;;  %6919 = vst [vmem:[#allocation79_spill] sm:$0xff] %v4655_v26  ;;  %3249 = vmatprep.subr.bf16.mxu1 %v4673_v60  ;;  %v430_v37 = vand.u32 4294901760, %v273_v30  ;;  %v4687_v20 = vsub.f32 %v333_v54, %v1768_v15  ;;  %v336_v26 = vld [vmem:[%s4442_s3 + $0x2f0] sm:$0xff]  ;;  %v277_v55 = vld [vmem:[%s4442_s3 + $0x118] sm:$0xff]  ;;  %v4711_v54 = vsub.f32 %v271_v36, %v426_v8 }
  0x84   : > { %6920 = vst [vmem:[#allocation80_spill] sm:$0xff] %v4660_v0  ;;  %6921 = vst [vmem:[#allocation81_spill] sm:$0xff] %v4662_v22  ;;  %v4685_v22 = vpack.c.bf16 %v1768_v15, %v1764_v49  ;;  %v4689_v45 = vpack.c.bf16 %v424_v28, %v420_v57  ;;  %v4702_v0 = vsub.f32 %v332_v29, %v1770_v1  ;;  %v275_v49 = vld [vmem:[%s4442_s3 + $0x108] sm:$0xff]  ;;  %v1772_v15 = vand.u32 4294901760, %v335_v32 }
  0x85   : > { %6922 = vst [vmem:[#allocation82_spill] sm:$0xff] %v4664_v24  ;;  %6923 = vst [vmem:[#allocation83_spill] sm:$0xff] %v4666_v38  ;;  %v4698_v38 = vpack.c.bf16 %v1770_v1, %v1766_v59  ;;  %v4700_v24 = vsub.f32 %v330_v2, %v1766_v59  ;;  %v1776_v29 = vand.u32 4294901760, %v337_v11  ;;  %v1778_v1 = vand.u32 4294901760, %v336_v26 }
  0x86   : > { %6924 = vst [vmem:[#allocation84_spill] sm:$0xff] %v4673_v60  ;;  %6925 = vst [vmem:[#allocation85_spill] sm:$0xff] %v4675_v19  ;;  %v270_v19 = vld [vmem:[%s4442_s3 + $0xe0] sm:$0xff]  ;;  %v272_v60 = vld [vmem:[%s4442_s3 + $0xf0] sm:$0xff]  ;;  %3633 = vmatprep.subr.bf16.mxu0 %v4685_v22  ;;  %3251 = vmatpush1.bf16.msra.mxu1 %v4689_v45  ;;  %v4717_v59 = vsub.f32 %v335_v32, %v1772_v15  ;;  %v434_v36 = vand.u32 4294901760, %v275_v49 }
  0x87   : > { %6926 = vst [vmem:[#allocation86_spill] sm:$0xff] %v4677_v47  ;;  %6927 = vst [vmem:[#allocation87_spill] sm:$0xff] %v4681_v42  ;;  %v4691_v47 = vsub.f32 %v266_v21, %v420_v57  ;;  %v4696_v42 = vsub.f32 %v268_v14, %v424_v28  ;;  %v4709_v21 = vpack.c.bf16 %v430_v37, %v426_v8  ;;  %3635 = vmatpush1.bf16.msra.mxu0 %v4698_v38  ;;  %v339_v8 = vld [vmem:[%s4442_s3 + $0x308] sm:$0xff]  ;;  %v338_v32 = vld [vmem:[%s4442_s3 + $0x300] sm:$0xff] }
  0x88   : > { %6928 = vst [vmem:[#allocation88_spill] sm:$0xff] %v4685_v22  ;;  %6929 = vst [vmem:[#allocation89_spill] sm:$0xff] %v4687_v20  ;;  %v4713_v14 = vsub.f32 %v273_v30, %v430_v37  ;;  %v428_v2 = vand.u32 4294901760, %v270_v19  ;;  %v432_v57 = vand.u32 4294901760, %v272_v60  ;;  %v1774_v28 = vand.u32 4294901760, %v334_v53  ;;  %v341_v37 = vld [vmem:[%s4442_s3 + $0x318] sm:$0xff] }
  0x89   : > { %6930 = vst [vmem:[#allocation90_spill] sm:$0xff] %v4689_v45  ;;  %6931 = vst [vmem:[#allocation91_spill] sm:$0xff] %v4691_v47  ;;  %3253 = vmatprep.subr.bf16.mxu1 %v4709_v21  ;;  %v438_v30 = vand.u32 4294901760, %v277_v55  ;;  %v4723_v45 = vsub.f32 %v337_v11, %v1776_v29  ;;  %v340_v47 = vld [vmem:[%s4442_s3 + $0x310] sm:$0xff]  ;;  %v281_v20 = vld [vmem:[%s4442_s3 + $0x138] sm:$0xff]  ;;  %v4747_v11 = vsub.f32 %v275_v49, %v434_v36 }
  0x8a   : > { %6932 = vst [vmem:[#allocation92_spill] sm:$0xff] %v4696_v42  ;;  %6933 = vst [vmem:[#allocation93_spill] sm:$0xff] %v4698_v38  ;;  %v4721_v38 = vpack.c.bf16 %v1776_v29, %v1772_v15  ;;  %v4725_v22 = vpack.c.bf16 %v432_v57, %v428_v2  ;;  %v4738_v42 = vsub.f32 %v336_v26, %v1778_v1  ;;  %v279_v15 = vld [vmem:[%s4442_s3 + $0x128] sm:$0xff]  ;;  %v1780_v29 = vand.u32 4294901760, %v339_v8 }
  0x8b   : > { %6934 = vst [vmem:[#allocation94_spill] sm:$0xff] %v4700_v24  ;;  %6935 = vst [vmem:[#allocation95_spill] sm:$0xff] %v4702_v0  ;;  %v4734_v0 = vpack.c.bf16 %v1778_v1, %v1774_v28  ;;  %v4736_v24 = vsub.f32 %v334_v53, %v1774_v28  ;;  %v1784_v26 = vand.u32 4294901760, %v341_v37  ;;  %v1786_v1 = vand.u32 4294901760, %v340_v47 }
  0x8c   : > { %6936 = vst [vmem:[#allocation96_spill] sm:$0xff] %v4709_v21  ;;  %6937 = vst [vmem:[#allocation97_spill] sm:$0xff] %v4711_v54  ;;  %v274_v54 = vld [vmem:[%s4442_s3 + $0x100] sm:$0xff]  ;;  %v276_v21 = vld [vmem:[%s4442_s3 + $0x110] sm:$0xff]  ;;  %3637 = vmatprep.subr.bf16.mxu0 %v4721_v38  ;;  %3255 = vmatpush1.bf16.msra.mxu1 %v4725_v22  ;;  %v4753_v28 = vsub.f32 %v339_v8, %v1780_v29  ;;  %v442_v49 = vand.u32 4294901760, %v279_v15 }
  0x8d   : > { %6938 = vst [vmem:[#allocation98_spill] sm:$0xff] %v4713_v14  ;;  %6939 = vst [vmem:[#allocation99_spill] sm:$0xff] %v4717_v59  ;;  %v4727_v14 = vsub.f32 %v270_v19, %v428_v2  ;;  %v4732_v59 = vsub.f32 %v272_v60, %v432_v57  ;;  %v4745_v19 = vpack.c.bf16 %v438_v30, %v434_v36  ;;  %3639 = vmatpush1.bf16.msra.mxu0 %v4734_v0  ;;  %v343_v36 = vld [vmem:[%s4442_s3 + $0x328] sm:$0xff]  ;;  %v342_v8 = vld [vmem:[%s4442_s3 + $0x320] sm:$0xff] }
  0x8e   : > { %6940 = vst [vmem:[#allocation100_spill] sm:$0xff] %v4721_v38  ;;  %6941 = vst [vmem:[#allocation101_spill] sm:$0xff] %v4723_v45  ;;  %v4749_v60 = vsub.f32 %v277_v55, %v438_v30  ;;  %v436_v53 = vand.u32 4294901760, %v274_v54  ;;  %v440_v2 = vand.u32 4294901760, %v276_v21  ;;  %v1782_v57 = vand.u32 4294901760, %v338_v32  ;;  %v345_v30 = vld [vmem:[%s4442_s3 + $0x338] sm:$0xff] }
  0x8f   : > { %6942 = vst [vmem:[#allocation102_spill] sm:$0xff] %v4725_v22  ;;  %6943 = vst [vmem:[#allocation103_spill] sm:$0xff] %v4727_v14  ;;  %3257 = vmatprep.subr.bf16.mxu1 %v4745_v19  ;;  %v446_v55 = vand.u32 4294901760, %v281_v20  ;;  %v4759_v22 = vsub.f32 %v341_v37, %v1784_v26  ;;  %v344_v14 = vld [vmem:[%s4442_s3 + $0x330] sm:$0xff]  ;;  %v285_v45 = vld [vmem:[%s4442_s3 + $0x158] sm:$0xff]  ;;  %v4783_v37 = vsub.f32 %v279_v15, %v442_v49 }
  0x90   : > { %6944 = vst [vmem:[#allocation104_spill] sm:$0xff] %v4732_v59  ;;  %6945 = vst [vmem:[#allocation105_spill] sm:$0xff] %v4734_v0  ;;  %v4757_v0 = vpack.c.bf16 %v1784_v26, %v1780_v29  ;;  %v4761_v38 = vpack.c.bf16 %v440_v2, %v436_v53  ;;  %v4774_v59 = vsub.f32 %v340_v47, %v1786_v1  ;;  %v283_v29 = vld [vmem:[%s4442_s3 + $0x148] sm:$0xff]  ;;  %v1788_v26 = vand.u32 4294901760, %v343_v36 }
  0x91   : > { %6946 = vst [vmem:[#allocation106_spill] sm:$0xff] %v4736_v24  ;;  %6947 = vst [vmem:[#allocation107_spill] sm:$0xff] %v4738_v42  ;;  %v4770_v42 = vpack.c.bf16 %v1786_v1, %v1782_v57  ;;  %v4772_v24 = vsub.f32 %v338_v32, %v1782_v57  ;;  %v1792_v47 = vand.u32 4294901760, %v345_v30  ;;  %v1794_v1 = vand.u32 4294901760, %v344_v14 }
  0x92   : > { %6948 = vst [vmem:[#allocation108_spill] sm:$0xff] %v4745_v19  ;;  %6949 = vst [vmem:[#allocation109_spill] sm:$0xff] %v4747_v11  ;;  %v278_v11 = vld [vmem:[%s4442_s3 + $0x120] sm:$0xff]  ;;  %v280_v19 = vld [vmem:[%s4442_s3 + $0x130] sm:$0xff]  ;;  %3641 = vmatprep.subr.bf16.mxu0 %v4757_v0  ;;  %3259 = vmatpush1.bf16.msra.mxu1 %v4761_v38  ;;  %v4789_v57 = vsub.f32 %v343_v36, %v1788_v26  ;;  %v450_v15 = vand.u32 4294901760, %v283_v29 }
  0x93   : > { %6950 = vst [vmem:[#allocation110_spill] sm:$0xff] %v4749_v60  ;;  %6951 = vst [vmem:[#allocation111_spill] sm:$0xff] %v4753_v28  ;;  %v4763_v60 = vsub.f32 %v274_v54, %v436_v53  ;;  %v4768_v28 = vsub.f32 %v276_v21, %v440_v2  ;;  %v4781_v54 = vpack.c.bf16 %v446_v55, %v442_v49  ;;  %3643 = vmatpush1.bf16.msra.mxu0 %v4770_v42  ;;  %v347_v49 = vld [vmem:[%s4442_s3 + $0x348] sm:$0xff]  ;;  %v346_v36 = vld [vmem:[%s4442_s3 + $0x340] sm:$0xff] }
  0x94   : > { %6952 = vst [vmem:[#allocation112_spill] sm:$0xff] %v4757_v0  ;;  %6953 = vst [vmem:[#allocation113_spill] sm:$0xff] %v4759_v22  ;;  %v4785_v21 = vsub.f32 %v281_v20, %v446_v55  ;;  %v444_v32 = vand.u32 4294901760, %v278_v11  ;;  %v448_v53 = vand.u32 4294901760, %v280_v19  ;;  %v1790_v2 = vand.u32 4294901760, %v342_v8  ;;  %v349_v55 = vld [vmem:[%s4442_s3 + $0x358] sm:$0xff] }
  0x95   : > { %6954 = vst [vmem:[#allocation114_spill] sm:$0xff] %v4761_v38  ;;  %6955 = vst [vmem:[#allocation115_spill] sm:$0xff] %v4763_v60  ;;  %3261 = vmatprep.subr.bf16.mxu1 %v4781_v54  ;;  %v454_v20 = vand.u32 4294901760, %v285_v45  ;;  %v4795_v38 = vsub.f32 %v345_v30, %v1792_v47  ;;  %v348_v60 = vld [vmem:[%s4442_s3 + $0x350] sm:$0xff]  ;;  %v289_v22 = vld [vmem:[%s4442_s3 + $0x178] sm:$0xff]  ;;  %v4819_v30 = vsub.f32 %v283_v29, %v450_v15 }
  0x96   : > { %6956 = vst [vmem:[#allocation116_spill] sm:$0xff] %v4768_v28  ;;  %6957 = vst [vmem:[#allocation117_spill] sm:$0xff] %v4770_v42  ;;  %v4793_v42 = vpack.c.bf16 %v1792_v47, %v1788_v26  ;;  %v4797_v0 = vpack.c.bf16 %v448_v53, %v444_v32  ;;  %v4810_v28 = vsub.f32 %v344_v14, %v1794_v1  ;;  %v287_v26 = vld [vmem:[%s4442_s3 + $0x168] sm:$0xff]  ;;  %v1796_v47 = vand.u32 4294901760, %v347_v49 }
  0x97   : > { %6958 = vst [vmem:[#allocation118_spill] sm:$0xff] %v4772_v24  ;;  %6959 = vst [vmem:[#allocation119_spill] sm:$0xff] %v4774_v59  ;;  %v4806_v59 = vpack.c.bf16 %v1794_v1, %v1790_v2  ;;  %v4808_v24 = vsub.f32 %v342_v8, %v1790_v2  ;;  %v1800_v14 = vand.u32 4294901760, %v349_v55  ;;  %v1802_v1 = vand.u32 4294901760, %v348_v60 }
  0x98   : > { %6960 = vst [vmem:[#allocation120_spill] sm:$0xff] %v4781_v54  ;;  %6961 = vst [vmem:[#allocation121_spill] sm:$0xff] %v4783_v37  ;;  %v282_v37 = vld [vmem:[%s4442_s3 + $0x140] sm:$0xff]  ;;  %v284_v54 = vld [vmem:[%s4442_s3 + $0x150] sm:$0xff]  ;;  %3645 = vmatprep.subr.bf16.mxu0 %v4793_v42  ;;  %3263 = vmatpush1.bf16.msra.mxu1 %v4797_v0  ;;  %v4825_v2 = vsub.f32 %v347_v49, %v1796_v47  ;;  %v458_v29 = vand.u32 4294901760, %v287_v26 }
  0x99   : > { %6962 = vst [vmem:[#allocation122_spill] sm:$0xff] %v4785_v21  ;;  %6963 = vst [vmem:[#allocation123_spill] sm:$0xff] %v4789_v57  ;;  %v4799_v21 = vsub.f32 %v278_v11, %v444_v32  ;;  %v4804_v57 = vsub.f32 %v280_v19, %v448_v53  ;;  %v4817_v11 = vpack.c.bf16 %v454_v20, %v450_v15  ;;  %3647 = vmatpush1.bf16.msra.mxu0 %v4806_v59  ;;  %v351_v15 = vld [vmem:[%s4442_s3 + $0x368] sm:$0xff]  ;;  %v350_v49 = vld [vmem:[%s4442_s3 + $0x360] sm:$0xff] }
  0x9a   : > { %6964 = vst [vmem:[#allocation124_spill] sm:$0xff] %v4793_v42  ;;  %6965 = vst [vmem:[#allocation125_spill] sm:$0xff] %v4795_v38  ;;  %v4821_v19 = vsub.f32 %v285_v45, %v454_v20  ;;  %v452_v8 = vand.u32 4294901760, %v282_v37  ;;  %v456_v32 = vand.u32 4294901760, %v284_v54  ;;  %v1798_v53 = vand.u32 4294901760, %v346_v36  ;;  %v353_v20 = vld [vmem:[%s4442_s3 + $0x378] sm:$0xff] }
  0x9b   : > { %6966 = vst [vmem:[#allocation126_spill] sm:$0xff] %v4797_v0  ;;  %6967 = vst [vmem:[#allocation127_spill] sm:$0xff] %v4799_v21  ;;  %3265 = vmatprep.subr.bf16.mxu1 %v4817_v11  ;;  %v462_v45 = vand.u32 4294901760, %v289_v22  ;;  %v4831_v0 = vsub.f32 %v349_v55, %v1800_v14  ;;  %v352_v21 = vld [vmem:[%s4442_s3 + $0x370] sm:$0xff]  ;;  %v293_v38 = vld [vmem:[%s4442_s3 + $0x198] sm:$0xff]  ;;  %v4855_v55 = vsub.f32 %v287_v26, %v458_v29 }
  0x9c   : > { %6968 = vst [vmem:[#allocation128_spill] sm:$0xff] %v4804_v57  ;;  %6969 = vst [vmem:[#allocation129_spill] sm:$0xff] %v4806_v59  ;;  %v4829_v59 = vpack.c.bf16 %v1800_v14, %v1796_v47  ;;  %v4833_v42 = vpack.c.bf16 %v456_v32, %v452_v8  ;;  %v4846_v57 = vsub.f32 %v348_v60, %v1802_v1  ;;  %v291_v47 = vld [vmem:[%s4442_s3 + $0x188] sm:$0xff]  ;;  %v1804_v14 = vand.u32 4294901760, %v351_v15 }
  0x9d   : > { %6970 = vst [vmem:[#allocation130_spill] sm:$0xff] %v4808_v24  ;;  %6971 = vst [vmem:[#allocation131_spill] sm:$0xff] %v4810_v28  ;;  %v4842_v28 = vpack.c.bf16 %v1802_v1, %v1798_v53  ;;  %v4844_v24 = vsub.f32 %v346_v36, %v1798_v53  ;;  %v1808_v60 = vand.u32 4294901760, %v353_v20  ;;  %v1810_v1 = vand.u32 4294901760, %v352_v21 }
  0x9e   : > { %6972 = vst [vmem:[#allocation132_spill] sm:$0xff] %v4817_v11  ;;  %6973 = vst [vmem:[#allocation133_spill] sm:$0xff] %v4819_v30  ;;  %v286_v30 = vld [vmem:[%s4442_s3 + $0x160] sm:$0xff]  ;;  %v288_v11 = vld [vmem:[%s4442_s3 + $0x170] sm:$0xff]  ;;  %3649 = vmatprep.subr.bf16.mxu0 %v4829_v59  ;;  %3267 = vmatpush1.bf16.msra.mxu1 %v4833_v42  ;;  %v4861_v53 = vsub.f32 %v351_v15, %v1804_v14  ;;  %v466_v26 = vand.u32 4294901760, %v291_v47 }
  0x9f   : > { %6974 = vst [vmem:[#allocation134_spill] sm:$0xff] %v4821_v19  ;;  %6975 = vst [vmem:[#allocation135_spill] sm:$0xff] %v4825_v2  ;;  %v4835_v19 = vsub.f32 %v282_v37, %v452_v8  ;;  %v4840_v2 = vsub.f32 %v284_v54, %v456_v32  ;;  %v4853_v37 = vpack.c.bf16 %v462_v45, %v458_v29  ;;  %3651 = vmatpush1.bf16.msra.mxu0 %v4842_v28  ;;  %v355_v29 = vld [vmem:[%s4442_s3 + $0x388] sm:$0xff]  ;;  %v354_v15 = vld [vmem:[%s4442_s3 + $0x380] sm:$0xff] }
  0xa0   : > { %6976 = vst [vmem:[#allocation136_spill] sm:$0xff] %v4829_v59  ;;  %6977 = vst [vmem:[#allocation137_spill] sm:$0xff] %v4831_v0  ;;  %v4857_v54 = vsub.f32 %v289_v22, %v462_v45  ;;  %v460_v36 = vand.u32 4294901760, %v286_v30  ;;  %v464_v8 = vand.u32 4294901760, %v288_v11  ;;  %v1806_v32 = vand.u32 4294901760, %v350_v49  ;;  %v357_v45 = vld [vmem:[%s4442_s3 + $0x398] sm:$0xff] }
  0xa1   : > { %6978 = vst [vmem:[#allocation138_spill] sm:$0xff] %v4833_v42  ;;  %6979 = vst [vmem:[#allocation139_spill] sm:$0xff] %v4835_v19  ;;  %3269 = vmatprep.subr.bf16.mxu1 %v4853_v37  ;;  %v470_v22 = vand.u32 4294901760, %v293_v38  ;;  %v4867_v42 = vsub.f32 %v353_v20, %v1808_v60  ;;  %v356_v19 = vld [vmem:[%s4442_s3 + $0x390] sm:$0xff]  ;;  %v297_v0 = vld [vmem:[%s4442_s3 + $0x1b8] sm:$0xff]  ;;  %v4891_v20 = vsub.f32 %v291_v47, %v466_v26 }
  0xa2   : > { %6980 = vst [vmem:[#allocation140_spill] sm:$0xff] %v4840_v2  ;;  %6981 = vst [vmem:[#allocation141_spill] sm:$0xff] %v4842_v28  ;;  %v4865_v28 = vpack.c.bf16 %v1808_v60, %v1804_v14  ;;  %v4869_v59 = vpack.c.bf16 %v464_v8, %v460_v36  ;;  %v4882_v2 = vsub.f32 %v352_v21, %v1810_v1  ;;  %v295_v14 = vld [vmem:[%s4442_s3 + $0x1a8] sm:$0xff]  ;;  %v1812_v60 = vand.u32 4294901760, %v355_v29 }
  0xa3   : > { %6982 = vst [vmem:[#allocation142_spill] sm:$0xff] %v4844_v24  ;;  %6983 = vst [vmem:[#allocation143_spill] sm:$0xff] %v4846_v57  ;;  %v4878_v57 = vpack.c.bf16 %v1810_v1, %v1806_v32  ;;  %v4880_v24 = vsub.f32 %v350_v49, %v1806_v32  ;;  %v1816_v21 = vand.u32 4294901760, %v357_v45  ;;  %v1818_v1 = vand.u32 4294901760, %v356_v19 }
  0xa4   : > { %6984 = vst [vmem:[#allocation144_spill] sm:$0xff] %v4853_v37  ;;  %6985 = vst [vmem:[#allocation145_spill] sm:$0xff] %v4855_v55  ;;  %v290_v55 = vld [vmem:[%s4442_s3 + $0x180] sm:$0xff]  ;;  %v292_v37 = vld [vmem:[%s4442_s3 + $0x190] sm:$0xff]  ;;  %3653 = vmatprep.subr.bf16.mxu0 %v4865_v28  ;;  %3271 = vmatpush1.bf16.msra.mxu1 %v4869_v59  ;;  %v4897_v32 = vsub.f32 %v355_v29, %v1812_v60  ;;  %v474_v47 = vand.u32 4294901760, %v295_v14 }
  0xa5   : > { %6986 = vst [vmem:[#allocation146_spill] sm:$0xff] %v4857_v54  ;;  %6987 = vst [vmem:[#allocation147_spill] sm:$0xff] %v4861_v53  ;;  %v4871_v54 = vsub.f32 %v286_v30, %v460_v36  ;;  %v4876_v53 = vsub.f32 %v288_v11, %v464_v8  ;;  %v4889_v30 = vpack.c.bf16 %v470_v22, %v466_v26  ;;  %3655 = vmatpush1.bf16.msra.mxu0 %v4878_v57  ;;  %v359_v26 = vld [vmem:[%s4442_s3 + $0x3a8] sm:$0xff]  ;;  %v358_v29 = vld [vmem:[%s4442_s3 + $0x3a0] sm:$0xff] }
  0xa6   : > { %6988 = vst [vmem:[#allocation148_spill] sm:$0xff] %v4865_v28  ;;  %6989 = vst [vmem:[#allocation149_spill] sm:$0xff] %v4867_v42  ;;  %v4893_v11 = vsub.f32 %v293_v38, %v470_v22  ;;  %v468_v49 = vand.u32 4294901760, %v290_v55  ;;  %v472_v36 = vand.u32 4294901760, %v292_v37  ;;  %v1814_v8 = vand.u32 4294901760, %v354_v15  ;;  %v361_v22 = vld [vmem:[%s4442_s3 + $0x3b8] sm:$0xff] }
  0xa7   : > { %6990 = vst [vmem:[#allocation150_spill] sm:$0xff] %v4869_v59  ;;  %6991 = vst [vmem:[#allocation151_spill] sm:$0xff] %v4871_v54  ;;  %3273 = vmatprep.subr.bf16.mxu1 %v4889_v30  ;;  %v478_v38 = vand.u32 4294901760, %v297_v0  ;;  %v4903_v59 = vsub.f32 %v357_v45, %v1816_v21  ;;  %v360_v54 = vld [vmem:[%s4442_s3 + $0x3b0] sm:$0xff]  ;;  %v301_v42 = vld [vmem:[%s4442_s3 + $0x1d8] sm:$0xff]  ;;  %v4927_v45 = vsub.f32 %v295_v14, %v474_v47 }
  0xa8   : > { %6992 = vst [vmem:[#allocation152_spill] sm:$0xff] %v4876_v53  ;;  %6993 = vst [vmem:[#allocation153_spill] sm:$0xff] %v4878_v57  ;;  %v4901_v57 = vpack.c.bf16 %v1816_v21, %v1812_v60  ;;  %v4905_v28 = vpack.c.bf16 %v472_v36, %v468_v49  ;;  %v4918_v53 = vsub.f32 %v356_v19, %v1818_v1  ;;  %v299_v60 = vld [vmem:[%s4442_s3 + $0x1c8] sm:$0xff]  ;;  %v1820_v21 = vand.u32 4294901760, %v359_v26 }
  0xa9   : > { %6994 = vst [vmem:[#allocation154_spill] sm:$0xff] %v4880_v24  ;;  %6995 = vst [vmem:[#allocation155_spill] sm:$0xff] %v4882_v2  ;;  %v4914_v2 = vpack.c.bf16 %v1818_v1, %v1814_v8  ;;  %v4916_v24 = vsub.f32 %v354_v15, %v1814_v8  ;;  %v1824_v19 = vand.u32 4294901760, %v361_v22  ;;  %v1826_v1 = vand.u32 4294901760, %v360_v54 }
  0xaa   : > { %6996 = vst [vmem:[#allocation156_spill] sm:$0xff] %v4889_v30  ;;  %6997 = vst [vmem:[#allocation157_spill] sm:$0xff] %v4891_v20  ;;  %v294_v20 = vld [vmem:[%s4442_s3 + $0x1a0] sm:$0xff]  ;;  %v296_v30 = vld [vmem:[%s4442_s3 + $0x1b0] sm:$0xff]  ;;  %3657 = vmatprep.subr.bf16.mxu0 %v4901_v57  ;;  %3275 = vmatpush1.bf16.msra.mxu1 %v4905_v28  ;;  %v4933_v8 = vsub.f32 %v359_v26, %v1820_v21  ;;  %v482_v14 = vand.u32 4294901760, %v299_v60 }
  0xab   : > { %6998 = vst [vmem:[#allocation158_spill] sm:$0xff] %v4893_v11  ;;  %6999 = vst [vmem:[#allocation159_spill] sm:$0xff] %v4897_v32  ;;  %v4907_v11 = vsub.f32 %v290_v55, %v468_v49  ;;  %v4912_v32 = vsub.f32 %v292_v37, %v472_v36  ;;  %v4925_v55 = vpack.c.bf16 %v478_v38, %v474_v47  ;;  %3659 = vmatpush1.bf16.msra.mxu0 %v4914_v2  ;;  %v363_v47 = vld [vmem:[%s4442_s3 + $0x3c8] sm:$0xff]  ;;  %v362_v26 = vld [vmem:[%s4442_s3 + $0x3c0] sm:$0xff] }
  0xac   : > { %7000 = vst [vmem:[#allocation160_spill] sm:$0xff] %v4901_v57  ;;  %7001 = vst [vmem:[#allocation161_spill] sm:$0xff] %v4903_v59  ;;  %v4929_v37 = vsub.f32 %v297_v0, %v478_v38  ;;  %v476_v15 = vand.u32 4294901760, %v294_v20  ;;  %v480_v49 = vand.u32 4294901760, %v296_v30  ;;  %v1822_v36 = vand.u32 4294901760, %v358_v29  ;;  %v365_v38 = vld [vmem:[%s4442_s3 + $0x3d8] sm:$0xff] }
  0xad   : > { %7002 = vst [vmem:[#allocation162_spill] sm:$0xff] %v4905_v28  ;;  %7003 = vst [vmem:[#allocation163_spill] sm:$0xff] %v4907_v11  ;;  %3277 = vmatprep.subr.bf16.mxu1 %v4925_v55  ;;  %v486_v0 = vand.u32 4294901760, %v301_v42  ;;  %v4939_v28 = vsub.f32 %v361_v22, %v1824_v19  ;;  %v364_v11 = vld [vmem:[%s4442_s3 + $0x3d0] sm:$0xff]  ;;  %v305_v59 = vld [vmem:[%s4442_s3 + $0x1f8] sm:$0xff]  ;;  %v4963_v22 = vsub.f32 %v299_v60, %v482_v14 }
  0xae   : > { %7004 = vst [vmem:[#allocation164_spill] sm:$0xff] %v4912_v32  ;;  %7005 = vst [vmem:[#allocation165_spill] sm:$0xff] %v4914_v2  ;;  %v4937_v2 = vpack.c.bf16 %v1824_v19, %v1820_v21  ;;  %v4941_v57 = vpack.c.bf16 %v480_v49, %v476_v15  ;;  %v4954_v32 = vsub.f32 %v360_v54, %v1826_v1  ;;  %v303_v21 = vld [vmem:[%s4442_s3 + $0x1e8] sm:$0xff]  ;;  %v1828_v19 = vand.u32 4294901760, %v363_v47 }
  0xaf   : > { %7006 = vst [vmem:[#allocation166_spill] sm:$0xff] %v4916_v24  ;;  %7007 = vst [vmem:[#allocation167_spill] sm:$0xff] %v4918_v53  ;;  %v4950_v53 = vpack.c.bf16 %v1826_v1, %v1822_v36  ;;  %v4952_v24 = vsub.f32 %v358_v29, %v1822_v36  ;;  %v1832_v54 = vand.u32 4294901760, %v365_v38  ;;  %v1834_v1 = vand.u32 4294901760, %v364_v11 }
  0xb0   : > { %7008 = vst [vmem:[#allocation168_spill] sm:$0xff] %v4925_v55  ;;  %7009 = vst [vmem:[#allocation169_spill] sm:$0xff] %v4927_v45  ;;  %v298_v45 = vld [vmem:[%s4442_s3 + $0x1c0] sm:$0xff]  ;;  %v300_v55 = vld [vmem:[%s4442_s3 + $0x1d0] sm:$0xff]  ;;  %3661 = vmatprep.subr.bf16.mxu0 %v4937_v2  ;;  %3279 = vmatpush1.bf16.msra.mxu1 %v4941_v57  ;;  %v4969_v36 = vsub.f32 %v363_v47, %v1828_v19  ;;  %v490_v60 = vand.u32 4294901760, %v303_v21 }
  0xb1   : > { %7010 = vst [vmem:[#allocation170_spill] sm:$0xff] %v4929_v37  ;;  %7011 = vst [vmem:[#allocation171_spill] sm:$0xff] %v4933_v8  ;;  %v4943_v37 = vsub.f32 %v294_v20, %v476_v15  ;;  %v4948_v8 = vsub.f32 %v296_v30, %v480_v49  ;;  %v4961_v20 = vpack.c.bf16 %v486_v0, %v482_v14  ;;  %3663 = vmatpush1.bf16.msra.mxu0 %v4950_v53 }
  0xb2   : > { %7012 = vst [vmem:[#allocation172_spill] sm:$0xff] %v4937_v2  ;;  %7013 = vst [vmem:[#allocation173_spill] sm:$0xff] %v4939_v28  ;;  %v4965_v30 = vsub.f32 %v301_v42, %v486_v0  ;;  %v484_v29 = vand.u32 4294901760, %v298_v45  ;;  %v488_v15 = vand.u32 4294901760, %v300_v55  ;;  %v1830_v49 = vand.u32 4294901760, %v362_v26  ;;  %v367_v42 = vld [vmem:[%s4442_s3 + $0x3e8] sm:$0xff] }
  0xb3   : > { %7014 = vst [vmem:[#allocation174_spill] sm:$0xff] %v4941_v57  ;;  %7015 = vst [vmem:[#allocation175_spill] sm:$0xff] %v4943_v37  ;;  %3281 = vmatprep.subr.bf16.mxu1 %v4961_v20  ;;  %v494_v14 = vand.u32 4294901760, %v305_v59  ;;  %v369_v0 = vld [vmem:[%s4442_s3 + $0x3f8] sm:$0xff]  ;;  %v4973_v57 = vpack.c.bf16 %v1832_v54, %v1828_v19  ;;  %v368_v37 = vld [vmem:[%s4442_s3 + $0x3f0] sm:$0xff] }
  0xb4   : > { %7016 = vst [vmem:[#allocation176_spill] sm:$0xff] %v4948_v8  ;;  %7017 = vst [vmem:[#allocation177_spill] sm:$0xff] %v4950_v53  ;;  %v4975_v53 = vsub.f32 %v365_v38, %v1832_v54  ;;  %v4977_v2 = vpack.c.bf16 %v488_v15, %v484_v29  ;;  %v4986_v47 = vpack.c.bf16 %v1834_v1, %v1830_v49  ;;  %v235_v19 = vld [vmem:[#allocation3 + $0x8] sm:$0xff] }
  0xb5   : > { %7018 = vst [vmem:[#allocation178_spill] sm:$0xff] %v4952_v24  ;;  %7019 = vst [vmem:[#allocation179_spill] sm:$0xff] %v4954_v32  ;;  %v304_v32 = vld [vmem:[%s4442_s3 + $0x1f0] sm:$0xff]  ;;  %v366_v24 = vld [vmem:[%s4442_s3 + $0x3e0] sm:$0xff]  ;;  %v4990_v8 = vsub.f32 %v364_v11, %v1834_v1  ;;  %3665 = vmatprep.subr.bf16.mxu0 %v4973_v57  ;;  %v4995_v38 = vpack.c.bf16 %v494_v14, %v490_v60  ;;  %v4999_v54 = vsub.f32 %v305_v59, %v494_v14 }
  0xb6   : > { %7020 = vst [vmem:[#allocation180_spill] sm:$0xff] %v4961_v20  ;;  %7021 = vst [vmem:[#allocation181_spill] sm:$0xff] %v4963_v22  ;;  %v302_v22 = vld [vmem:[%s4442_s3 + $0x1e0] sm:$0xff]  ;;  %v4984_v20 = vsub.f32 %v300_v55, %v488_v15  ;;  %3283 = vmatpush1.bf16.msra.mxu1 %v4977_v2  ;;  %v1836_v55 = vand.u32 4294901760, %v367_v42  ;;  %3667 = vmatpush1.bf16.msra.mxu0 %v4986_v47  ;;  %v496_v15 = vand.u32 4294901760, %v304_v32  ;;  %v1838_v11 = vand.u32 4294901760, %v366_v24 }
  0xb7   : > { %7022 = vst [vmem:[#allocation182_spill] sm:$0xff] %v4965_v30  ;;  %7023 = vst [vmem:[#allocation183_spill] sm:$0xff] %v4969_v36  ;;  %v4979_v30 = vsub.f32 %v298_v45, %v484_v29  ;;  %v4988_v36 = vsub.f32 %v362_v26, %v1830_v49  ;;  %v4997_v45 = vsub.f32 %v303_v21, %v490_v60  ;;  %v1840_v29 = vand.u32 4294901760, %v369_v0  ;;  %v237_v21 = vld [vmem:[#allocation3 + $0x18] sm:$0xff] }
  0xb8   : > { %7024 = vst [vmem:[#allocation184_spill] sm:$0xff] %v4973_v57  ;;  %7025 = vst [vmem:[#allocation185_spill] sm:$0xff] %v4975_v53  ;;  %v492_v26 = vand.u32 4294901760, %v302_v22  ;;  %3285 = vmatprep.subr.bf16.mxu1 %v4995_v38  ;;  %v5003_v49 = vsub.f32 %v367_v42, %v1836_v55  ;;  %v1842_v1 = vand.u32 4294901760, %v368_v37  ;;  %v5005_v57 = vand.u32 4294901760, %v235_v19 }
  0xb9   : > { %7026 = vst [vmem:[#allocation186_spill] sm:$0xff] %v4977_v2  ;;  %7027 = vst [vmem:[#allocation187_spill] sm:$0xff] %v4979_v30  ;;  %v6518_v2 = vand.u32 4294901760, %v4459_v16  ;;  %v5008_v60 = vpack.c.bf16 %v1840_v29, %v1836_v55  ;;  %v5010_v59 = vsub.f32 %v369_v0, %v1840_v29  ;;  %v5020_v42 = vsub.f32 %v366_v24, %v1838_v11 }
  0xba   : > { %7028 = vst [vmem:[#allocation188_spill] sm:$0xff] %v4984_v20  ;;  %7029 = vst [vmem:[#allocation189_spill] sm:$0xff] %v4986_v47  ;;  %v5012_v14 = vpack.c.bf16 %v496_v15, %v492_v26  ;;  %v5014_v47 = vsub.f32 %v302_v22, %v492_v26  ;;  %v5027_v0 = vsub.f32 %v235_v19, %v5005_v57  ;;  %v5033_v55 = vand.u32 4294901760, %v237_v21 }
  0xbb   : > { %7030 = vst [vmem:[#allocation190_spill] sm:$0xff] %v4988_v36  ;;  %7031 = vst [vmem:[#allocation191_spill] sm:$0xff] %v4990_v8  ;;  %3669 = vmatprep.subr.bf16.mxu0 %v5008_v60  ;;  %v534_v22 = vsub.f32 %v4459_v16, %v6518_v2  ;;  %v6526_v24 = vand.u32 4294901760, %v4463_v18 }
  0xbc   : > { %7032 = vst [vmem:[#allocation192_spill] sm:$0xff] %v4995_v38  ;;  %7033 = vst [vmem:[#allocation193_spill] sm:$0xff] %v4997_v45  ;;  %v5016_v45 = vsub.f32 %v304_v32, %v496_v15  ;;  %v5018_v38 = vpack.c.bf16 %v1842_v1, %v1838_v11  ;;  %3287 = vmatpush1.bf16.msra.mxu1 %v5012_v14  ;;  %v6521_v32 = vand.u32 4294901760, %v4461_v17 }
  0xbd   : > { %7034 = vst [vmem:[#allocation194_spill] sm:$0xff] %v4999_v54  ;;  %7035 = vst [vmem:[#allocation195_spill] sm:$0xff] %v5003_v49  ;;  %v234_v54 = vld [vmem:[#allocation3] sm:$0xff]  ;;  %v5022_v49 = vsub.f32 %v368_v37, %v1842_v1  ;;  %v6533_v37 = vand.u32 4294901760, %v4470_v23  ;;  %v535_v15 = vand.u32 4294901760, %v534_v22  ;;  %v5046_v1 = vsub.f32 %v237_v21, %v5033_v55 }
  0xbe   : > { %7036 = vst [vmem:[#allocation196_spill] sm:$0xff] %v5005_v57  ;;  %7037 = vst [vmem:[#allocation197_spill] sm:$0xff] %v5008_v60  ;;  %3671 = vmatpush1.bf16.msra.mxu0 %v5018_v38  ;;  %v5038_v29 = vand.u32 4294901760, %v234_v54  ;;  %v546_v11 = vsub.f32 %v4461_v17, %v6521_v32  ;;  %v1880_v2 = vsub.f32 %v4463_v18, %v6526_v24  ;;  %v7050_v22 = vand.u32 4294901760, %v4474_v25 }
  0xbf   : > { %7038 = vst [vmem:[#allocation198_spill] sm:$0xff] %v5010_v59  ;;  %7039 = vst [vmem:[#allocation199_spill] sm:$0xff] %v5012_v14  ;;  %v7051_v32 = vand.u32 4294901760, %v5027_v0  ;;  %v6540_v60 = vand.u32 4294901760, %v5046_v1  ;;  %v6547_v24 = vand.u32 4294901760, %v4478_v27 }
  0xc0   : > { %7040 = vst [vmem:[#allocation200_spill] sm:$0xff] %v5014_v47  ;;  %7041 = vst [vmem:[#allocation201_spill] sm:$0xff] %v5016_v45  ;;  %v5055_v26 = vsub.f32 %v234_v54, %v5038_v29  ;;  %v540_v19 = vsub.f32 %v4474_v25, %v7050_v22  ;;  %v547_v14 = vand.u32 4294901760, %v546_v11  ;;  %v1881_v57 = vand.u32 4294901760, %v1880_v2 }
  0xc1   : > { %7042 = vst [vmem:[#allocation202_spill] sm:$0xff] %v5018_v38  ;;  %7043 = vst [vmem:[#allocation203_spill] sm:$0xff] %v5020_v42  ;;  %v1892_v38 = vsub.f32 %v4470_v23, %v6533_v37  ;;  %v501_v21 = vsub.f32 %v5027_v0, %v7051_v32  ;;  %v1847_v22 = vsub.f32 %v5046_v1, %v6540_v60 }
  0xc2   : > { %7044 = vst [vmem:[#allocation204_spill] sm:$0xff] %v5022_v49  ;;  %7045 = vst [vmem:[#allocation205_spill] sm:$0xff] %v5027_v0  ;;  %v6541_v37 = vand.u32 4294901760, %v5055_v26  ;;  %v541_v54 = vand.u32 4294901760, %v540_v19  ;;  %v3288_v23 = vpack.c.bf16 %v547_v14, %v535_v15  ;;  %v552_v32 = vsub.f32 %v4478_v27, %v6547_v24 }
  0xc3   : > { %7046 = vst [vmem:[#allocation206_spill] sm:$0xff] %v5033_v55  ;;  %7047 = vst [vmem:[#allocation207_spill] sm:$0xff] %v5038_v29  ;;  %v236_v55 = vld [vmem:[#allocation3 + $0x10] sm:$0xff]  ;;  %v1893_v18 = vand.u32 4294901760, %v1892_v38  ;;  %v502_v29 = vand.u32 4294901760, %v501_v21  ;;  %v6543_v38 = vand.u32 4294901760, %v4487_v39 }
  0xc4   : > { %7048 = vst [vmem:[#allocation208_spill] sm:$0xff] %v5046_v1  ;;  %7049 = vst [vmem:[#allocation209_spill] sm:$0xff] %v5055_v26  ;;  %v507_v0 = vsub.f32 %v5055_v26, %v6541_v37  ;;  %v5075_v2 = vand.u32 4294901760, %v236_v55  ;;  %3289 = vmatprep.subr.bf16.mxu1 %v3288_v23  ;;  %v1848_v14 = vand.u32 4294901760, %v1847_v22  ;;  %v553_v19 = vand.u32 4294901760, %v552_v32 }
  0xc5   : > { %v3672_v11 = vpack.c.bf16 %v1893_v18, %v1881_v57  ;;  %503 = vmatprep.mubr.f32.mxu1 %v502_v29  ;;  %v6542_v15 = vand.u32 4294901760, %v4489_v40  ;;  %v6545_v21 = vand.u32 4294901760, %v4491_v41  ;;  %v1886_v57 = vsub.f32 %v4487_v39, %v6543_v38 }
  0xc6   : > { %7052 = vst [vmem:[#allocation210_spill] sm:$0xff] %v5075_v2  ;;  %v508_v60 = vand.u32 4294901760, %v507_v0  ;;  %v5081_v18 = vsub.f32 %v236_v55, %v5075_v2  ;;  %v6544_v37 = vand.u32 4294901760, %v4498_v46  ;;  %1849 = vmatprep.mubr.f32.mxu0 %v1848_v14  ;;  %v3290_v29 = vpack.c.bf16 %v553_v19, %v541_v54 }
  0xc7   : > { %3673 = vmatprep.subr.bf16.mxu0 %v3672_v11  ;;  %v1898_v23 = vsub.f32 %v4489_v40, %v6542_v15  ;;  %v558_v22 = vsub.f32 %v4491_v41, %v6545_v21  ;;  %v6546_v0 = vand.u32 4294901760, %v4502_v48  ;;  %v1887_v32 = vand.u32 4294901760, %v1886_v57 }
  0xc8   : > { %7053 = vst [vmem:[#allocation211_spill] sm:$0xff] %v5081_v18  ;;  %509 = vmatmul.mubr.f32.vlgmr.msra.gmra.mrb[0].mxu1 %v508_v60  ;;  %v6552_v55 = vand.u32 4294901760, %v5081_v18  ;;  %v570_v11 = vsub.f32 %v4498_v46, %v6544_v37  ;;  %v6553_v54 = vand.u32 4294901760, %v4506_v50  ;;  %v6554_v38 = vand.u32 4294901760, %v4508_v52 }
  0xc9   : > { %3291 = vmatpush1.bf16.msra.mxu1 %v3290_v29  ;;  %v1899_v14 = vand.u32 4294901760, %v1898_v23  ;;  %v559_v19 = vand.u32 4294901760, %v558_v22  ;;  %v1904_v15 = vsub.f32 %v4502_v48, %v6546_v0  ;;  %v6561_v21 = vand.u32 4294901760, %v4516_v61 }
  0xca   : > { %v1853_v60 = vsub.f32 %v5081_v18, %v6552_v55  ;;  %v571_v57 = vand.u32 4294901760, %v570_v11  ;;  %v1916_v37 = vsub.f32 %v4506_v50, %v6553_v54  ;;  %v564_v22 = vsub.f32 %v4508_v52, %v6554_v38 }
  0xcb   : > { %v3674_v29 = vpack.c.bf16 %v1899_v14, %v1887_v32  ;;  %v1905_v23 = vand.u32 4294901760, %v1904_v15  ;;  %v6555_v0 = vand.u32 4294901760, %v4518_v62  ;;  %v576_v11 = vsub.f32 %v4516_v61, %v6561_v21 }
  0xcc   : > { %v1854_v24 = vand.u32 4294901760, %v1853_v60  ;;  %v3292_v26 = vpack.c.bf16 %v571_v57, %v559_v19  ;;  %v1917_v1 = vand.u32 4294901760, %v1916_v37  ;;  %v565_v55 = vand.u32 4294901760, %v564_v22 }
  0xcd   : > { %v1910_v54 = vsub.f32 %v4518_v62, %v6555_v0  ;;  %v6556_v15 = vand.u32 4294901760, %v4525_v4  ;;  %v6559_v32 = vand.u32 4294901760, %v4529_v6  ;;  %v577_v38 = vand.u32 4294901760, %v576_v11 }
  0xce   : > { %1855 = vmatmul.mubr.f32.vlgmr.msra.gmra.mrb[0].mxu0 %v1854_v24  ;;  %3293 = vmatprep.subr.bf16.mxu1 %v3292_v26  ;;  %v3676_v14 = vpack.c.bf16 %v1917_v1, %v1905_v23  ;;  %v6557_v19 = vand.u32 4294901760, %v4535_v10  ;;  %v6558_v37 = vand.u32 4294901760, %v4539_v12  ;;  %v6560_v0 = vand.u32 4294901760, %v4541_v13 }
  0xcf   : > { %3675 = vmatpush1.bf16.msra.mxu0 %v3674_v29  ;;  %v1911_v60 = vand.u32 4294901760, %v1910_v54  ;;  %v1922_v57 = vsub.f32 %v4525_v4, %v6556_v15  ;;  %v582_v22 = vsub.f32 %v4529_v6, %v6559_v32  ;;  %v3294_v24 = vpack.c.bf16 %v577_v38, %v565_v55 }
  0xd0   : > { %3677 = vmatprep.subr.bf16.mxu0 %v3676_v14  ;;  %v594_v26 = vsub.f32 %v4535_v10, %v6557_v19  ;;  %v1928_v1 = vsub.f32 %v4539_v12, %v6558_v37  ;;  %v6562_v54 = vand.u32 4294901760, %v4549_v33  ;;  %v1940_v11 = vsub.f32 %v4541_v13, %v6560_v0 }
  0xd1   : > { %v1923_v29 = vand.u32 4294901760, %v1922_v57  ;;  %v583_v23 = vand.u32 4294901760, %v582_v22  ;;  %v6569_v15 = vand.u32 4294901760, %v4551_v34  ;;  %3295 = vmatpush1.bf16.msra.mxu1 %v3294_v24  ;;  %v6564_v19 = vand.u32 4294901760, %v4558_v43 }
  0xd2   : > { %v595_v38 = vand.u32 4294901760, %v594_v26  ;;  %v1929_v55 = vand.u32 4294901760, %v1928_v1  ;;  %v588_v14 = vsub.f32 %v4549_v33, %v6562_v54  ;;  %v1941_v32 = vand.u32 4294901760, %v1940_v11 }
  0xd3   : > { %v3678_v37 = vpack.c.bf16 %v1923_v29, %v1911_v60  ;;  %v600_v57 = vsub.f32 %v4551_v34, %v6569_v15  ;;  %v6563_v22 = vand.u32 4294901760, %v4560_v44  ;;  %v1934_v24 = vsub.f32 %v4558_v43, %v6564_v19 }
  0xd4   : > { %v3296_v0 = vpack.c.bf16 %v595_v38, %v583_v23  ;;  %v589_v21 = vand.u32 4294901760, %v588_v14  ;;  %v6567_v26 = vand.u32 4294901760, %v4564_v51  ;;  %v3680_v1 = vpack.c.bf16 %v1941_v32, %v1929_v55 }
  0xd5   : > { %3679 = vmatpush1.bf16.msra.mxu0 %v3678_v37  ;;  %v601_v54 = vand.u32 4294901760, %v600_v57  ;;  %v1946_v60 = vsub.f32 %v4560_v44, %v6563_v22  ;;  %v6565_v29 = vand.u32 4294901760, %v4571_v56  ;;  %v1935_v11 = vand.u32 4294901760, %v1934_v24 }
  0xd6   : > { %3297 = vmatprep.subr.bf16.mxu1 %v3296_v0  ;;  %v606_v23 = vsub.f32 %v4564_v51, %v6567_v26  ;;  %v6566_v38 = vand.u32 4294901760, %v4575_v58  ;;  %v6568_v14 = vand.u32 4294901760, %v4578_v63  ;;  %3681 = vmatprep.subr.bf16.mxu0 %v3680_v1  ;;  %v6572_v57 = vand.u32 4294901760, %v4582_v7 }
  0xd7   : > { %v3298_v37 = vpack.c.bf16 %v601_v54, %v589_v21  ;;  %v1947_v32 = vand.u32 4294901760, %v1946_v60  ;;  %v618_v55 = vsub.f32 %v4571_v56, %v6565_v29  ;;  %v6570_v19 = vand.u32 4294901760, %v4589_v9 }
  0xd8   : > { %v607_v22 = vand.u32 4294901760, %v606_v23  ;;  %v1952_v0 = vsub.f32 %v4575_v58, %v6566_v38  ;;  %v1964_v24 = vsub.f32 %v4578_v63, %v6568_v14  ;;  %v612_v1 = vsub.f32 %v4582_v7, %v6572_v57 }
  0xd9   : > { %3299 = vmatpush1.bf16.msra.mxu1 %v3298_v37  ;;  %v3682_v21 = vpack.c.bf16 %v1947_v32, %v1935_v11  ;;  %v619_v54 = vand.u32 4294901760, %v618_v55  ;;  %v6571_v60 = vand.u32 4294901760, %v4593_v35  ;;  %v624_v38 = vsub.f32 %v4589_v9, %v6570_v19 }
  0xda   : > { %v1953_v23 = vand.u32 4294901760, %v1952_v0  ;;  %v1965_v29 = vand.u32 4294901760, %v1964_v24  ;;  %v6573_v26 = vand.u32 4294901760, %v4598_v31  ;;  %v613_v15 = vand.u32 4294901760, %v612_v1  ;;  %v7055_v1 = vld [vmem:[#allocation65_spill] sm:$0xff] }
  0xdb   : > { %3683 = vmatpush1.bf16.msra.mxu0 %v3682_v21  ;;  %v3300_v14 = vpack.c.bf16 %v619_v54, %v607_v22  ;;  %v1958_v11 = vsub.f32 %v4593_v35, %v6571_v60  ;;  %v6576_v37 = vand.u32 4294901760, %v4602_v3  ;;  %v625_v55 = vand.u32 4294901760, %v624_v38  ;;  %v7054_v21 = vld [vmem:[#allocation63_spill] sm:$0xff] }
  0xdc   : > { %v3684_v32 = vpack.c.bf16 %v1965_v29, %v1953_v23  ;;  %v1970_v0 = vsub.f32 %v4598_v31, %v6573_v26  ;;  %v6579_v24 = vand.u32 4294901760, %v4604_v5  ;;  %v6582_v54 = vand.u32 4294901760, %v7054_v21  ;;  %v7056_v23 = vld [vmem:[#allocation67_spill] sm:$0xff] }
  0xdd   : > { %3301 = vmatprep.subr.bf16.mxu1 %v3300_v14  ;;  %v1959_v19 = vand.u32 4294901760, %v1958_v11  ;;  %v630_v22 = vsub.f32 %v4602_v3, %v6576_v37  ;;  %v6586_v60 = vand.u32 4294901760, %v7055_v1  ;;  %v3302_v57 = vpack.c.bf16 %v625_v55, %v613_v15  ;;  %v7057_v37 = vld [vmem:[#allocation68_spill] sm:$0xff] }
  0xde   : > { %3685 = vmatprep.subr.bf16.mxu0 %v3684_v32  ;;  %v1971_v29 = vand.u32 4294901760, %v1970_v0  ;;  %v642_v38 = vsub.f32 %v4604_v5, %v6579_v24  ;;  %v6588_v26 = vand.u32 4294901760, %v7056_v23  ;;  %v1976_v14 = vsub.f32 %v7054_v21, %v6582_v54  ;;  %v7058_v0 = vld [vmem:[#allocation70_spill] sm:$0xff]  ;;  %v7059_v21 = vld [vmem:[#allocation71_spill] sm:$0xff] }
  0xdf   : > { %v631_v18 = vand.u32 4294901760, %v630_v22  ;;  %v1988_v11 = vsub.f32 %v7055_v1, %v6586_v60  ;;  %v6590_v31 = vand.u32 4294901760, %v7057_v37  ;;  %3303 = vmatpush1.bf16.msra.mxu1 %v3302_v57  ;;  %v6591_v24 = vand.u32 4294901760, %v7058_v0  ;;  %v7060_v57 = vld [vmem:[#allocation73_spill] sm:$0xff] }
  0xe0   : > { %v3686_v15 = vpack.c.bf16 %v1971_v29, %v1959_v19  ;;  %v643_v32 = vand.u32 4294901760, %v642_v38  ;;  %v636_v55 = vsub.f32 %v7056_v23, %v6588_v26  ;;  %v1977_v22 = vand.u32 4294901760, %v1976_v14 }
  0xe1   : > { %v1989_v35 = vand.u32 4294901760, %v1988_v11  ;;  %v648_v54 = vsub.f32 %v7057_v37, %v6590_v31  ;;  %v6593_v5 = vand.u32 4294901760, %v7059_v21  ;;  %v1982_v19 = vsub.f32 %v7058_v0, %v6591_v24  ;;  %v7061_v11 = vld [vmem:[#allocation74_spill] sm:$0xff] }
  0xe2   : > { %3687 = vmatpush1.bf16.msra.mxu0 %v3686_v15  ;;  %v3304_v60 = vpack.c.bf16 %v643_v32, %v631_v18  ;;  %v637_v1 = vand.u32 4294901760, %v636_v55  ;;  %v6595_v29 = vand.u32 4294901760, %v7060_v57  ;;  %v6597_v23 = vand.u32 4294901760, %v7061_v11  ;;  %v7062_v15 = vld [vmem:[#allocation75_spill] sm:$0xff]  ;;  %v7063_v55 = vld [vmem:[#allocation77_spill] sm:$0xff] }
  0xe3   : > { %v3688_v38 = vpack.c.bf16 %v1989_v35, %v1977_v22  ;;  %v649_v26 = vand.u32 4294901760, %v648_v54  ;;  %v1994_v14 = vsub.f32 %v7059_v21, %v6593_v5  ;;  %v1983_v31 = vand.u32 4294901760, %v1982_v19  ;;  %v7064_v22 = vld [vmem:[#allocation79_spill] sm:$0xff] }
  0xe4   : > { %3305 = vmatprep.subr.bf16.mxu1 %v3304_v60  ;;  %v654_v18 = vsub.f32 %v7060_v57, %v6595_v29  ;;  %v6599_v32 = vand.u32 4294901760, %v7062_v15  ;;  %v6602_v24 = vand.u32 4294901760, %v7063_v55  ;;  %v666_v54 = vsub.f32 %v7061_v11, %v6597_v23  ;;  %v7065_v29 = vld [vmem:[#allocation80_spill] sm:$0xff] }
  0xe5   : > { %3689 = vmatprep.subr.bf16.mxu0 %v3688_v38  ;;  %v3306_v0 = vpack.c.bf16 %v649_v26, %v637_v1  ;;  %v1995_v35 = vand.u32 4294901760, %v1994_v14  ;;  %v6604_v5 = vand.u32 4294901760, %v7064_v22  ;;  %v6606_v57 = vand.u32 4294901760, %v7065_v29  ;;  %v7066_v14 = vld [vmem:[#allocation82_spill] sm:$0xff] }
  0xe6   : > { %v655_v21 = vand.u32 4294901760, %v654_v18  ;;  %v2000_v60 = vsub.f32 %v7062_v15, %v6599_v32  ;;  %v2012_v19 = vsub.f32 %v7063_v55, %v6602_v24  ;;  %v667_v1 = vand.u32 4294901760, %v666_v54  ;;  %v7067_v15 = vld [vmem:[#allocation83_spill] sm:$0xff] }
  0xe7   : > { %3307 = vmatpush1.bf16.msra.mxu1 %v3306_v0  ;;  %v3690_v26 = vpack.c.bf16 %v1995_v35, %v1983_v31  ;;  %v660_v38 = vsub.f32 %v7064_v22, %v6604_v5  ;;  %v6607_v23 = vand.u32 4294901760, %v7066_v14  ;;  %v672_v32 = vsub.f32 %v7065_v29, %v6606_v57  ;;  %v7068_v0 = vld [vmem:[#allocation85_spill] sm:$0xff] }
  0xe8   : > { %v2001_v18 = vand.u32 4294901760, %v2000_v60  ;;  %v2013_v11 = vand.u32 4294901760, %v2012_v19  ;;  %v6609_v37 = vand.u32 4294901760, %v7067_v15  ;;  %v3308_v24 = vpack.c.bf16 %v667_v1, %v655_v21  ;;  %v7069_v19 = vld [vmem:[#allocation86_spill] sm:$0xff] }
  0xe9   : > { %3691 = vmatpush1.bf16.msra.mxu0 %v3690_v26  ;;  %v661_v55 = vand.u32 4294901760, %v660_v38  ;;  %v2006_v31 = vsub.f32 %v7066_v14, %v6607_v23  ;;  %v6611_v35 = vand.u32 4294901760, %v7068_v0  ;;  %v673_v5 = vand.u32 4294901760, %v672_v32  ;;  %v7070_v26 = vld [vmem:[#allocation87_spill] sm:$0xff]  ;;  %v7071_v38 = vld [vmem:[#allocation89_spill] sm:$0xff] }
  0xea   : > { %v3692_v54 = vpack.c.bf16 %v2013_v11, %v2001_v18  ;;  %v2018_v60 = vsub.f32 %v7067_v15, %v6609_v37  ;;  %v6613_v22 = vand.u32 4294901760, %v7069_v19  ;;  %3309 = vmatprep.subr.bf16.mxu1 %v3308_v24  ;;  %v6615_v1 = vand.u32 4294901760, %v7070_v26  ;;  %v7072_v18 = vld [vmem:[#allocation91_spill] sm:$0xff] }
  0xeb   : > { %v2007_v57 = vand.u32 4294901760, %v2006_v31  ;;  %v678_v21 = vsub.f32 %v7068_v0, %v6611_v35  ;;  %v6618_v23 = vand.u32 4294901760, %v7071_v38  ;;  %v3310_v14 = vpack.c.bf16 %v673_v5, %v661_v55  ;;  %v7073_v35 = vld [vmem:[#allocation92_spill] sm:$0xff] }
  0xec   : > { %3693 = vmatprep.subr.bf16.mxu0 %v3692_v54  ;;  %v2019_v11 = vand.u32 4294901760, %v2018_v60  ;;  %v690_v32 = vsub.f32 %v7069_v19, %v6613_v22  ;;  %v6620_v37 = vand.u32 4294901760, %v7072_v18  ;;  %v2024_v24 = vsub.f32 %v7070_v26, %v6615_v1  ;;  %v7074_v60 = vld [vmem:[#allocation94_spill] sm:$0xff]  ;;  %v7075_v26 = vld [vmem:[#allocation95_spill] sm:$0xff] }
  0xed   : > { %v679_v15 = vand.u32 4294901760, %v678_v21  ;;  %v2036_v31 = vsub.f32 %v7071_v38, %v6618_v23  ;;  %v6622_v0 = vand.u32 4294901760, %v7073_v35  ;;  %3311 = vmatpush1.bf16.msra.mxu1 %v3310_v14  ;;  %v6623_v22 = vand.u32 4294901760, %v7074_v60  ;;  %v7076_v14 = vld [vmem:[#allocation97_spill] sm:$0xff] }
  0xee   : > { %v3694_v5 = vpack.c.bf16 %v2019_v11, %v2007_v57  ;;  %v691_v55 = vand.u32 4294901760, %v690_v32  ;;  %v684_v54 = vsub.f32 %v7072_v18, %v6620_v37  ;;  %v2025_v21 = vand.u32 4294901760, %v2024_v24 }
  0xef   : > { %v2037_v19 = vand.u32 4294901760, %v2036_v31  ;;  %v696_v1 = vsub.f32 %v7073_v35, %v6622_v0  ;;  %v6625_v29 = vand.u32 4294901760, %v7075_v26  ;;  %v2030_v57 = vsub.f32 %v7074_v60, %v6623_v22  ;;  %v7077_v31 = vld [vmem:[#allocation98_spill] sm:$0xff] }
  0xf0   : > { %3695 = vmatpush1.bf16.msra.mxu0 %v3694_v5  ;;  %v3312_v23 = vpack.c.bf16 %v691_v55, %v679_v15  ;;  %v685_v38 = vand.u32 4294901760, %v684_v54  ;;  %v6627_v11 = vand.u32 4294901760, %v7076_v14  ;;  %v6629_v18 = vand.u32 4294901760, %v7077_v31  ;;  %v7078_v5 = vld [vmem:[#allocation99_spill] sm:$0xff]  ;;  %v7079_v54 = vld [vmem:[#allocation101_spill] sm:$0xff] }
  0xf1   : > { %v3696_v32 = vpack.c.bf16 %v2037_v19, %v2025_v21  ;;  %v697_v37 = vand.u32 4294901760, %v696_v1  ;;  %v2042_v24 = vsub.f32 %v7075_v26, %v6625_v29  ;;  %v2031_v0 = vand.u32 4294901760, %v2030_v57  ;;  %v7080_v21 = vld [vmem:[#allocation103_spill] sm:$0xff] }
  0xf2   : > { %3313 = vmatprep.subr.bf16.mxu1 %v3312_v23  ;;  %v702_v15 = vsub.f32 %v7076_v14, %v6627_v11  ;;  %v6631_v55 = vand.u32 4294901760, %v7078_v5  ;;  %v6634_v22 = vand.u32 4294901760, %v7079_v54  ;;  %v714_v1 = vsub.f32 %v7077_v31, %v6629_v18  ;;  %v7081_v11 = vld [vmem:[#allocation104_spill] sm:$0xff] }
  0xf3   : > { %3697 = vmatprep.subr.bf16.mxu0 %v3696_v32  ;;  %v3314_v60 = vpack.c.bf16 %v697_v37, %v685_v38  ;;  %v2043_v19 = vand.u32 4294901760, %v2042_v24  ;;  %v6636_v29 = vand.u32 4294901760, %v7080_v21  ;;  %v6638_v14 = vand.u32 4294901760, %v7081_v11  ;;  %v7082_v24 = vld [vmem:[#allocation106_spill] sm:$0xff] }
  0xf4   : > { %v703_v26 = vand.u32 4294901760, %v702_v15  ;;  %v2048_v23 = vsub.f32 %v7078_v5, %v6631_v55  ;;  %v2060_v57 = vsub.f32 %v7079_v54, %v6634_v22  ;;  %v715_v38 = vand.u32 4294901760, %v714_v1  ;;  %v7083_v5 = vld [vmem:[#allocation107_spill] sm:$0xff] }
  0xf5   : > { %3315 = vmatpush1.bf16.msra.mxu1 %v3314_v60  ;;  %v3698_v37 = vpack.c.bf16 %v2043_v19, %v2031_v0  ;;  %v708_v32 = vsub.f32 %v7080_v21, %v6636_v29  ;;  %v6639_v18 = vand.u32 4294901760, %v7082_v24  ;;  %v720_v55 = vsub.f32 %v7081_v11, %v6638_v14  ;;  %v7084_v60 = vld [vmem:[#allocation109_spill] sm:$0xff] }
  0xf6   : > { %v2049_v15 = vand.u32 4294901760, %v2048_v23  ;;  %v2061_v31 = vand.u32 4294901760, %v2060_v57  ;;  %v6641_v35 = vand.u32 4294901760, %v7083_v5  ;;  %v3316_v22 = vpack.c.bf16 %v715_v38, %v703_v26  ;;  %v7085_v57 = vld [vmem:[#allocation110_spill] sm:$0xff] }
  0xf7   : > { %3699 = vmatpush1.bf16.msra.mxu0 %v3698_v37  ;;  %v709_v54 = vand.u32 4294901760, %v708_v32  ;;  %v2054_v0 = vsub.f32 %v7082_v24, %v6639_v18  ;;  %v6643_v19 = vand.u32 4294901760, %v7084_v60  ;;  %v721_v29 = vand.u32 4294901760, %v720_v55  ;;  %v7086_v37 = vld [vmem:[#allocation111_spill] sm:$0xff]  ;;  %v7087_v32 = vld [vmem:[#allocation113_spill] sm:$0xff] }
  0xf8   : > { %v3700_v1 = vpack.c.bf16 %v2061_v31, %v2049_v15  ;;  %v2066_v23 = vsub.f32 %v7083_v5, %v6641_v35  ;;  %v6645_v21 = vand.u32 4294901760, %v7085_v57  ;;  %3317 = vmatprep.subr.bf16.mxu1 %v3316_v22  ;;  %v6647_v38 = vand.u32 4294901760, %v7086_v37  ;;  %v7088_v15 = vld [vmem:[#allocation115_spill] sm:$0xff] }
  0xf9   : > { %v2055_v14 = vand.u32 4294901760, %v2054_v0  ;;  %v726_v26 = vsub.f32 %v7084_v60, %v6643_v19  ;;  %v6650_v18 = vand.u32 4294901760, %v7087_v32  ;;  %v3318_v24 = vpack.c.bf16 %v721_v29, %v709_v54  ;;  %v7089_v19 = vld [vmem:[#allocation116_spill] sm:$0xff] }
  0xfa   : > { %3701 = vmatprep.subr.bf16.mxu0 %v3700_v1  ;;  %v2067_v31 = vand.u32 4294901760, %v2066_v23  ;;  %v738_v55 = vsub.f32 %v7085_v57, %v6645_v21  ;;  %v6652_v35 = vand.u32 4294901760, %v7088_v15  ;;  %v2072_v22 = vsub.f32 %v7086_v37, %v6647_v38  ;;  %v7090_v23 = vld [vmem:[#allocation118_spill] sm:$0xff]  ;;  %v7091_v37 = vld [vmem:[#allocation119_spill] sm:$0xff] }
  0xfb   : > { %v727_v5 = vand.u32 4294901760, %v726_v26  ;;  %v2084_v0 = vsub.f32 %v7087_v32, %v6650_v18  ;;  %v6654_v60 = vand.u32 4294901760, %v7089_v19  ;;  %3319 = vmatpush1.bf16.msra.mxu1 %v3318_v24  ;;  %v6655_v21 = vand.u32 4294901760, %v7090_v23  ;;  %v7092_v24 = vld [vmem:[#allocation121_spill] sm:$0xff] }
  0xfc   : > { %v3702_v29 = vpack.c.bf16 %v2067_v31, %v2055_v14  ;;  %v739_v54 = vand.u32 4294901760, %v738_v55  ;;  %v732_v1 = vsub.f32 %v7088_v15, %v6652_v35  ;;  %v2073_v26 = vand.u32 4294901760, %v2072_v22 }
  0xfd   : > { %v2085_v57 = vand.u32 4294901760, %v2084_v0  ;;  %v744_v38 = vsub.f32 %v7089_v19, %v6654_v60  ;;  %v6657_v11 = vand.u32 4294901760, %v7091_v37  ;;  %v2078_v14 = vsub.f32 %v7090_v23, %v6655_v21  ;;  %v7093_v0 = vld [vmem:[#allocation122_spill] sm:$0xff]  ;;  %v7099_v19 = vld [vmem:[#allocation131_spill] sm:$0xff] }
  0xfe   : > { %3703 = vmatpush1.bf16.msra.mxu0 %v3702_v29  ;;  %v3320_v18 = vpack.c.bf16 %v739_v54, %v727_v5  ;;  %v733_v32 = vand.u32 4294901760, %v732_v1  ;;  %v6659_v31 = vand.u32 4294901760, %v7092_v24  ;;  %v6661_v15 = vand.u32 4294901760, %v7093_v0  ;;  %v7094_v29 = vld [vmem:[#allocation123_spill] sm:$0xff]  ;;  %v7095_v1 = vld [vmem:[#allocation125_spill] sm:$0xff] }
  0xff   : > { %v3704_v55 = vpack.c.bf16 %v2085_v57, %v2073_v26  ;;  %v745_v35 = vand.u32 4294901760, %v744_v38  ;;  %v2090_v22 = vsub.f32 %v7091_v37, %v6657_v11  ;;  %v2079_v60 = vand.u32 4294901760, %v2078_v14  ;;  %v7096_v26 = vld [vmem:[#allocation127_spill] sm:$0xff] }
 0x100   : > { %3321 = vmatprep.subr.bf16.mxu1 %v3320_v18  ;;  %v750_v5 = vsub.f32 %v7092_v24, %v6659_v31  ;;  %v6663_v54 = vand.u32 4294901760, %v7094_v29  ;;  %v6666_v21 = vand.u32 4294901760, %v7095_v1  ;;  %v762_v38 = vsub.f32 %v7093_v0, %v6661_v15  ;;  %v7097_v31 = vld [vmem:[#allocation128_spill] sm:$0xff] }
 0x101   : > { %3705 = vmatprep.subr.bf16.mxu0 %v3704_v55  ;;  %v3322_v23 = vpack.c.bf16 %v745_v35, %v733_v32  ;;  %v2091_v57 = vand.u32 4294901760, %v2090_v22  ;;  %v6668_v11 = vand.u32 4294901760, %v7096_v26  ;;  %v6670_v24 = vand.u32 4294901760, %v7097_v31  ;;  %v7098_v22 = vld [vmem:[#allocation130_spill] sm:$0xff] }
 0x102   : > { %v751_v37 = vand.u32 4294901760, %v750_v5  ;;  %v2096_v18 = vsub.f32 %v7094_v29, %v6663_v54  ;;  %v2108_v14 = vsub.f32 %v7095_v1, %v6666_v21  ;;  %v763_v32 = vand.u32 4294901760, %v762_v38 }
 0x103   : > { %3323 = vmatpush1.bf16.msra.mxu1 %v3322_v23  ;;  %v3706_v35 = vpack.c.bf16 %v2091_v57, %v2079_v60  ;;  %v756_v55 = vsub.f32 %v7096_v26, %v6668_v11  ;;  %v6671_v15 = vand.u32 4294901760, %v7098_v22  ;;  %v768_v54 = vsub.f32 %v7097_v31, %v6670_v24  ;;  %v7100_v23 = vld [vmem:[#allocation133_spill] sm:$0xff] }
 0x104   : > { %v2097_v5 = vand.u32 4294901760, %v2096_v18  ;;  %v2109_v0 = vand.u32 4294901760, %v2108_v14  ;;  %v6673_v29 = vand.u32 4294901760, %v7099_v19  ;;  %v3324_v21 = vpack.c.bf16 %v763_v32, %v751_v37  ;;  %v7101_v14 = vld [vmem:[#allocation134_spill] sm:$0xff] }
 0x105   : > { %3707 = vmatpush1.bf16.msra.mxu0 %v3706_v35  ;;  %v757_v1 = vand.u32 4294901760, %v756_v55  ;;  %v2102_v60 = vsub.f32 %v7098_v22, %v6671_v15  ;;  %v6675_v57 = vand.u32 4294901760, %v7100_v23  ;;  %v769_v11 = vand.u32 4294901760, %v768_v54  ;;  %v7102_v35 = vld [vmem:[#allocation135_spill] sm:$0xff]  ;;  %v7103_v55 = vld [vmem:[#allocation137_spill] sm:$0xff] }
 0x106   : > { %v3708_v38 = vpack.c.bf16 %v2109_v0, %v2097_v5  ;;  %v2114_v18 = vsub.f32 %v7099_v19, %v6673_v29  ;;  %v6677_v26 = vand.u32 4294901760, %v7101_v14  ;;  %3325 = vmatprep.subr.bf16.mxu1 %v3324_v21  ;;  %v6679_v32 = vand.u32 4294901760, %v7102_v35  ;;  %v7104_v5 = vld [vmem:[#allocation139_spill] sm:$0xff] }
 0x107   : > { %v2103_v24 = vand.u32 4294901760, %v2102_v60  ;;  %v774_v37 = vsub.f32 %v7100_v23, %v6675_v57  ;;  %v6682_v15 = vand.u32 4294901760, %v7103_v55  ;;  %v3326_v22 = vpack.c.bf16 %v769_v11, %v757_v1  ;;  %v7105_v57 = vld [vmem:[#allocation140_spill] sm:$0xff] }
 0x108   : > { %3709 = vmatprep.subr.bf16.mxu0 %v3708_v38  ;;  %v2115_v0 = vand.u32 4294901760, %v2114_v18  ;;  %v786_v54 = vsub.f32 %v7101_v14, %v6677_v26  ;;  %v6684_v29 = vand.u32 4294901760, %v7104_v5  ;;  %v2120_v21 = vsub.f32 %v7102_v35, %v6679_v32  ;;  %v7106_v18 = vld [vmem:[#allocation142_spill] sm:$0xff]  ;;  %v7107_v35 = vld [vmem:[#allocation143_spill] sm:$0xff] }
 0x109   : > { %v775_v19 = vand.u32 4294901760, %v774_v37  ;;  %v2132_v60 = vsub.f32 %v7103_v55, %v6682_v15  ;;  %v6686_v23 = vand.u32 4294901760, %v7105_v57  ;;  %3327 = vmatpush1.bf16.msra.mxu1 %v3326_v22  ;;  %v6687_v26 = vand.u32 4294901760, %v7106_v18  ;;  %v7108_v22 = vld [vmem:[#allocation145_spill] sm:$0xff] }
 0x10a   : > { %v3710_v11 = vpack.c.bf16 %v2115_v0, %v2103_v24  ;;  %v787_v1 = vand.u32 4294901760, %v786_v54  ;;  %v780_v38 = vsub.f32 %v7104_v5, %v6684_v29  ;;  %v2121_v37 = vand.u32 4294901760, %v2120_v21 }
 0x10b   : > { %v2133_v14 = vand.u32 4294901760, %v2132_v60  ;;  %v792_v32 = vsub.f32 %v7105_v57, %v6686_v23  ;;  %v6689_v31 = vand.u32 4294901760, %v7107_v35  ;;  %v2126_v24 = vsub.f32 %v7106_v18, %v6687_v26  ;;  %v7109_v60 = vld [vmem:[#allocation146_spill] sm:$0xff] }
 0x10c   : > { %3711 = vmatpush1.bf16.msra.mxu0 %v3710_v11  ;;  %v3328_v15 = vpack.c.bf16 %v787_v1, %v775_v19  ;;  %v781_v55 = vand.u32 4294901760, %v780_v38  ;;  %v6691_v0 = vand.u32 4294901760, %v7108_v22  ;;  %v6693_v5 = vand.u32 4294901760, %v7109_v60  ;;  %v7110_v11 = vld [vmem:[#allocation147_spill] sm:$0xff]  ;;  %v7111_v38 = vld [vmem:[#allocation149_spill] sm:$0xff] }
 0x10d   : > { %v3712_v54 = vpack.c.bf16 %v2133_v14, %v2121_v37  ;;  %v793_v29 = vand.u32 4294901760, %v792_v32  ;;  %v2138_v21 = vsub.f32 %v7107_v35, %v6689_v31  ;;  %v2127_v23 = vand.u32 4294901760, %v2126_v24  ;;  %v7112_v37 = vld [vmem:[#allocation151_spill] sm:$0xff] }
 0x10e   : > { %3329 = vmatprep.subr.bf16.mxu1 %v3328_v15  ;;  %v798_v19 = vsub.f32 %v7108_v22, %v6691_v0  ;;  %v6695_v1 = vand.u32 4294901760, %v7110_v11  ;;  %v6698_v26 = vand.u32 4294901760, %v7111_v38  ;;  %v810_v32 = vsub.f32 %v7109_v60, %v6693_v5  ;;  %v7113_v0 = vld [vmem:[#allocation152_spill] sm:$0xff] }
 0x10f   : > { %3713 = vmatprep.subr.bf16.mxu0 %v3712_v54  ;;  %v3330_v18 = vpack.c.bf16 %v793_v29, %v781_v55  ;;  %v2139_v14 = vand.u32 4294901760, %v2138_v21  ;;  %v6700_v31 = vand.u32 4294901760, %v7112_v37  ;;  %v6702_v22 = vand.u32 4294901760, %v7113_v0  ;;  %v7114_v21 = vld [vmem:[#allocation154_spill] sm:$0xff] }
 0x110   : > { %v799_v35 = vand.u32 4294901760, %v798_v19  ;;  %v2144_v15 = vsub.f32 %v7110_v11, %v6695_v1  ;;  %v2156_v24 = vsub.f32 %v7111_v38, %v6698_v26  ;;  %v811_v55 = vand.u32 4294901760, %v810_v32  ;;  %v7115_v11 = vld [vmem:[#allocation155_spill] sm:$0xff] }
 0x111   : > { %3331 = vmatpush1.bf16.msra.mxu1 %v3330_v18  ;;  %v3714_v29 = vpack.c.bf16 %v2139_v14, %v2127_v23  ;;  %v804_v54 = vsub.f32 %v7112_v37, %v6700_v31  ;;  %v6703_v5 = vand.u32 4294901760, %v7114_v21  ;;  %v816_v1 = vsub.f32 %v7113_v0, %v6702_v22  ;;  %v7116_v18 = vld [vmem:[#allocation157_spill] sm:$0xff] }
 0x112   : > { %v2145_v19 = vand.u32 4294901760, %v2144_v15  ;;  %v2157_v60 = vand.u32 4294901760, %v2156_v24  ;;  %v6705_v57 = vand.u32 4294901760, %v7115_v11  ;;  %v3332_v26 = vpack.c.bf16 %v811_v55, %v799_v35  ;;  %v7117_v24 = vld [vmem:[#allocation158_spill] sm:$0xff] }
 0x113   : > { %3715 = vmatpush1.bf16.msra.mxu0 %v3714_v29  ;;  %v805_v38 = vand.u32 4294901760, %v804_v54  ;;  %v2150_v23 = vsub.f32 %v7114_v21, %v6703_v5  ;;  %v6707_v14 = vand.u32 4294901760, %v7116_v18  ;;  %v817_v31 = vand.u32 4294901760, %v816_v1  ;;  %v7118_v29 = vld [vmem:[#allocation159_spill] sm:$0xff]  ;;  %v7119_v54 = vld [vmem:[#allocation161_spill] sm:$0xff] }
 0x114   : > { %v3716_v32 = vpack.c.bf16 %v2157_v60, %v2145_v19  ;;  %v2162_v15 = vsub.f32 %v7115_v11, %v6705_v57  ;;  %v6709_v37 = vand.u32 4294901760, %v7117_v24  ;;  %3333 = vmatprep.subr.bf16.mxu1 %v3332_v26  ;;  %v6711_v55 = vand.u32 4294901760, %v7118_v29  ;;  %v7120_v19 = vld [vmem:[#allocation163_spill] sm:$0xff] }
 0x115   : > { %v2151_v22 = vand.u32 4294901760, %v2150_v23  ;;  %v822_v35 = vsub.f32 %v7116_v18, %v6707_v14  ;;  %v6714_v5 = vand.u32 4294901760, %v7119_v54  ;;  %v3334_v21 = vpack.c.bf16 %v817_v31, %v805_v38  ;;  %v7121_v14 = vld [vmem:[#allocation164_spill] sm:$0xff] }
 0x116   : > { %3717 = vmatprep.subr.bf16.mxu0 %v3716_v32  ;;  %v2163_v60 = vand.u32 4294901760, %v2162_v15  ;;  %v834_v1 = vsub.f32 %v7117_v24, %v6709_v37  ;;  %v6716_v57 = vand.u32 4294901760, %v7120_v19  ;;  %v2168_v26 = vsub.f32 %v7118_v29, %v6711_v55  ;;  %v7122_v15 = vld [vmem:[#allocation166_spill] sm:$0xff]  ;;  %v7123_v29 = vld [vmem:[#allocation167_spill] sm:$0xff] }
 0x117   : > { %v823_v11 = vand.u32 4294901760, %v822_v35  ;;  %v2180_v23 = vsub.f32 %v7119_v54, %v6714_v5  ;;  %v6718_v18 = vand.u32 4294901760, %v7121_v14  ;;  %3335 = vmatpush1.bf16.msra.mxu1 %v3334_v21  ;;  %v6719_v37 = vand.u32 4294901760, %v7122_v15  ;;  %v7124_v21 = vld [vmem:[#allocation169_spill] sm:$0xff] }
 0x118   : > { %v3718_v31 = vpack.c.bf16 %v2163_v60, %v2151_v22  ;;  %v835_v38 = vand.u32 4294901760, %v834_v1  ;;  %v828_v32 = vsub.f32 %v7120_v19, %v6716_v57  ;;  %v2169_v35 = vand.u32 4294901760, %v2168_v26 }
 0x119   : > { %v2181_v24 = vand.u32 4294901760, %v2180_v23  ;;  %v840_v55 = vsub.f32 %v7121_v14, %v6718_v18  ;;  %v6720_v0 = vand.u32 4294901760, %v7123_v29  ;;  %v2174_v22 = vsub.f32 %v7122_v15, %v6719_v37  ;;  %v7125_v23 = vld [vmem:[#allocation170_spill] sm:$0xff] }
 0x11a   : > { %3719 = vmatpush1.bf16.msra.mxu0 %v3718_v31  ;;  %v3336_v5 = vpack.c.bf16 %v835_v38, %v823_v11  ;;  %v829_v54 = vand.u32 4294901760, %v828_v32  ;;  %v6722_v60 = vand.u32 4294901760, %v7124_v21  ;;  %v6724_v19 = vand.u32 4294901760, %v7125_v23  ;;  %v7126_v31 = vld [vmem:[#allocation171_spill] sm:$0xff] }
 0x11b   : > { %v3720_v1 = vpack.c.bf16 %v2181_v24, %v2169_v35  ;;  %v841_v57 = vand.u32 4294901760, %v840_v55  ;;  %v2186_v26 = vsub.f32 %v7123_v29, %v6720_v0  ;;  %v2175_v18 = vand.u32 4294901760, %v2174_v22  ;;  %v7127_v35 = vld [vmem:[#allocation175_spill] sm:$0xff] }
 0x11c   : > { %3337 = vmatprep.subr.bf16.mxu1 %v3336_v5  ;;  %v846_v11 = vsub.f32 %v7124_v21, %v6722_v60  ;;  %v6726_v38 = vand.u32 4294901760, %v7126_v31  ;;  %v6729_v32 = vand.u32 4294901760, %v4939_v28  ;;  %v858_v55 = vsub.f32 %v7125_v23, %v6724_v19  ;;  %v7128_v60 = vld [vmem:[#allocation176_spill] sm:$0xff] }
 0x11d   : > { %3721 = vmatprep.subr.bf16.mxu0 %v3720_v1  ;;  %v3338_v37 = vpack.c.bf16 %v841_v57, %v829_v54  ;;  %v2187_v24 = vand.u32 4294901760, %v2186_v26  ;;  %v6732_v0 = vand.u32 4294901760, %v7127_v35  ;;  %v6734_v21 = vand.u32 4294901760, %v7128_v60  ;;  %v7129_v26 = vld [vmem:[#allocation178_spill] sm:$0xff] }
 0x11e   : > { %v847_v29 = vand.u32 4294901760, %v846_v11  ;;  %v2192_v5 = vsub.f32 %v7126_v31, %v6726_v38  ;;  %v2204_v22 = vsub.f32 %v4939_v28, %v6729_v32  ;;  %v859_v54 = vand.u32 4294901760, %v858_v55  ;;  %v7130_v31 = vld [vmem:[#allocation179_spill] sm:$0xff] }
 0x11f   : > { %3339 = vmatpush1.bf16.msra.mxu1 %v3338_v37  ;;  %v3722_v57 = vpack.c.bf16 %v2187_v24, %v2175_v18  ;;  %v852_v1 = vsub.f32 %v7127_v35, %v6732_v0  ;;  %v6735_v19 = vand.u32 4294901760, %v7129_v26  ;;  %v864_v38 = vsub.f32 %v7128_v60, %v6734_v21  ;;  %v7131_v18 = vld [vmem:[#allocation181_spill] sm:$0xff] }
 0x120   : > { %v2193_v11 = vand.u32 4294901760, %v2192_v5  ;;  %v2205_v23 = vand.u32 4294901760, %v2204_v22  ;;  %v6736_v15 = vand.u32 4294901760, %v7130_v31  ;;  %v3340_v32 = vpack.c.bf16 %v859_v54, %v847_v29  ;;  %v7132_v22 = vld [vmem:[#allocation182_spill] sm:$0xff] }
 0x121   : > { %3723 = vmatpush1.bf16.msra.mxu0 %v3722_v57  ;;  %v853_v28 = vand.u32 4294901760, %v852_v1  ;;  %v2198_v37 = vsub.f32 %v7129_v26, %v6735_v19  ;;  %v6737_v24 = vand.u32 4294901760, %v7131_v18  ;;  %v865_v0 = vand.u32 4294901760, %v864_v38  ;;  %v7133_v57 = vld [vmem:[#allocation183_spill] sm:$0xff] }
 0x122   : > { %v3724_v55 = vpack.c.bf16 %v2205_v23, %v2193_v11  ;;  %v2210_v5 = vsub.f32 %v7130_v31, %v6736_v15  ;;  %v6738_v35 = vand.u32 4294901760, %v7132_v22  ;;  %3341 = vmatprep.subr.bf16.mxu1 %v3340_v32  ;;  %v6740_v54 = vand.u32 4294901760, %v7133_v57 }
 0x123   : > { %v2199_v21 = vand.u32 4294901760, %v2198_v37  ;;  %v870_v29 = vsub.f32 %v7131_v18, %v6737_v24  ;;  %v6741_v1 = vand.u32 4294901760, %v4975_v53  ;;  %v3342_v19 = vpack.c.bf16 %v865_v0, %v853_v28 }
 0x124   : > { %3725 = vmatprep.subr.bf16.mxu0 %v3724_v55  ;;  %v2211_v23 = vand.u32 4294901760, %v2210_v5  ;;  %v882_v38 = vsub.f32 %v7132_v22, %v6738_v35  ;;  %v6745_v11 = vand.u32 4294901760, %v4979_v30  ;;  %v2216_v32 = vsub.f32 %v7133_v57, %v6740_v54  ;;  %v239_v55 = vld [vmem:[#allocation3 + $0x28] sm:$0xff] }
 0x125   : > { %v871_v15 = vand.u32 4294901760, %v870_v29  ;;  %v2228_v37 = vsub.f32 %v4975_v53, %v6741_v1  ;;  %v6746_v24 = vand.u32 4294901760, %v4984_v20  ;;  %3343 = vmatpush1.bf16.msra.mxu1 %v3342_v19  ;;  %v6749_v29 = vand.u32 4294901760, %v4988_v36  ;;  %v241_v53 = vld [vmem:[#allocation3 + $0x38] sm:$0xff] }
 0x126   : > { %v3726_v28 = vpack.c.bf16 %v2211_v23, %v2199_v21  ;;  %v883_v0 = vand.u32 4294901760, %v882_v38  ;;  %v876_v5 = vsub.f32 %v4979_v30, %v6745_v11  ;;  %v2217_v35 = vand.u32 4294901760, %v2216_v32 }
 0x127   : > { %v2229_v22 = vand.u32 4294901760, %v2228_v37  ;;  %v888_v54 = vsub.f32 %v4984_v20, %v6746_v24  ;;  %v6752_v1 = vand.u32 4294901760, %v4990_v8  ;;  %v2222_v21 = vsub.f32 %v4988_v36, %v6749_v29  ;;  %v7135_v37 = vld [vmem:[#allocation193_spill] sm:$0xff]  ;;  %v238_v29 = vld [vmem:[#allocation3 + $0x20] sm:$0xff] }
 0x128   : > { %3727 = vmatpush1.bf16.msra.mxu0 %v3726_v28  ;;  %v3344_v57 = vpack.c.bf16 %v883_v0, %v871_v15  ;;  %v877_v19 = vand.u32 4294901760, %v876_v5  ;;  %v5537_v23 = vand.u32 4294901760, %v239_v55  ;;  %v6755_v24 = vand.u32 4294901760, %v7135_v37  ;;  %v7137_v15 = vld [vmem:[#allocation194_spill] sm:$0xff] }
 0x129   : > { %v3728_v38 = vpack.c.bf16 %v2229_v22, %v2217_v35  ;;  %v889_v11 = vand.u32 4294901760, %v888_v54  ;;  %v2234_v32 = vsub.f32 %v4990_v8, %v6752_v1  ;;  %v2223_v20 = vand.u32 4294901760, %v2222_v21  ;;  %v7139_v54 = vld [vmem:[#allocation195_spill] sm:$0xff] }
 0x12a   : > { %7134 = vst [vmem:[#allocation212_spill] sm:$0xff] %v5537_v23  ;;  %3345 = vmatprep.subr.bf16.mxu1 %v3344_v57  ;;  %v5544_v28 = vsub.f32 %v239_v55, %v5537_v23  ;;  %v6757_v0 = vand.u32 4294901760, %v7137_v15  ;;  %v5547_v5 = vand.u32 4294901760, %v241_v53  ;;  %v894_v22 = vsub.f32 %v7135_v37, %v6755_v24 }
 0x12b   : > { %3729 = vmatprep.subr.bf16.mxu0 %v3728_v38  ;;  %v3346_v36 = vpack.c.bf16 %v889_v11, %v877_v19  ;;  %v2235_v35 = vand.u32 4294901760, %v2234_v32  ;;  %v6758_v1 = vand.u32 4294901760, %v7139_v54  ;;  %v6765_v8 = vand.u32 4294901760, %v5010_v59 }
 0x12c   : > { %7136 = vst [vmem:[#allocation213_spill] sm:$0xff] %v5544_v28  ;;  %7138 = vst [vmem:[#allocation214_spill] sm:$0xff] %v5547_v5  ;;  %v6762_v57 = vand.u32 4294901760, %v5544_v28  ;;  %v906_v55 = vsub.f32 %v7137_v15, %v6757_v0  ;;  %v5558_v21 = vsub.f32 %v241_v53, %v5547_v5  ;;  %v895_v19 = vand.u32 4294901760, %v894_v22 }
 0x12d   : > { %3347 = vmatpush1.bf16.msra.mxu1 %v3346_v36  ;;  %v3730_v11 = vpack.c.bf16 %v2235_v35, %v2223_v20  ;;  %v2240_v38 = vsub.f32 %v7139_v54, %v6758_v1  ;;  %v5564_v32 = vand.u32 4294901760, %v238_v29  ;;  %v2252_v53 = vsub.f32 %v5010_v59, %v6765_v8  ;;  %v240_v36 = vld [vmem:[#allocation3 + $0x30] sm:$0xff]  ;;  %v7201_v59 = vld [vmem:[#allocation73_spill] sm:$0xff] }
 0x12e   : > { %7140 = vst [vmem:[#allocation215_spill] sm:$0xff] %v5558_v21  ;;  %v517_v24 = vsub.f32 %v5544_v28, %v6762_v57  ;;  %v907_v37 = vand.u32 4294901760, %v906_v55  ;;  %v6766_v0 = vand.u32 4294901760, %v5558_v21  ;;  %v6767_v22 = vand.u32 4294901760, %v5014_v47 }
 0x12f   : > { %7141 = vst [vmem:[#allocation216_spill] sm:$0xff] %v5564_v32  ;;  %3731 = vmatpush1.bf16.msra.mxu0 %v3730_v11  ;;  %v2241_v20 = vand.u32 4294901760, %v2240_v38  ;;  %v5574_v35 = vsub.f32 %v238_v29, %v5564_v32  ;;  %v6771_v1 = vand.u32 4294901760, %v5016_v45  ;;  %v2253_v57 = vand.u32 4294901760, %v2252_v53 }
 0x130   : > { %v518_v54 = vand.u32 4294901760, %v517_v24  ;;  %v3348_v5 = vpack.c.bf16 %v907_v37, %v895_v19  ;;  %v1863_v55 = vsub.f32 %v5558_v21, %v6766_v0  ;;  %v900_v11 = vsub.f32 %v5014_v47, %v6767_v22 }
 0x131   : > { %7142 = vst [vmem:[#allocation217_spill] sm:$0xff] %v5574_v35  ;;  %v6772_v28 = vand.u32 4294901760, %v5574_v35  ;;  %v912_v29 = vsub.f32 %v5016_v45, %v6771_v1  ;;  %v5588_v38 = vand.u32 4294901760, %v240_v36  ;;  %v3732_v37 = vpack.c.bf16 %v2253_v57, %v2241_v20 }
 0x132   : > { %519 = vmatprep.mubr.f32.mxu1 %v518_v54  ;;  %3349 = vmatprep.subr.bf16.mxu1 %v3348_v5  ;;  %v1864_v24 = vand.u32 4294901760, %v1863_v55  ;;  %v6770_v19 = vand.u32 4294901760, %v5020_v42  ;;  %v6773_v53 = vand.u32 4294901760, %v5022_v49  ;;  %v901_v0 = vand.u32 4294901760, %v900_v11 }
 0x133   : > { %7143 = vst [vmem:[#allocation218_spill] sm:$0xff] %v5588_v38  ;;  %v523_v8 = vsub.f32 %v5574_v35, %v6772_v28  ;;  %v913_v22 = vand.u32 4294901760, %v912_v29  ;;  %v5596_v21 = vsub.f32 %v240_v36, %v5588_v38  ;;  %3733 = vmatprep.subr.bf16.mxu0 %v3732_v37  ;;  %v3352_v11 = vpack.c.bf16 %v4461_v17, %v4459_v16  ;;  %v7145_v37 = vld [vmem:[#allocation15_spill] sm:$0xff]  ;;  %v7183_v17 = vld [vmem:[#allocation173_spill] sm:$0xff]  ;;  %v7194_v35 = vld [vmem:[#allocation58_spill] sm:$0xff] }
 0x134   : > { %1865 = vmatprep.mubr.f32.mxu0 %v1864_v24  ;;  %v2246_v5 = vsub.f32 %v5020_v42, %v6770_v19  ;;  %v2258_v54 = vsub.f32 %v5022_v49, %v6773_v53  ;;  %v7146_v19 = vld [vmem:[#allocation17_spill] sm:$0xff]  ;;  %v7147_v53 = vld [vmem:[#allocation196_spill] sm:$0xff] }
 0x135   : > { %7144 = vst [vmem:[#allocation219_spill] sm:$0xff] %v5596_v21  ;;  %v524_v57 = vand.u32 4294901760, %v523_v8  ;;  %v3350_v20 = vpack.c.bf16 %v913_v22, %v901_v0  ;;  %v6774_v55 = vand.u32 4294901760, %v5596_v21  ;;  %v3736_v1 = vpack.c.bf16 %v7146_v19, %v7145_v37  ;;  %v7180_v19 = vld [vmem:[#allocation169_spill] sm:$0xff]  ;;  %v7188_v37 = vld [vmem:[#allocation188_spill] sm:$0xff] }
 0x136   : > { %v2247_v29 = vand.u32 4294901760, %v2246_v5  ;;  %v2259_v36 = vand.u32 4294901760, %v2258_v54  ;;  %v3354_v0 = vpack.c.bf16 %v4478_v27, %v4474_v25  ;;  %v3356_v22 = vpack.c.bf16 %v4498_v46, %v4491_v41  ;;  %v7148_v5 = vld [vmem:[#allocation206_spill] sm:$0xff]  ;;  %v7149_v54 = vld [vmem:[#allocation207_spill] sm:$0xff]  ;;  %v7187_v25 = vld [vmem:[#allocation185_spill] sm:$0xff] }
 0x137   : > { %525 = vmatmul.mubr.f32.gmra.mrb[2].mxu1 %v524_v57  ;;  %v1869_v24 = vsub.f32 %v5596_v21, %v6774_v55  ;;  %v3738_v57 = vpack.c.bf16 %v4489_v40, %v4487_v39  ;;  %v7150_v55 = vld [vmem:[#allocation62_spill] sm:$0xff]  ;;  %v7173_v40 = vld [vmem:[#allocation157_spill] sm:$0xff]  ;;  %v7177_v41 = vld [vmem:[#allocation163_spill] sm:$0xff] }
 0x138   : > { %3351 = vmatpush1.bf16.msra.mxu1 %v3350_v20  ;;  %v3734_v28 = vpack.c.bf16 %v2259_v36, %v2247_v29  ;;  %916 = vmatprep.mubr.f32.mxu1 %v7147_v53  ;;  %v3740_v20 = vpack.c.bf16 %v4506_v50, %v4502_v48  ;;  %v3744_v29 = vpack.c.bf16 %v4541_v13, %v4539_v12  ;;  %v7158_v13 = vld [vmem:[#allocation134_spill] sm:$0xff]  ;;  %v7161_v12 = vld [vmem:[#allocation139_spill] sm:$0xff]  ;;  %v7191_v39 = vld [vmem:[#allocation193_spill] sm:$0xff] }
 0x139   : > { %v1870_v8 = vand.u32 4294901760, %v1869_v24  ;;  %3353 = vmatprep.subr.bf16.mxu1 %v3352_v11  ;;  %v3358_v11 = vpack.c.bf16 %v4516_v61, %v4508_v52  ;;  %v3362_v36 = vpack.c.bf16 %v4551_v34, %v4549_v33  ;;  %v3746_v24 = vpack.c.bf16 %v4560_v44, %v4558_v43  ;;  %v7153_v34 = vld [vmem:[#allocation127_spill] sm:$0xff]  ;;  %v7154_v44 = vld [vmem:[#allocation128_spill] sm:$0xff]  ;;  %v7155_v33 = vld [vmem:[#allocation130_spill] sm:$0xff] }
 0x13a   : > { %3735 = vmatpush1.bf16.msra.mxu0 %v3734_v28  ;;  %v3742_v28 = vpack.c.bf16 %v4525_v4, %v4518_v62  ;;  %v7163_v4 = vld [vmem:[#allocation142_spill] sm:$0xff]  ;;  %v7164_v53 = vld [vmem:[#allocation143_spill] sm:$0xff]  ;;  %v7170_v52 = vld [vmem:[#allocation152_spill] sm:$0xff] }
 0x13b   : > { %1871 = vmatmul.mubr.f32.gmra.mrb[2].mxu0 %v1870_v8  ;;  %3737 = vmatprep.subr.bf16.mxu0 %v3736_v1  ;;  %v3360_v1 = vpack.c.bf16 %v4535_v10, %v4529_v6  ;;  %v3364_v8 = vpack.c.bf16 %v4571_v56, %v4564_v51  ;;  %v7156_v56 = vld [vmem:[#allocation131_spill] sm:$0xff]  ;;  %v7157_v51 = vld [vmem:[#allocation133_spill] sm:$0xff]  ;;  %v7166_v62 = vld [vmem:[#allocation146_spill] sm:$0xff] }
 0x13c   : > { %2262 = vmatprep.mubr.f32.mxu0 %v7148_v5  ;;  %918 = vmatmul.mubr.f32.vlgmr.msra.gmra.mrb[0].mxu1 %v7149_v54  ;;  %v7151_v54 = vld [vmem:[#allocation123_spill] sm:$0xff]  ;;  %v7152_v5 = vld [vmem:[#allocation125_spill] sm:$0xff]  ;;  %v7181_v50 = vld [vmem:[#allocation170_spill] sm:$0xff] }
 0x13d   : > { %3355 = vmatpush1.bf16.msra.mxu1 %v3354_v0  ;;  %v3748_v0 = vpack.c.bf16 %v4578_v63, %v4575_v58  ;;  %v7159_v58 = vld [vmem:[#allocation135_spill] sm:$0xff]  ;;  %v7168_v6 = vld [vmem:[#allocation149_spill] sm:$0xff]  ;;  %v7171_v63 = vld [vmem:[#allocation154_spill] sm:$0xff]  ;;  %924 = vmatprep.mubr.f32.mxu1 %v5537_v23 }
 0x13e   : > { %3357 = vmatprep.subr.bf16.mxu1 %v3356_v22  ;;  %v3366_v22 = vpack.c.bf16 %v4589_v9, %v4582_v7  ;;  %v7160_v9 = vld [vmem:[#allocation137_spill] sm:$0xff]  ;;  %v7167_v43 = vld [vmem:[#allocation147_spill] sm:$0xff]  ;;  %v7174_v7 = vld [vmem:[#allocation158_spill] sm:$0xff] }
 0x13f   : > { %2264 = vmatmul.mubr.f32.vlgmr.msra.gmra.mrb[0].mxu0 %v5075_v2  ;;  %v3368_v2 = vpack.c.bf16 %v7150_v55, %v4602_v3  ;;  %v7162_v55 = vld [vmem:[#allocation140_spill] sm:$0xff]  ;;  %v7175_v3 = vld [vmem:[#allocation159_spill] sm:$0xff]  ;;  %v7185_v10 = vld [vmem:[#allocation182_spill] sm:$0xff] }
 0x140   : > { %3739 = vmatpush1.bf16.msra.mxu0 %v3738_v57  ;;  %v7169_v57 = vld [vmem:[#allocation151_spill] sm:$0xff]  ;;  %926 = vmatmul.mubr.f32.gmra.mrb[2].mxu1 %v5564_v32  ;;  %v7200_v16 = vld [vmem:[#allocation68_spill] sm:$0xff]  ;;  %v7202_v46 = vld [vmem:[#allocation74_spill] sm:$0xff] }
 0x141   : > { %3741 = vmatprep.subr.bf16.mxu0 %v3740_v20  ;;  %3359 = vmatpush1.bf16.msra.mxu1 %v3358_v11  ;;  %v7165_v11 = vld [vmem:[#allocation145_spill] sm:$0xff]  ;;  %v7186_v21 = vld [vmem:[#allocation183_spill] sm:$0xff]  ;;  %v7204_v61 = vld [vmem:[#allocation70_spill] sm:$0xff] }
 0x142   : > { %3361 = vmatprep.subr.bf16.mxu1 %v3360_v1  ;;  %v7172_v1 = vld [vmem:[#allocation155_spill] sm:$0xff]  ;;  %v7176_v20 = vld [vmem:[#allocation161_spill] sm:$0xff]  ;;  %v7209_v42 = vld [vmem:[#allocation80_spill] sm:$0xff] }
 0x143   : > { %v7195_v23 = vld [vmem:[#allocation59_spill] sm:$0xff] }
 0x144   : > { %3743 = vmatpush1.bf16.msra.mxu0 %v3742_v28  ;;  %v7192_v28 = vld [vmem:[#allocation214_spill] sm:$0xff]  ;;  %v7197_v48 = vld [vmem:[#allocation63_spill] sm:$0xff] }
 0x145   : > { %3745 = vmatprep.subr.bf16.mxu0 %v3744_v29  ;;  %3363 = vmatpush1.bf16.msra.mxu1 %v3362_v36  ;;  %v3750_v29 = vpack.c.bf16 %v7195_v23, %v7194_v35  ;;  %v7196_v36 = vld [vmem:[#allocation205_spill] sm:$0xff]  ;;  %v7203_v23 = vld [vmem:[#allocation208_spill] sm:$0xff]  ;;  %v7205_v35 = vld [vmem:[#allocation71_spill] sm:$0xff] }
 0x146   : > { %3365 = vmatprep.subr.bf16.mxu1 %v3364_v8  ;;  %2270 = vmatprep.mubr.f32.mxu0 %v7192_v28  ;;  %v7198_v28 = vld [vmem:[#allocation65_spill] sm:$0xff]  ;;  %v7199_v8 = vld [vmem:[#allocation67_spill] sm:$0xff] }
 0x147   : > { %1126 = vmatprep.mubr.f32.mxu1 %v7196_v36  ;;  %v3752_v27 = vpack.c.bf16 %v7198_v28, %v7197_v48  ;;  %v3370_v32 = vpack.c.bf16 %v7200_v16, %v7199_v8  ;;  %2272 = vmatmul.mubr.f32.gmra.mrb[2].mxu0 %v5588_v38  ;;  %v3754_v36 = vpack.c.bf16 %v7205_v35, %v7204_v61  ;;  %v7208_v48 = vld [vmem:[#allocation79_spill] sm:$0xff]  ;;  %v7211_v8 = vld [vmem:[#allocation86_spill] sm:$0xff]  ;;  %v7215_v35 = vld [vmem:[#allocation89_spill] sm:$0xff] }
 0x148   : > { %3747 = vmatpush1.bf16.msra.mxu0 %v3746_v24  ;;  %v3372_v24 = vpack.c.bf16 %v7202_v46, %v7201_v59  ;;  %2472 = vmatprep.mubr.f32.mxu0 %v7203_v23  ;;  %v3374_v16 = vpack.c.bf16 %v7209_v42, %v7208_v48  ;;  %v7212_v38 = vld [vmem:[#allocation82_spill] sm:$0xff]  ;;  %v7213_v59 = vld [vmem:[#allocation83_spill] sm:$0xff]  ;;  %v7217_v61 = vld [vmem:[#allocation92_spill] sm:$0xff] }
 0x149   : > { %3749 = vmatprep.subr.bf16.mxu0 %v3748_v0  ;;  %3367 = vmatpush1.bf16.msra.mxu1 %v3366_v22  ;;  %v7206_v0 = vld [vmem:[#allocation75_spill] sm:$0xff]  ;;  %v7207_v22 = vld [vmem:[#allocation77_spill] sm:$0xff]  ;;  %v3758_v23 = vpack.c.bf16 %v7213_v59, %v7212_v38  ;;  %v7225_v38 = vld [vmem:[#allocation104_spill] sm:$0xff] }
 0x14a   : > { %3369 = vmatprep.subr.bf16.mxu1 %v3368_v2  ;;  %v3756_v28 = vpack.c.bf16 %v7207_v22, %v7206_v0  ;;  %v7210_v2 = vld [vmem:[#allocation85_spill] sm:$0xff]  ;;  %v7219_v0 = vld [vmem:[#allocation98_spill] sm:$0xff]  ;;  %v7221_v48 = vld [vmem:[#allocation95_spill] sm:$0xff] }
 0x14b   : > { %v3376_v46 = vpack.c.bf16 %v7211_v8, %v7210_v2  ;;  %v7218_v22 = vld [vmem:[#allocation97_spill] sm:$0xff] }
 0x14c   : > { %3751 = vmatpush1.bf16.msra.mxu0 %v3750_v29  ;;  %v7214_v29 = vld [vmem:[#allocation87_spill] sm:$0xff]  ;;  %v3380_v42 = vpack.c.bf16 %v7219_v0, %v7218_v22  ;;  %v7223_v59 = vld [vmem:[#allocation101_spill] sm:$0xff] }
 0x14d   : > { %3753 = vmatprep.subr.bf16.mxu0 %v3752_v27  ;;  %3371 = vmatpush1.bf16.msra.mxu1 %v3370_v32  ;;  %v3760_v27 = vpack.c.bf16 %v7215_v35, %v7214_v29  ;;  %v7216_v32 = vld [vmem:[#allocation91_spill] sm:$0xff]  ;;  %v7226_v35 = vld [vmem:[#allocation109_spill] sm:$0xff]  ;;  %v7227_v29 = vld [vmem:[#allocation110_spill] sm:$0xff] }
 0x14e   : > { %3373 = vmatprep.subr.bf16.mxu1 %v3372_v24  ;;  %v3378_v49 = vpack.c.bf16 %v7217_v61, %v7216_v32  ;;  %v7220_v24 = vld [vmem:[#allocation94_spill] sm:$0xff]  ;;  %v3384_v61 = vpack.c.bf16 %v7227_v29, %v7226_v35  ;;  %v7229_v32 = vld [vmem:[#allocation107_spill] sm:$0xff] }
 0x14f   : > { %v3762_v8 = vpack.c.bf16 %v7221_v48, %v7220_v24  ;;  %v7231_v48 = vld [vmem:[#allocation113_spill] sm:$0xff]  ;;  %v7233_v24 = vld [vmem:[#allocation116_spill] sm:$0xff] }
 0x150   : > { %3755 = vmatpush1.bf16.msra.mxu0 %v3754_v36  ;;  %v7222_v36 = vld [vmem:[#allocation99_spill] sm:$0xff] }
 0x151   : > { %3757 = vmatprep.subr.bf16.mxu0 %v3756_v28  ;;  %3375 = vmatpush1.bf16.msra.mxu1 %v3374_v16  ;;  %v3764_v28 = vpack.c.bf16 %v7223_v59, %v7222_v36  ;;  %v7224_v16 = vld [vmem:[#allocation103_spill] sm:$0xff]  ;;  %v7234_v59 = vld [vmem:[#allocation121_spill] sm:$0xff]  ;;  %v7235_v36 = vld [vmem:[#allocation122_spill] sm:$0xff] }
 0x152   : > { %3377 = vmatprep.subr.bf16.mxu1 %v3376_v46  ;;  %v3382_v2 = vpack.c.bf16 %v7225_v38, %v7224_v16  ;;  %v7228_v46 = vld [vmem:[#allocation106_spill] sm:$0xff]  ;;  %v3388_v38 = vpack.c.bf16 %v7235_v36, %v7234_v59  ;;  %v7237_v16 = vld [vmem:[#allocation119_spill] sm:$0xff] }
 0x153   : > { %v3766_v0 = vpack.c.bf16 %v7229_v32, %v7228_v46 }
 0x154   : > { %3759 = vmatpush1.bf16.msra.mxu0 %v3758_v23  ;;  %v7230_v23 = vld [vmem:[#allocation111_spill] sm:$0xff] }
 0x155   : > { %3761 = vmatprep.subr.bf16.mxu0 %v3760_v27  ;;  %3379 = vmatpush1.bf16.msra.mxu1 %v3378_v49  ;;  %v3768_v27 = vpack.c.bf16 %v7231_v48, %v7230_v23  ;;  %v7232_v49 = vld [vmem:[#allocation115_spill] sm:$0xff] }
 0x156   : > { %3381 = vmatprep.subr.bf16.mxu1 %v3380_v42  ;;  %v3386_v22 = vpack.c.bf16 %v7233_v24, %v7232_v49  ;;  %v7236_v42 = vld [vmem:[#allocation118_spill] sm:$0xff] }
 0x157   : > { %v3770_v29 = vpack.c.bf16 %v7237_v16, %v7236_v42 }
 0x158   : > { %3763 = vmatpush1.bf16.msra.mxu0 %v3762_v8  ;;  %v7238_v8 = vpack.c.bf16 %v7152_v5, %v7151_v54 }
 0x159   : > { %3765 = vmatprep.subr.bf16.mxu0 %v3764_v28  ;;  %3383 = vmatpush1.bf16.msra.mxu1 %v3382_v2  ;;  %v7239_v2 = vpack.c.bf16 %v7154_v44, %v7153_v34  ;;  %v7245_v28 = vpack.c.bf16 %v7164_v53, %v7163_v4 }
 0x15a   : > { %3385 = vmatprep.subr.bf16.mxu1 %v3384_v61  ;;  %v7240_v61 = vpack.c.bf16 %v7158_v13, %v7157_v51 }
 0x15c   : > { %3767 = vmatpush1.bf16.msra.mxu0 %v3766_v0  ;;  %v7241_v0 = vpack.c.bf16 %v7156_v56, %v7155_v33 }
 0x15d   : > { %3769 = vmatprep.subr.bf16.mxu0 %v3768_v27  ;;  %3387 = vmatpush1.bf16.msra.mxu1 %v3386_v22  ;;  %v7243_v22 = vpack.c.bf16 %v7162_v55, %v7161_v12  ;;  %v7246_v27 = vpack.c.bf16 %v7168_v6, %v7167_v43 }
 0x15e   : > { %3389 = vmatprep.subr.bf16.mxu1 %v3388_v38  ;;  %v7242_v38 = vpack.c.bf16 %v7160_v9, %v7159_v58 }
 0x160   : > { %3771 = vmatpush1.bf16.msra.mxu0 %v3770_v29  ;;  %v7244_v29 = vpack.c.bf16 %v7166_v62, %v7165_v11 }
 0x161   : > { %3773 = vmatprep.subr.bf16.mxu0 %v7238_v8  ;;  %3391 = vmatpush1.bf16.msra.mxu1 %v7239_v2  ;;  %v7247_v8 = vpack.c.bf16 %v7170_v52, %v7169_v57  ;;  %v7248_v2 = vpack.c.bf16 %v7174_v7, %v7173_v40 }
 0x162   : > { %3393 = vmatprep.subr.bf16.mxu1 %v7240_v61  ;;  %v7249_v61 = vpack.c.bf16 %v7172_v1, %v7171_v63 }
 0x164   : > { %3775 = vmatpush1.bf16.msra.mxu0 %v7241_v0  ;;  %v7250_v0 = vpack.c.bf16 %v7176_v20, %v7175_v3 }
 0x165   : > { %3777 = vmatprep.subr.bf16.mxu0 %v7242_v38  ;;  %3395 = vmatpush1.bf16.msra.mxu1 %v7243_v22  ;;  %v7251_v38 = vpack.c.bf16 %v7121_v14, %v7177_v41  ;;  %v7252_v22 = vpack.c.bf16 %v7181_v50, %v7180_v19  ;;  %v7364_v50 = vld [vmem:[#allocation202_spill] sm:$0xff] }
 0x166   : > { %3397 = vmatprep.subr.bf16.mxu1 %v7244_v29  ;;  %v7253_v29 = vld [vmem:[#allocation167_spill] sm:$0xff]  ;;  %v7380_v19 = vld [vmem:[#allocation38_spill] sm:$0xff] }
 0x168   : > { %3779 = vmatpush1.bf16.msra.mxu0 %v7245_v28  ;;  %v7254_v28 = vld [vmem:[#allocation166_spill] sm:$0xff] }
 0x169   : > { %3781 = vmatprep.subr.bf16.mxu0 %v7246_v27  ;;  %3399 = vmatpush1.bf16.msra.mxu1 %v7247_v8  ;;  %v7255_v27 = vpack.c.bf16 %v7253_v29, %v7254_v28  ;;  %v7256_v8 = vld [vmem:[#allocation171_spill] sm:$0xff]  ;;  %v7358_v29 = vld [vmem:[#allocation20_spill] sm:$0xff] }
 0x16a   : > { %3401 = vmatprep.subr.bf16.mxu1 %v7248_v2  ;;  %v7257_v2 = vpack.c.bf16 %v7183_v17, %v7256_v8  ;;  %v7356_v8 = vld [vmem:[#allocation19_spill] sm:$0xff] }
 0x16c   : > { %3783 = vmatpush1.bf16.msra.mxu0 %v7249_v61  ;;  %v7258_v61 = vld [vmem:[#allocation175_spill] sm:$0xff] }
 0x16d   : > { %3785 = vmatprep.subr.bf16.mxu0 %v7250_v0  ;;  %3403 = vmatpush1.bf16.msra.mxu1 %v7251_v38  ;;  %v7259_v20 = vpack.c.bf16 %v7128_v60, %v7258_v61  ;;  %v7260_v0 = vpack.c.bf16 %v7185_v10, %v7131_v18  ;;  %v7261_v38 = vpack.c.bf16 %v7130_v31, %v7129_v26  ;;  %v7266_v60 = vld [vmem:[#allocation190_spill] sm:$0xff]  ;;  %v7269_v18 = vld [vmem:[#allocation195_spill] sm:$0xff] }
 0x16e   : > { %3405 = vmatprep.subr.bf16.mxu1 %v7252_v22  ;;  %v7262_v22 = vpack.c.bf16 %v7187_v25, %v7186_v21  ;;  %v7299_v25 = vld [vmem:[#allocation55_spill] sm:$0xff]  ;;  %v7300_v21 = vld [vmem:[#allocation60_spill] sm:$0xff] }
 0x170   : > { %3787 = vmatpush1.bf16.msra.mxu0 %v7255_v27  ;;  %v7263_v27 = vpack.c.bf16 %v7188_v37, %v4979_v30  ;;  %v7273_v37 = vld [vmem:[#allocation204_spill] sm:$0xff] }
 0x171   : > { %3789 = vmatprep.subr.bf16.mxu0 %v7257_v2  ;;  %3407 = vmatpush1.bf16.msra.mxu1 %v7259_v20  ;;  %v7264_v2 = vpack.c.bf16 %v7137_v15, %v7191_v39  ;;  %v7265_v20 = vld [vmem:[#allocation191_spill] sm:$0xff]  ;;  %v7276_v15 = vld [vmem:[#allocation209_spill] sm:$0xff]  ;;  %v7295_v39 = vld [vmem:[#allocation42_spill] sm:$0xff] }
 0x172   : > { %3409 = vmatprep.subr.bf16.mxu1 %v7260_v0  ;;  %v7267_v10 = vpack.c.bf16 %v7265_v20, %v7266_v60  ;;  %v7268_v0 = vld [vmem:[#allocation198_spill] sm:$0xff] }
 0x173   : > { %v7270_v31 = vpack.c.bf16 %v7268_v0, %v7269_v18  ;;  %v7278_v20 = vld [vmem:[#allocation18_spill] sm:$0xff]  ;;  %v7280_v0 = vld [vmem:[#allocation213_spill] sm:$0xff]  ;;  %v7292_v18 = vld [vmem:[#allocation208_spill] sm:$0xff] }
 0x174   : > { %3791 = vmatpush1.bf16.msra.mxu0 %v7261_v38  ;;  %v7271_v38 = vpack.c.bf16 %v5016_v45, %v5014_v47  ;;  %v7282_v45 = vld [vmem:[#allocation21_spill] sm:$0xff]  ;;  %v7291_v47 = vld [vmem:[#allocation34_spill] sm:$0xff]  ;;  %v7293_v60 = vand.u32 4294901760, %v7292_v18 }
 0x175   : > { %3793 = vmatprep.subr.bf16.mxu0 %v7262_v22  ;;  %3411 = vmatpush1.bf16.msra.mxu1 %v7263_v27  ;;  %v7272_v22 = vld [vmem:[#allocation12_spill] sm:$0xff]  ;;  %v7274_v27 = vld [vmem:[#allocation203_spill] sm:$0xff]  ;;  %v7303_v18 = vld [vmem:[#allocation66_spill] sm:$0xff] }
 0x176   : > { %3413 = vmatprep.subr.bf16.mxu1 %v7264_v2  ;;  %v7275_v30 = vpack.c.bf16 %v7273_v37, %v7274_v27  ;;  %v7277_v2 = vld [vmem:[#allocation16_spill] sm:$0xff]  ;;  %v7285_v37 = vld [vmem:[#allocation31_spill] sm:$0xff]  ;;  %v7287_v27 = vld [vmem:[#allocation217_spill] sm:$0xff] }
 0x178   : > { %3795 = vmatpush1.bf16.msra.mxu0 %v7267_v10  ;;  %v7279_v10 = vld [vmem:[#allocation25_spill] sm:$0xff] }
 0x179   : > { %3797 = vmatprep.subr.bf16.mxu0 %v7270_v31  ;;  %3415 = vmatpush1.bf16.msra.mxu1 %v7271_v38  ;;  %v7281_v31 = vld [vmem:[#allocation211_spill] sm:$0xff] }
 0x17a   : > { %3417 = vmatprep.subr.bf16.mxu1 %v7272_v22  ;;  %v7283_v38 = vld [vmem:[#allocation215_spill] sm:$0xff] }
 0x17b   : > { %v7284_v22 = vld [vmem:[#allocation27_spill] sm:$0xff] }
 0x17c   : > { %3799 = vmatpush1.bf16.msra.mxu0 %v7275_v30  ;;  %1129 = vmatmul.mubr.f32.vlgmr.msra.gmra.mrb[0].mxu1 %v7276_v15  ;;  %v7286_v30 = vld [vmem:[#allocation36_spill] sm:$0xff] }
 0x17d   : > { %3801 = vmatprep.subr.bf16.mxu0 %v7277_v2  ;;  %3419 = vmatpush1.bf16.msra.mxu1 %v7278_v20  ;;  %v7288_v2 = vld [vmem:[#allocation219_spill] sm:$0xff]  ;;  %v7289_v20 = vld [vmem:[#allocation205_spill] sm:$0xff] }
 0x17e   : > { %3421 = vmatprep.subr.bf16.mxu1 %v7279_v10  ;;  %1136 = vmatprep.mubr.f32.mxu1 %v7280_v0  ;;  %v7290_v10 = vand.u32 4294901760, %v7289_v20  ;;  %v7301_v20 = vld [vmem:[#allocation57_spill] sm:$0xff] }
 0x17f   : > { %2475 = vmatmul.mubr.f32.vlgmr.msra.gmra.mrb[0].mxu0 %v7281_v31 }
 0x180   : > { %3803 = vmatpush1.bf16.msra.mxu0 %v7282_v45  ;;  %2482 = vmatprep.mubr.f32.mxu0 %v7283_v38  ;;  %v7294_v45 = vld [vmem:[#allocation39_spill] sm:$0xff] }
 0x181   : > { %3805 = vmatprep.subr.bf16.mxu0 %v7284_v22  ;;  %3423 = vmatpush1.bf16.msra.mxu1 %v7285_v37  ;;  %v7296_v22 = vld [vmem:[#allocation48_spill] sm:$0xff]  ;;  %v7297_v37 = vld [vmem:[#allocation45_spill] sm:$0xff] }
 0x182   : > { %3425 = vmatprep.subr.bf16.mxu1 %v7286_v30  ;;  %1139 = vmatmul.mubr.f32.gmra.mrb[2].mxu1 %v7287_v27  ;;  %v7298_v30 = vld [vmem:[#allocation51_spill] sm:$0xff] }
 0x183   : > { %2485 = vmatmul.mubr.f32.gmra.mrb[2].mxu0 %v7288_v2  ;;  %1276 = vmatprep.mubr.f32.mxu1 %v7290_v10  ;;  %v7302_v10 = vld [vmem:[#allocation64_spill] sm:$0xff] }
 0x184   : > { %3807 = vmatpush1.bf16.msra.mxu0 %v7291_v47  ;;  %2622 = vmatprep.mubr.f32.mxu0 %v7293_v60  ;;  %v7304_v60 = vld [vmem:[#allocation72_spill] sm:$0xff]  ;;  %v7347_v47 = vld [vmem:[#allocation14_spill] sm:$0xff] }
 0x185   : > { %3809 = vmatprep.subr.bf16.mxu0 %v7294_v45  ;;  %3427 = vmatpush1.bf16.msra.mxu1 %v7295_v39  ;;  %v7305_v45 = vld [vmem:[#allocation69_spill] sm:$0xff]  ;;  %v7306_v39 = vld [vmem:[#allocation76_spill] sm:$0xff] }
 0x186   : > { %3429 = vmatprep.subr.bf16.mxu1 %v7296_v22  ;;  %v7307_v22 = vld [vmem:[#allocation78_spill] sm:$0xff] }
 0x188   : > { %3811 = vmatpush1.bf16.msra.mxu0 %v7297_v37  ;;  %v7308_v37 = vld [vmem:[#allocation84_spill] sm:$0xff] }
 0x189   : > { %3813 = vmatprep.subr.bf16.mxu0 %v7298_v30  ;;  %3431 = vmatpush1.bf16.msra.mxu1 %v7299_v25  ;;  %v7309_v30 = vld [vmem:[#allocation81_spill] sm:$0xff]  ;;  %v7310_v25 = vld [vmem:[#allocation88_spill] sm:$0xff] }
 0x18a   : > { %3433 = vmatprep.subr.bf16.mxu1 %v7300_v21  ;;  %v7311_v21 = vld [vmem:[#allocation90_spill] sm:$0xff] }
 0x18c   : > { %3815 = vmatpush1.bf16.msra.mxu0 %v7301_v20  ;;  %v7312_v20 = vld [vmem:[#allocation96_spill] sm:$0xff] }
 0x18d   : > { %3817 = vmatprep.subr.bf16.mxu0 %v7302_v10  ;;  %3435 = vmatpush1.bf16.msra.mxu1 %v7303_v18  ;;  %v7313_v10 = vld [vmem:[#allocation93_spill] sm:$0xff]  ;;  %v7314_v18 = vld [vmem:[#allocation100_spill] sm:$0xff] }
 0x18e   : > { %3437 = vmatprep.subr.bf16.mxu1 %v7304_v60  ;;  %v7315_v60 = vld [vmem:[#allocation102_spill] sm:$0xff] }
 0x190   : > { %3819 = vmatpush1.bf16.msra.mxu0 %v7305_v45  ;;  %v7316_v45 = vld [vmem:[#allocation108_spill] sm:$0xff] }
 0x191   : > { %3821 = vmatprep.subr.bf16.mxu0 %v7306_v39  ;;  %3439 = vmatpush1.bf16.msra.mxu1 %v7307_v22  ;;  %v7317_v39 = vld [vmem:[#allocation105_spill] sm:$0xff]  ;;  %v7318_v22 = vld [vmem:[#allocation112_spill] sm:$0xff] }
 0x192   : > { %3441 = vmatprep.subr.bf16.mxu1 %v7308_v37  ;;  %v7319_v37 = vld [vmem:[#allocation114_spill] sm:$0xff] }
 0x194   : > { %3823 = vmatpush1.bf16.msra.mxu0 %v7309_v30  ;;  %v7320_v30 = vld [vmem:[#allocation120_spill] sm:$0xff] }
 0x195   : > { %3825 = vmatprep.subr.bf16.mxu0 %v7310_v25  ;;  %3443 = vmatpush1.bf16.msra.mxu1 %v7311_v21  ;;  %v7321_v25 = vld [vmem:[#allocation117_spill] sm:$0xff]  ;;  %v7322_v21 = vld [vmem:[#allocation124_spill] sm:$0xff] }
 0x196   : > { %3445 = vmatprep.subr.bf16.mxu1 %v7312_v20  ;;  %v7323_v20 = vld [vmem:[#allocation126_spill] sm:$0xff] }
 0x198   : > { %3827 = vmatpush1.bf16.msra.mxu0 %v7313_v10  ;;  %v7324_v10 = vld [vmem:[#allocation132_spill] sm:$0xff] }
 0x199   : > { %3829 = vmatprep.subr.bf16.mxu0 %v7314_v18  ;;  %3447 = vmatpush1.bf16.msra.mxu1 %v7315_v60  ;;  %v7325_v18 = vld [vmem:[#allocation129_spill] sm:$0xff]  ;;  %v7326_v60 = vld [vmem:[#allocation136_spill] sm:$0xff] }
 0x19a   : > { %3449 = vmatprep.subr.bf16.mxu1 %v7316_v45  ;;  %v7327_v45 = vld [vmem:[#allocation138_spill] sm:$0xff] }
 0x19c   : > { %3831 = vmatpush1.bf16.msra.mxu0 %v7317_v39  ;;  %v7328_v39 = vld [vmem:[#allocation144_spill] sm:$0xff] }
 0x19d   : > { %3833 = vmatprep.subr.bf16.mxu0 %v7318_v22  ;;  %3451 = vmatpush1.bf16.msra.mxu1 %v7319_v37  ;;  %v7329_v22 = vld [vmem:[#allocation141_spill] sm:$0xff]  ;;  %v7330_v37 = vld [vmem:[#allocation148_spill] sm:$0xff] }
 0x19e   : > { %3453 = vmatprep.subr.bf16.mxu1 %v7320_v30  ;;  %v7331_v30 = vld [vmem:[#allocation150_spill] sm:$0xff] }
 0x1a0   : > { %3835 = vmatpush1.bf16.msra.mxu0 %v7321_v25  ;;  %v7332_v25 = vld [vmem:[#allocation156_spill] sm:$0xff] }
 0x1a1   : > { %3837 = vmatprep.subr.bf16.mxu0 %v7322_v21  ;;  %3455 = vmatpush1.bf16.msra.mxu1 %v7323_v20  ;;  %v7333_v21 = vld [vmem:[#allocation153_spill] sm:$0xff]  ;;  %v7334_v20 = vld [vmem:[#allocation160_spill] sm:$0xff] }
 0x1a2   : > { %3457 = vmatprep.subr.bf16.mxu1 %v7324_v10  ;;  %v7335_v10 = vld [vmem:[#allocation162_spill] sm:$0xff] }
 0x1a4   : > { %3839 = vmatpush1.bf16.msra.mxu0 %v7325_v18  ;;  %v7336_v18 = vld [vmem:[#allocation168_spill] sm:$0xff] }
 0x1a5   : > { %3841 = vmatprep.subr.bf16.mxu0 %v7326_v60  ;;  %3459 = vmatpush1.bf16.msra.mxu1 %v7327_v45  ;;  %v7337_v60 = vld [vmem:[#allocation165_spill] sm:$0xff]  ;;  %v7338_v45 = vld [vmem:[#allocation172_spill] sm:$0xff] }
 0x1a6   : > { %3461 = vmatprep.subr.bf16.mxu1 %v7328_v39  ;;  %v7339_v39 = vld [vmem:[#allocation174_spill] sm:$0xff] }
 0x1a8   : > { %3843 = vmatpush1.bf16.msra.mxu0 %v7329_v22  ;;  %v7340_v22 = vld [vmem:[#allocation180_spill] sm:$0xff] }
 0x1a9   : > { %3845 = vmatprep.subr.bf16.mxu0 %v7330_v37  ;;  %3463 = vmatpush1.bf16.msra.mxu1 %v7331_v30  ;;  %v7341_v37 = vld [vmem:[#allocation177_spill] sm:$0xff]  ;;  %v7342_v30 = vld [vmem:[#allocation184_spill] sm:$0xff] }
 0x1aa   : > { %3465 = vmatprep.subr.bf16.mxu1 %v7332_v25  ;;  %v7343_v25 = vld [vmem:[#allocation186_spill] sm:$0xff] }
 0x1ac   : > { %3847 = vmatpush1.bf16.msra.mxu0 %v7333_v21  ;;  %v7344_v21 = vld [vmem:[#allocation192_spill] sm:$0xff] }
 0x1ad   : > { %3849 = vmatprep.subr.bf16.mxu0 %v7334_v20  ;;  %3467 = vmatpush1.bf16.msra.mxu1 %v7335_v10  ;;  %v7345_v20 = vld [vmem:[#allocation13_spill] sm:$0xff] }
 0x1ae   : > { %3469 = vmatprep.subr.bf16.mxu1 %v7336_v18  ;;  %v7346_v10 = vand.u32 4294901760, %v7345_v20  ;;  %v7348_v18 = vand.u32 4294901760, %v7347_v47  ;;  %v7360_v20 = vld [vmem:[#allocation24_spill] sm:$0xff] }
 0x1af   : > { %v7361_v47 = vand.u32 4294901760, %v7360_v20  ;;  %v7374_v20 = vld [vmem:[#allocation30_spill] sm:$0xff] }
 0x1b0   : > { %3851 = vmatpush1.bf16.msra.mxu0 %v7337_v60  ;;  %v3480_v26 = vpack.c.bf16 %v7348_v18, %v7346_v10  ;;  %v7349_v60 = vld [vmem:[#allocation189_spill] sm:$0xff]  ;;  %v7362_v10 = vld [vmem:[#allocation26_spill] sm:$0xff] }
 0x1b1   : > { %3853 = vmatprep.subr.bf16.mxu0 %v7338_v45  ;;  %3471 = vmatpush1.bf16.msra.mxu1 %v7339_v39  ;;  %v7350_v45 = vld [vmem:[#allocation197_spill] sm:$0xff]  ;;  %v7351_v39 = vld [vmem:[#allocation199_spill] sm:$0xff]  ;;  %v7363_v18 = vand.u32 4294901760, %v7362_v10  ;;  %v7375_v10 = vand.u32 4294901760, %v7374_v20 }
 0x1b2   : > { %3473 = vmatprep.subr.bf16.mxu1 %v7340_v22  ;;  %v7352_v22 = vld [vmem:[#allocation15_spill] sm:$0xff] }
 0x1b3   : > { %v7353_v61 = vand.u32 4294901760, %v7352_v22  ;;  %v7366_v22 = vld [vmem:[#allocation22_spill] sm:$0xff] }
 0x1b4   : > { %3855 = vmatpush1.bf16.msra.mxu0 %v7341_v37  ;;  %v7354_v37 = vld [vmem:[#allocation17_spill] sm:$0xff] }
 0x1b5   : > { %3857 = vmatprep.subr.bf16.mxu0 %v7342_v30  ;;  %3475 = vmatpush1.bf16.msra.mxu1 %v7343_v25  ;;  %v7355_v17 = vand.u32 4294901760, %v7354_v37  ;;  %v7357_v25 = vand.u32 4294901760, %v7356_v8  ;;  %v7368_v37 = vld [vmem:[#allocation23_spill] sm:$0xff] }
 0x1b6   : > { %3477 = vmatprep.subr.bf16.mxu1 %v7344_v21  ;;  %v7359_v21 = vand.u32 4294901760, %v7358_v29  ;;  %v7370_v29 = vld [vmem:[#allocation28_spill] sm:$0xff] }
 0x1b7   : > { %v3864_v30 = vpack.c.bf16 %v7355_v17, %v7353_v61  ;;  %v7369_v17 = vand.u32 4294901760, %v7368_v37 }
 0x1b8   : > { %3859 = vmatpush1.bf16.msra.mxu0 %v7349_v60  ;;  %v3482_v28 = vpack.c.bf16 %v7359_v21, %v7357_v25  ;;  %v3484_v60 = vpack.c.bf16 %v7363_v18, %v7361_v47  ;;  %v7371_v25 = vand.u32 4294901760, %v7370_v29  ;;  %v7376_v47 = vld [vmem:[#allocation32_spill] sm:$0xff] }
 0x1b9   : > { %3861 = vmatprep.subr.bf16.mxu0 %v7350_v45  ;;  %3479 = vmatpush1.bf16.msra.mxu1 %v7351_v39  ;;  %v7365_v39 = vand.u32 4294901760, %v7276_v15  ;;  %v7367_v45 = vand.u32 4294901760, %v7366_v22  ;;  %v7377_v18 = vand.u32 4294901760, %v7376_v47  ;;  %v7378_v15 = vld [vmem:[#allocation37_spill] sm:$0xff]  ;;  %v7381_v22 = vand.u32 4294901760, %v7380_v19 }
 0x1ba   : > { %3481 = vmatprep.subr.bf16.mxu1 %v3480_v26  ;;  %v7372_v26 = vld [vmem:[#allocation29_spill] sm:$0xff] }
 0x1bb   : > { %v3866_v61 = vpack.c.bf16 %v7369_v17, %v7367_v45  ;;  %v7373_v21 = vand.u32 4294901760, %v7372_v26  ;;  %v7382_v45 = vand.u32 4294901760, %v7280_v0  ;;  %v7386_v17 = vld [vmem:[#allocation35_spill] sm:$0xff]  ;;  %v7388_v26 = vand.u32 4294901760, %v7283_v38 }
 0x1bc   : > { %3863 = vmatpush1.bf16.msra.mxu0 %v7364_v50  ;;  %1280 = vmatmul.mubr.f32.vlgmr.msra.gmra.mrb[0].mxu1 %v7365_v39  ;;  %v3486_v50 = vpack.c.bf16 %v7377_v18, %v7375_v10  ;;  %v7379_v39 = vand.u32 4294901760, %v7378_v15  ;;  %v7387_v29 = vand.u32 4294901760, %v7386_v17  ;;  %v7393_v10 = vld [vmem:[#allocation43_spill] sm:$0xff]  ;;  %v7397_v15 = vld [vmem:[#allocation49_spill] sm:$0xff]  ;;  %v7401_v38 = vand.u32 4294901760, %v7287_v27 }
 0x1bd   : > { %3865 = vmatprep.subr.bf16.mxu0 %v3864_v30  ;;  %3483 = vmatpush1.bf16.msra.mxu1 %v3482_v28  ;;  %v3868_v8 = vpack.c.bf16 %v7373_v21, %v7371_v25  ;;  %v7383_v28 = vand.u32 4294901760, %v7281_v31  ;;  %v7384_v30 = vld [vmem:[#allocation33_spill] sm:$0xff]  ;;  %v7394_v47 = vand.u32 4294901760, %v7393_v10  ;;  %v7395_v31 = vld [vmem:[#allocation44_spill] sm:$0xff]  ;;  %v7406_v17 = vld [vmem:[#allocation47_spill] sm:$0xff] }
 0x1be   : > { %3485 = vmatprep.subr.bf16.mxu1 %v3484_v60  ;;  %v3488_v14 = vpack.c.bf16 %v7381_v22, %v7379_v39  ;;  %1288 = vmatprep.mubr.f32.mxu1 %v7382_v45  ;;  %v7385_v37 = vand.u32 4294901760, %v7384_v30  ;;  %v7389_v60 = vld [vmem:[#allocation40_spill] sm:$0xff]  ;;  %v7391_v21 = vld [vmem:[#allocation41_spill] sm:$0xff]  ;;  %v7396_v18 = vand.u32 4294901760, %v7395_v31  ;;  %v7398_v39 = vand.u32 4294901760, %v7397_v15  ;;  %v7399_v22 = vld [vmem:[#allocation50_spill] sm:$0xff] }
 0x1bf   : > { %2626 = vmatmul.mubr.f32.vlgmr.msra.gmra.mrb[0].mxu0 %v7383_v28  ;;  %v7390_v19 = vand.u32 4294901760, %v7389_v60  ;;  %v7392_v20 = vand.u32 4294901760, %v7391_v21  ;;  %v7400_v45 = vand.u32 4294901760, %v7399_v22  ;;  %v7404_v30 = vld [vmem:[#allocation46_spill] sm:$0xff]  ;;  %v7409_v60 = vld [vmem:[#allocation52_spill] sm:$0xff]  ;;  %v7411_v21 = vld [vmem:[#allocation53_spill] sm:$0xff] }
 0x1c0   : > { %3867 = vmatpush1.bf16.msra.mxu0 %v3866_v61  ;;  %v3870_v25 = vpack.c.bf16 %v7387_v29, %v7385_v37  ;;  %2634 = vmatprep.mubr.f32.mxu0 %v7388_v26  ;;  %v3490_v61 = vpack.c.bf16 %v7396_v18, %v7394_v47  ;;  %v7405_v37 = vand.u32 4294901760, %v7404_v30  ;;  %v7407_v29 = vand.u32 4294901760, %v7406_v17  ;;  %v7413_v10 = vld [vmem:[#allocation54_spill] sm:$0xff]  ;;  %v7415_v47 = vld [vmem:[#allocation56_spill] sm:$0xff] }
 0x1c1   : > { %3869 = vmatprep.subr.bf16.mxu0 %v3868_v8  ;;  %3487 = vmatpush1.bf16.msra.mxu1 %v3486_v50  ;;  %v3872_v0 = vpack.c.bf16 %v7392_v20, %v7390_v19  ;;  %v3492_v28 = vpack.c.bf16 %v7400_v45, %v7398_v39  ;;  %v7402_v50 = vand.u32 4294901760, %v7288_v2  ;;  %v7403_v8 = vld [vmem:[#allocation196_spill] sm:$0xff]  ;;  %v7410_v19 = vand.u32 4294901760, %v7409_v60  ;;  %v7419_v39 = vld [vmem:[#allocation62_spill] sm:$0xff] }
 0x1c2   : > { %3489 = vmatprep.subr.bf16.mxu1 %v3488_v14  ;;  %1292 = vmatmul.mubr.f32.gmra.mrb[2].mxu1 %v7401_v38  ;;  %v3874_v26 = vpack.c.bf16 %v7407_v29, %v7405_v37  ;;  %v7408_v14 = vld [vmem:[#allocation206_spill] sm:$0xff]  ;;  %v7412_v27 = vand.u32 4294901760, %v7411_v21  ;;  %v7414_v2 = vand.u32 4294901760, %v7413_v10  ;;  %v7416_v31 = vand.u32 4294901760, %v7415_v47  ;;  %v7425_v37 = vld [vmem:[#allocation63_spill] sm:$0xff]  ;;  %v7427_v29 = vld [vmem:[#allocation65_spill] sm:$0xff] }
 0x1c3   : > { %2638 = vmatmul.mubr.f32.gmra.mrb[2].mxu0 %v7402_v50  ;;  %1555 = vmatprep.mubr.f32.mxu1 %v7403_v8  ;;  %v7420_v22 = vand.u32 4294901760, %v7419_v39  ;;  %v7421_v38 = vld [vmem:[#allocation58_spill] sm:$0xff]  ;;  %v7426_v17 = vand.u32 4294901760, %v7425_v37  ;;  %v7428_v60 = vand.u32 4294901760, %v7427_v29  ;;  %v7429_v21 = vld [vmem:[#allocation67_spill] sm:$0xff]  ;;  %v7433_v47 = vld [vmem:[#allocation73_spill] sm:$0xff] }
 0x1c4   : > { %3871 = vmatpush1.bf16.msra.mxu0 %v3870_v25  ;;  %2901 = vmatprep.mubr.f32.mxu0 %v7408_v14  ;;  %v3876_v20 = vpack.c.bf16 %v7412_v27, %v7410_v19  ;;  %v3494_v18 = vpack.c.bf16 %v7416_v31, %v7414_v2  ;;  %v7417_v25 = vld [vmem:[#allocation61_spill] sm:$0xff]  ;;  %v7431_v27 = vld [vmem:[#allocation68_spill] sm:$0xff]  ;;  %v7435_v31 = vld [vmem:[#allocation74_spill] sm:$0xff] }
 0x1c5   : > { %3873 = vmatprep.subr.bf16.mxu0 %v3872_v0  ;;  %3491 = vmatpush1.bf16.msra.mxu1 %v3490_v61  ;;  %v7418_v15 = vand.u32 4294901760, %v7417_v25  ;;  %v7422_v0 = vand.u32 4294901760, %v7421_v38  ;;  %v7423_v61 = vld [vmem:[#allocation59_spill] sm:$0xff]  ;;  %v3880_v19 = vpack.c.bf16 %v7428_v60, %v7426_v17  ;;  %v7432_v10 = vand.u32 4294901760, %v7431_v27  ;;  %v7437_v39 = vld [vmem:[#allocation70_spill] sm:$0xff]  ;;  %v7447_v60 = vld [vmem:[#allocation80_spill] sm:$0xff] }
 0x1c6   : > { %3493 = vmatprep.subr.bf16.mxu1 %v3492_v28  ;;  %v7424_v50 = vand.u32 4294901760, %v7423_v61  ;;  %v7430_v28 = vand.u32 4294901760, %v7429_v21  ;;  %v7436_v25 = vand.u32 4294901760, %v7435_v31  ;;  %v7445_v29 = vld [vmem:[#allocation79_spill] sm:$0xff]  ;;  %v7448_v21 = vand.u32 4294901760, %v7447_v60  ;;  %v7449_v27 = vld [vmem:[#allocation85_spill] sm:$0xff] }
 0x1c7   : > { %v3496_v45 = vpack.c.bf16 %v7420_v22, %v7418_v15  ;;  %v7453_v31 = vld [vmem:[#allocation82_spill] sm:$0xff]  ;;  %v7465_v60 = vld [vmem:[#allocation97_spill] sm:$0xff] }
 0x1c8   : > { %3875 = vmatpush1.bf16.msra.mxu0 %v3874_v26  ;;  %v3878_v30 = vpack.c.bf16 %v7424_v50, %v7422_v0  ;;  %v3498_v2 = vpack.c.bf16 %v7432_v10, %v7430_v28  ;;  %v7434_v26 = vand.u32 4294901760, %v7433_v47  ;;  %v7441_v0 = vld [vmem:[#allocation75_spill] sm:$0xff]  ;;  %v7443_v50 = vld [vmem:[#allocation77_spill] sm:$0xff]  ;;  %v7451_v10 = vld [vmem:[#allocation86_spill] sm:$0xff] }
 0x1c9   : > { %3877 = vmatprep.subr.bf16.mxu0 %v3876_v20  ;;  %3495 = vmatpush1.bf16.msra.mxu1 %v3494_v18  ;;  %v7438_v20 = vand.u32 4294901760, %v7437_v39  ;;  %v7439_v18 = vld [vmem:[#allocation71_spill] sm:$0xff]  ;;  %v7442_v61 = vand.u32 4294901760, %v7441_v0  ;;  %v7444_v37 = vand.u32 4294901760, %v7443_v50  ;;  %v7452_v47 = vand.u32 4294901760, %v7451_v10  ;;  %v7469_v10 = vld [vmem:[#allocation94_spill] sm:$0xff] }
 0x1ca   : > { %3497 = vmatprep.subr.bf16.mxu1 %v3496_v45  ;;  %v3500_v15 = vpack.c.bf16 %v7436_v25, %v7434_v26  ;;  %v7440_v22 = vand.u32 4294901760, %v7439_v18  ;;  %v7446_v45 = vand.u32 4294901760, %v7445_v29  ;;  %v7461_v50 = vld [vmem:[#allocation91_spill] sm:$0xff] }
 0x1cb   : > { %v3884_v17 = vpack.c.bf16 %v7444_v37, %v7442_v61  ;;  %v7463_v37 = vld [vmem:[#allocation92_spill] sm:$0xff] }
 0x1cc   : > { %3879 = vmatpush1.bf16.msra.mxu0 %v3878_v30  ;;  %v3882_v38 = vpack.c.bf16 %v7440_v22, %v7438_v20  ;;  %v3502_v28 = vpack.c.bf16 %v7448_v21, %v7446_v45  ;;  %v7450_v30 = vand.u32 4294901760, %v7449_v27  ;;  %v7457_v20 = vld [vmem:[#allocation87_spill] sm:$0xff]  ;;  %v7459_v22 = vld [vmem:[#allocation89_spill] sm:$0xff]  ;;  %v7464_v29 = vand.u32 4294901760, %v7463_v37  ;;  %v7467_v21 = vld [vmem:[#allocation98_spill] sm:$0xff] }
 0x1cd   : > { %3881 = vmatprep.subr.bf16.mxu0 %v3880_v19  ;;  %3499 = vmatpush1.bf16.msra.mxu1 %v3498_v2  ;;  %v7454_v19 = vand.u32 4294901760, %v7453_v31  ;;  %v7455_v2 = vld [vmem:[#allocation83_spill] sm:$0xff]  ;;  %v7458_v18 = vand.u32 4294901760, %v7457_v20  ;;  %v7460_v0 = vand.u32 4294901760, %v7459_v22  ;;  %v7468_v27 = vand.u32 4294901760, %v7467_v21  ;;  %v7482_v37 = vld [vmem:[#allocation110_spill] sm:$0xff] }
 0x1ce   : > { %3501 = vmatprep.subr.bf16.mxu1 %v3500_v15  ;;  %v3504_v26 = vpack.c.bf16 %v7452_v47, %v7450_v30  ;;  %v7456_v25 = vand.u32 4294901760, %v7455_v2  ;;  %v7462_v15 = vand.u32 4294901760, %v7461_v50  ;;  %v7477_v22 = vld [vmem:[#allocation103_spill] sm:$0xff]  ;;  %v7486_v21 = vand.u32 4294901760, %v7230_v23 }
 0x1cf   : > { %v3888_v61 = vpack.c.bf16 %v7460_v0, %v7458_v18  ;;  %v7479_v0 = vld [vmem:[#allocation104_spill] sm:$0xff] }
 0x1d0   : > { %3883 = vmatpush1.bf16.msra.mxu0 %v3882_v38  ;;  %v3886_v39 = vpack.c.bf16 %v7456_v25, %v7454_v19  ;;  %v3506_v45 = vpack.c.bf16 %v7464_v29, %v7462_v15  ;;  %v7466_v38 = vand.u32 4294901760, %v7465_v60  ;;  %v7473_v19 = vld [vmem:[#allocation99_spill] sm:$0xff]  ;;  %v7475_v25 = vld [vmem:[#allocation101_spill] sm:$0xff]  ;;  %v7480_v50 = vand.u32 4294901760, %v7479_v0 }
 0x1d1   : > { %3885 = vmatprep.subr.bf16.mxu0 %v3884_v17  ;;  %3503 = vmatpush1.bf16.msra.mxu1 %v3502_v28  ;;  %v7470_v17 = vand.u32 4294901760, %v7469_v10  ;;  %v7471_v28 = vld [vmem:[#allocation95_spill] sm:$0xff]  ;;  %v7474_v2 = vand.u32 4294901760, %v7473_v19  ;;  %v7476_v20 = vand.u32 4294901760, %v7475_v25  ;;  %v7483_v29 = vand.u32 4294901760, %v7482_v37 }
 0x1d2   : > { %3505 = vmatprep.subr.bf16.mxu1 %v3504_v26  ;;  %v3508_v30 = vpack.c.bf16 %v7468_v27, %v7466_v38  ;;  %v7472_v47 = vand.u32 4294901760, %v7471_v28  ;;  %v7478_v26 = vand.u32 4294901760, %v7477_v22  ;;  %v7487_v27 = vand.u32 4294901760, %v7231_v48 }
 0x1d3   : > { %v3892_v18 = vpack.c.bf16 %v7476_v20, %v7474_v2  ;;  %v7490_v28 = vand.u32 4294901760, %v7234_v59  ;;  %v7494_v48 = vand.u32 4294901760, %v7151_v54  ;;  %v7496_v19 = vand.u32 4294901760, %v7153_v34 }
 0x1d4   : > { %3887 = vmatpush1.bf16.msra.mxu0 %v3886_v39  ;;  %v3890_v31 = vpack.c.bf16 %v7472_v47, %v7470_v17  ;;  %v3510_v15 = vpack.c.bf16 %v7480_v50, %v7478_v26  ;;  %v7481_v39 = vand.u32 4294901760, %v7226_v35  ;;  %v3896_v10 = vpack.c.bf16 %v7487_v27, %v7486_v21  ;;  %v7526_v21 = vld [vmem:[#allocation170_spill] sm:$0xff] }
 0x1d5   : > { %3889 = vmatprep.subr.bf16.mxu0 %v3888_v61  ;;  %3507 = vmatpush1.bf16.msra.mxu1 %v3506_v45  ;;  %v7484_v61 = vand.u32 4294901760, %v7228_v46  ;;  %v7485_v45 = vand.u32 4294901760, %v7229_v32  ;;  %v7489_v35 = vand.u32 4294901760, %v7233_v24  ;;  %v7491_v46 = vand.u32 4294901760, %v7235_v36 }
 0x1d6   : > { %3509 = vmatprep.subr.bf16.mxu1 %v3508_v30  ;;  %v3512_v60 = vpack.c.bf16 %v7483_v29, %v7481_v39  ;;  %v7488_v30 = vand.u32 4294901760, %v7232_v49  ;;  %v7492_v32 = vand.u32 4294901760, %v7236_v42  ;;  %v7495_v49 = vand.u32 4294901760, %v7152_v5 }
 0x1d7   : > { %v3894_v38 = vpack.c.bf16 %v7485_v45, %v7484_v61  ;;  %v3516_v47 = vpack.c.bf16 %v7491_v46, %v7490_v28  ;;  %v7497_v59 = vand.u32 4294901760, %v7154_v44  ;;  %v7498_v36 = vand.u32 4294901760, %v7157_v51  ;;  %v7522_v61 = vld [vmem:[#allocation164_spill] sm:$0xff] }
 0x1d8   : > { %3891 = vmatpush1.bf16.msra.mxu0 %v3890_v31  ;;  %v3514_v17 = vpack.c.bf16 %v7489_v35, %v7488_v30  ;;  %v7493_v31 = vand.u32 4294901760, %v7237_v16  ;;  %v3900_v24 = vpack.c.bf16 %v7495_v49, %v7494_v48  ;;  %v7499_v42 = vand.u32 4294901760, %v7158_v13  ;;  %v7530_v30 = vld [vmem:[#allocation167_spill] sm:$0xff] }
 0x1d9   : > { %3893 = vmatprep.subr.bf16.mxu0 %v3892_v18  ;;  %3511 = vmatpush1.bf16.msra.mxu1 %v3510_v15  ;;  %v3518_v2 = vpack.c.bf16 %v7497_v59, %v7496_v19  ;;  %v7500_v16 = vand.u32 4294901760, %v7155_v33  ;;  %v7501_v20 = vand.u32 4294901760, %v7156_v56  ;;  %v7502_v5 = vand.u32 4294901760, %v7159_v58  ;;  %v7542_v59 = vld [vmem:[#allocation182_spill] sm:$0xff] }
 0x1da   : > { %3513 = vmatprep.subr.bf16.mxu1 %v3512_v60  ;;  %v3898_v23 = vpack.c.bf16 %v7493_v31, %v7492_v32  ;;  %v3520_v25 = vpack.c.bf16 %v7499_v42, %v7498_v36  ;;  %v7503_v34 = vand.u32 4294901760, %v7160_v9  ;;  %v7504_v18 = vand.u32 4294901760, %v7161_v12  ;;  %v7536_v32 = vld [vmem:[#allocation175_spill] sm:$0xff]  ;;  %v7544_v42 = vld [vmem:[#allocation178_spill] sm:$0xff] }
 0x1db   : > { %v3902_v54 = vpack.c.bf16 %v7501_v20, %v7500_v16  ;;  %v7505_v51 = vand.u32 4294901760, %v7162_v55  ;;  %v7506_v13 = vand.u32 4294901760, %v7165_v11  ;;  %v7507_v33 = vand.u32 4294901760, %v7166_v62  ;;  %v7546_v16 = vld [vmem:[#allocation179_spill] sm:$0xff] }
 0x1dc   : > { %3895 = vmatpush1.bf16.msra.mxu0 %v3894_v38  ;;  %v3904_v44 = vpack.c.bf16 %v7503_v34, %v7502_v5  ;;  %v7508_v56 = vand.u32 4294901760, %v7163_v4  ;;  %v7509_v0 = vand.u32 4294901760, %v7164_v53  ;;  %v7510_v9 = vand.u32 4294901760, %v7167_v43  ;;  %v7548_v5 = vld [vmem:[#allocation183_spill] sm:$0xff] }
 0x1dd   : > { %3897 = vmatprep.subr.bf16.mxu0 %v3896_v10  ;;  %3515 = vmatpush1.bf16.msra.mxu1 %v3514_v17  ;;  %v3522_v22 = vpack.c.bf16 %v7505_v51, %v7504_v18  ;;  %v3524_v26 = vpack.c.bf16 %v7507_v33, %v7506_v13  ;;  %v7511_v12 = vand.u32 4294901760, %v7168_v6  ;;  %v7512_v50 = vand.u32 4294901760, %v7169_v57  ;;  %v7519_v57 = vld [vmem:[#allocation161_spill] sm:$0xff]  ;;  %v7532_v17 = vld [vmem:[#allocation171_spill] sm:$0xff]  ;;  %v7554_v33 = vld [vmem:[#allocation188_spill] sm:$0xff] }
 0x1de   : > { %3517 = vmatprep.subr.bf16.mxu1 %v3516_v47  ;;  %v3906_v58 = vpack.c.bf16 %v7509_v0, %v7508_v56  ;;  %v7513_v11 = vand.u32 4294901760, %v7170_v52  ;;  %v7514_v62 = vand.u32 4294901760, %v7173_v40  ;;  %v7515_v4 = vand.u32 4294901760, %v7174_v7  ;;  %v7524_v7 = vld [vmem:[#allocation169_spill] sm:$0xff] }
 0x1df   : > { %v3908_v55 = vpack.c.bf16 %v7511_v12, %v7510_v9  ;;  %v7516_v53 = vand.u32 4294901760, %v7171_v63  ;;  %v7517_v37 = vand.u32 4294901760, %v7172_v1  ;;  %v7518_v6 = vand.u32 4294901760, %v7175_v3  ;;  %v7528_v1 = vld [vmem:[#allocation166_spill] sm:$0xff]  ;;  %v7556_v0 = vld [vmem:[#allocation193_spill] sm:$0xff] }
 0x1e0   : > { %3899 = vmatpush1.bf16.msra.mxu0 %v3898_v23  ;;  %v3526_v15 = vpack.c.bf16 %v7513_v11, %v7512_v50  ;;  %v3528_v39 = vpack.c.bf16 %v7515_v4, %v7514_v62  ;;  %v7520_v29 = vand.u32 4294901760, %v7519_v57  ;;  %v7521_v60 = vand.u32 4294901760, %v7177_v41  ;;  %v7534_v41 = vld [vmem:[#allocation173_spill] sm:$0xff]  ;;  %v7538_v23 = vld [vmem:[#allocation176_spill] sm:$0xff]  ;;  %v7558_v9 = vld [vmem:[#allocation194_spill] sm:$0xff] }
 0x1e1   : > { %3901 = vmatprep.subr.bf16.mxu0 %v3900_v24  ;;  %3519 = vmatpush1.bf16.msra.mxu1 %v3518_v2  ;;  %v3910_v43 = vpack.c.bf16 %v7517_v37, %v7516_v53  ;;  %v7523_v40 = vand.u32 4294901760, %v7522_v61  ;;  %v7525_v38 = vand.u32 4294901760, %v7524_v7  ;;  %v7527_v63 = vand.u32 4294901760, %v7526_v21  ;;  %v7540_v24 = vld [vmem:[#allocation181_spill] sm:$0xff]  ;;  %v7560_v50 = vld [vmem:[#allocation190_spill] sm:$0xff]  ;;  %v7568_v57 = vld [vmem:[#allocation200_spill] sm:$0xff] }
 0x1e2   : > { %3521 = vmatprep.subr.bf16.mxu1 %v3520_v25  ;;  %v3912_v52 = vpack.c.bf16 %v7520_v29, %v7518_v6  ;;  %v7529_v10 = vand.u32 4294901760, %v7528_v1  ;;  %v7531_v35 = vand.u32 4294901760, %v7530_v30  ;;  %v7533_v28 = vand.u32 4294901760, %v7532_v17  ;;  %v7566_v37 = vld [vmem:[#allocation198_spill] sm:$0xff]  ;;  %v7574_v7 = vld [vmem:[#allocation204_spill] sm:$0xff]  ;;  %v7580_v30 = vld [vmem:[#allocation25_spill] sm:$0xff] }
 0x1e3   : > { %v3530_v45 = vpack.c.bf16 %v7523_v40, %v7521_v60  ;;  %v3532_v27 = vpack.c.bf16 %v7527_v63, %v7525_v38  ;;  %v7535_v46 = vand.u32 4294901760, %v7534_v41  ;;  %v7537_v31 = vand.u32 4294901760, %v7536_v32  ;;  %v7572_v40 = vld [vmem:[#allocation203_spill] sm:$0xff]  ;;  %v7576_v63 = vld [vmem:[#allocation12_spill] sm:$0xff]  ;;  %v7583_v17 = vld [vmem:[#allocation21_spill] sm:$0xff] }
 0x1e4   : > { %3903 = vmatpush1.bf16.msra.mxu0 %v3902_v54  ;;  %v3914_v3 = vpack.c.bf16 %v7531_v35, %v7529_v10  ;;  %v7539_v48 = vand.u32 4294901760, %v7538_v23  ;;  %v7541_v19 = vand.u32 4294901760, %v7540_v24  ;;  %v7543_v2 = vand.u32 4294901760, %v7542_v59  ;;  %v7578_v1 = vld [vmem:[#allocation16_spill] sm:$0xff]  ;;  %v7579_v10 = vld [vmem:[#allocation18_spill] sm:$0xff]  ;;  %v7585_v41 = vld [vmem:[#allocation27_spill] sm:$0xff] }
 0x1e5   : > { %3905 = vmatprep.subr.bf16.mxu0 %v3904_v44  ;;  %3523 = vmatpush1.bf16.msra.mxu1 %v3522_v22  ;;  %v3916_v47 = vpack.c.bf16 %v7535_v46, %v7533_v28  ;;  %v7545_v25 = vand.u32 4294901760, %v7544_v42  ;;  %v7547_v20 = vand.u32 4294901760, %v7546_v16  ;;  %v7549_v34 = vand.u32 4294901760, %v7548_v5  ;;  %v7550_v44 = vld [vmem:[#allocation185_spill] sm:$0xff]  ;;  %v7552_v22 = vld [vmem:[#allocation187_spill] sm:$0xff]  ;;  %v7581_v35 = vld [vmem:[#allocation212_spill] sm:$0xff] }
 0x1e6   : > { %3525 = vmatprep.subr.bf16.mxu1 %v3524_v26  ;;  %v3534_v49 = vpack.c.bf16 %v7539_v48, %v7537_v31  ;;  %v3536_v36 = vpack.c.bf16 %v7543_v2, %v7541_v19  ;;  %v7551_v18 = vand.u32 4294901760, %v7550_v44  ;;  %v7553_v13 = vand.u32 4294901760, %v7552_v22  ;;  %v7584_v28 = vld [vmem:[#allocation214_spill] sm:$0xff]  ;;  %v7586_v46 = vld [vmem:[#allocation31_spill] sm:$0xff]  ;;  %v7588_v32 = vld [vmem:[#allocation216_spill] sm:$0xff] }
 0x1e7   : > { %v3918_v54 = vpack.c.bf16 %v7547_v20, %v7545_v25  ;;  %v7555_v26 = vand.u32 4294901760, %v7554_v33  ;;  %v7559_v12 = vand.u32 4294901760, %v7558_v9  ;;  %v7561_v11 = vand.u32 4294901760, %v7560_v50  ;;  %v7589_v31 = vld [vmem:[#allocation218_spill] sm:$0xff]  ;;  %v7591_v48 = vld [vmem:[#allocation39_spill] sm:$0xff]  ;;  %v7593_v24 = vld [vmem:[#allocation48_spill] sm:$0xff] }
 0x1e8   : > { %3907 = vmatpush1.bf16.msra.mxu0 %v3906_v58  ;;  %v3920_v51 = vpack.c.bf16 %v7551_v18, %v7549_v34  ;;  %v7557_v58 = vand.u32 4294901760, %v7556_v0  ;;  %v7569_v29 = vand.u32 4294901760, %v7568_v57  ;;  %v7575_v38 = vand.u32 4294901760, %v7574_v7  ;;  %v7590_v23 = vld [vmem:[#allocation34_spill] sm:$0xff]  ;;  %v7594_v19 = vld [vmem:[#allocation45_spill] sm:$0xff]  ;;  %v7595_v59 = vld [vmem:[#allocation51_spill] sm:$0xff] }
 0x1e9   : > { %3909 = vmatprep.subr.bf16.mxu0 %v3908_v55  ;;  %3527 = vmatpush1.bf16.msra.mxu1 %v3526_v15  ;;  %v3538_v56 = vpack.c.bf16 %v7555_v26, %v7553_v13  ;;  %v7562_v15 = vld [vmem:[#allocation191_spill] sm:$0xff]  ;;  %v7598_v42 = vld [vmem:[#allocation57_spill] sm:$0xff]  ;;  %v7600_v25 = vld [vmem:[#allocation66_spill] sm:$0xff] }
 0x1ea   : > { %3529 = vmatprep.subr.bf16.mxu1 %v3528_v39  ;;  %v3540_v55 = vpack.c.bf16 %v7559_v12, %v7557_v58  ;;  %v7563_v62 = vand.u32 4294901760, %v7562_v15  ;;  %v7564_v39 = vld [vmem:[#allocation195_spill] sm:$0xff]  ;;  %v7602_v16 = vld [vmem:[#allocation69_spill] sm:$0xff]  ;;  %v7603_v20 = vld [vmem:[#allocation76_spill] sm:$0xff] }
 0x1eb   : > { %v7565_v53 = vand.u32 4294901760, %v7564_v39  ;;  %v7596_v2 = vld [vmem:[#allocation55_spill] sm:$0xff]  ;;  %v7605_v5 = vld [vmem:[#allocation84_spill] sm:$0xff]  ;;  %v7606_v34 = vld [vmem:[#allocation81_spill] sm:$0xff] }
 0x1ec   : > { %3911 = vmatpush1.bf16.msra.mxu0 %v3910_v43  ;;  %v3922_v4 = vpack.c.bf16 %v7563_v62, %v7561_v11  ;;  %v7567_v43 = vand.u32 4294901760, %v7566_v37  ;;  %v7607_v44 = vld [vmem:[#allocation88_spill] sm:$0xff]  ;;  %v7608_v18 = vld [vmem:[#allocation90_spill] sm:$0xff]  ;;  %v7610_v22 = vld [vmem:[#allocation93_spill] sm:$0xff] }
 0x1ed   : > { %3913 = vmatprep.subr.bf16.mxu0 %v3912_v52  ;;  %3531 = vmatpush1.bf16.msra.mxu1 %v3530_v45  ;;  %v7570_v52 = vld [vmem:[#allocation201_spill] sm:$0xff]  ;;  %v7573_v45 = vand.u32 4294901760, %v7572_v40  ;;  %v7611_v13 = vld [vmem:[#allocation100_spill] sm:$0xff]  ;;  %v7612_v33 = vld [vmem:[#allocation102_spill] sm:$0xff] }
 0x1ee   : > { %3533 = vmatprep.subr.bf16.mxu1 %v3532_v27  ;;  %v3924_v6 = vpack.c.bf16 %v7567_v43, %v7565_v53  ;;  %v7571_v60 = vand.u32 4294901760, %v7570_v52  ;;  %v7577_v27 = vld [vmem:[#allocation207_spill] sm:$0xff]  ;;  %v7613_v26 = vld [vmem:[#allocation108_spill] sm:$0xff]  ;;  %v7616_v58 = vld [vmem:[#allocation114_spill] sm:$0xff] }
 0x1ef   : > { %v3926_v21 = vpack.c.bf16 %v7575_v38, %v7573_v45  ;;  %v7615_v0 = vld [vmem:[#allocation112_spill] sm:$0xff]  ;;  %v7618_v12 = vld [vmem:[#allocation117_spill] sm:$0xff]  ;;  %v7620_v50 = vld [vmem:[#allocation126_spill] sm:$0xff] }
 0x1f0   : > { %3915 = vmatpush1.bf16.msra.mxu0 %v3914_v3  ;;  %v3542_v61 = vpack.c.bf16 %v7571_v60, %v7569_v29  ;;  %v7582_v3 = vld [vmem:[#allocation210_spill] sm:$0xff]  ;;  %v7617_v9 = vld [vmem:[#allocation120_spill] sm:$0xff]  ;;  %v7622_v15 = vld [vmem:[#allocation129_spill] sm:$0xff] }
 0x1f1   : > { %3917 = vmatprep.subr.bf16.mxu0 %v3916_v47  ;;  %3535 = vmatpush1.bf16.msra.mxu1 %v3534_v49  ;;  %v7587_v47 = vld [vmem:[#allocation36_spill] sm:$0xff]  ;;  %v7592_v49 = vld [vmem:[#allocation42_spill] sm:$0xff]  ;;  %v7626_v53 = vld [vmem:[#allocation141_spill] sm:$0xff] }
 0x1f2   : > { %3537 = vmatprep.subr.bf16.mxu1 %v3536_v36  ;;  %v7597_v36 = vld [vmem:[#allocation60_spill] sm:$0xff]  ;;  %v7628_v43 = vld [vmem:[#allocation150_spill] sm:$0xff]  ;;  %v7630_v57 = vld [vmem:[#allocation153_spill] sm:$0xff] }
 0x1f3   : > { %v7621_v11 = vld [vmem:[#allocation132_spill] sm:$0xff]  ;;  %v7632_v52 = vld [vmem:[#allocation162_spill] sm:$0xff]  ;;  %v7638_v38 = vld [vmem:[#allocation177_spill] sm:$0xff] }
 0x1f4   : > { %3919 = vmatpush1.bf16.msra.mxu0 %v3918_v54  ;;  %v7604_v54 = vld [vmem:[#allocation78_spill] sm:$0xff]  ;;  %v7623_v62 = vld [vmem:[#allocation136_spill] sm:$0xff] }
 0x1f5   : > { %3921 = vmatprep.subr.bf16.mxu0 %v3920_v51  ;;  %3539 = vmatpush1.bf16.msra.mxu1 %v3538_v56  ;;  %v7609_v51 = vld [vmem:[#allocation96_spill] sm:$0xff]  ;;  %v7614_v56 = vld [vmem:[#allocation105_spill] sm:$0xff]  ;;  %v7636_v45 = vld [vmem:[#allocation174_spill] sm:$0xff] }
 0x1f6   : > { %3541 = vmatprep.subr.bf16.mxu1 %v3540_v55  ;;  %v7619_v55 = vld [vmem:[#allocation124_spill] sm:$0xff] }
 0x1f7   : > { %v7625_v39 = vld [vmem:[#allocation144_spill] sm:$0xff] }
 0x1f8   : > { %3923 = vmatpush1.bf16.msra.mxu0 %v3922_v4  ;;  %v7624_v4 = vld [vmem:[#allocation138_spill] sm:$0xff]  ;;  %v7627_v37 = vld [vmem:[#allocation148_spill] sm:$0xff] }
 0x1f9   : > { %3925 = vmatprep.subr.bf16.mxu0 %v3924_v6  ;;  %3543 = vmatpush1.bf16.msra.mxu1 %v3542_v61  ;;  %v7629_v6 = vld [vmem:[#allocation156_spill] sm:$0xff]  ;;  %v7634_v61 = vld [vmem:[#allocation165_spill] sm:$0xff] }
 0x1fa   : > { %3545 = vmatprep.subr.bf16.mxu1 %v7576_v63  ;;  %v7631_v29 = vld [vmem:[#allocation160_spill] sm:$0xff]  ;;  %v7640_v63 = vld [vmem:[#allocation186_spill] sm:$0xff] }
 0x1fb   : > { %v7633_v60 = vld [vmem:[#allocation168_spill] sm:$0xff] }
 0x1fc   : > { %3927 = vmatpush1.bf16.msra.mxu0 %v3926_v21  ;;  %1557 = vmatmul.mubr.f32.vlgmr.msra.gmra.mrb[0].mxu1 %v7577_v27  ;;  %v7635_v40 = vld [vmem:[#allocation172_spill] sm:$0xff] }
 0x1fd   : > { %3929 = vmatprep.subr.bf16.mxu0 %v7578_v1  ;;  %3547 = vmatpush1.bf16.msra.mxu1 %v7579_v10  ;;  %v7637_v7 = vld [vmem:[#allocation180_spill] sm:$0xff]  ;;  %v7642_v10 = vld [vmem:[#allocation189_spill] sm:$0xff] }
 0x1fe   : > { %3549 = vmatprep.subr.bf16.mxu1 %v7580_v30  ;;  %1563 = vmatprep.mubr.f32.mxu1 %v7581_v35  ;;  %v7639_v21 = vld [vmem:[#allocation184_spill] sm:$0xff]  ;;  %v7643_v30 = vld [vmem:[#allocation197_spill] sm:$0xff] }
 0x1ff   : > { %2903 = vmatmul.mubr.f32.vlgmr.msra.gmra.mrb[0].mxu0 %v7582_v3  ;;  %v7641_v1 = vld [vmem:[#allocation192_spill] sm:$0xff] }
 0x200   : > { %3931 = vmatpush1.bf16.msra.mxu0 %v7583_v17  ;;  %2909 = vmatprep.mubr.f32.mxu0 %v7584_v28  ;;  %v7644_v17 = vld [vmem:[#allocation199_spill] sm:$0xff] }
 0x201   : > { %3933 = vmatprep.subr.bf16.mxu0 %v7585_v41  ;;  %3551 = vmatpush1.bf16.msra.mxu1 %v7586_v46  ;;  %v7645_v41 = vld [vmem:[#allocation202_spill] sm:$0xff] }
 0x202   : > { %3553 = vmatprep.subr.bf16.mxu1 %v7587_v47  ;;  %1565 = vmatmul.mubr.f32.gmra.mrb[2].mxu1 %v7588_v32 }
 0x203   : > { %2911 = vmatmul.mubr.f32.gmra.mrb[2].mxu0 %v7589_v31  ;;  %1700 = vmatprep.mubr.f32.mxu1 %v7403_v8  ;;  %v7599_v8 = vld [vmem:[#allocation64_spill] sm:$0xff] }
 0x204   : > { %3935 = vmatpush1.bf16.msra.mxu0 %v7590_v23  ;;  %3046 = vmatprep.mubr.f32.mxu0 %v7408_v14  ;;  %v7601_v14 = vld [vmem:[#allocation72_spill] sm:$0xff] }
 0x205   : > { %3937 = vmatprep.subr.bf16.mxu0 %v7591_v48  ;;  %3555 = vmatpush1.bf16.msra.mxu1 %v7592_v49 }
 0x206   : > { %3557 = vmatprep.subr.bf16.mxu1 %v7593_v24 }
 0x208   : > { %3939 = vmatpush1.bf16.msra.mxu0 %v7594_v19 }
 0x209   : > { %3941 = vmatprep.subr.bf16.mxu0 %v7595_v59  ;;  %3559 = vmatpush1.bf16.msra.mxu1 %v7596_v2 }
 0x20a   : > { %3561 = vmatprep.subr.bf16.mxu1 %v7597_v36 }
 0x20c   : > { %3943 = vmatpush1.bf16.msra.mxu0 %v7598_v42 }
 0x20d   : > { %3945 = vmatprep.subr.bf16.mxu0 %v7599_v8  ;;  %3563 = vmatpush1.bf16.msra.mxu1 %v7600_v25 }
 0x20e   : > { %3565 = vmatprep.subr.bf16.mxu1 %v7601_v14 }
 0x210   : > { %3947 = vmatpush1.bf16.msra.mxu0 %v7602_v16 }
 0x211   : > { %3949 = vmatprep.subr.bf16.mxu0 %v7603_v20  ;;  %3567 = vmatpush1.bf16.msra.mxu1 %v7604_v54 }
 0x212   : > { %3569 = vmatprep.subr.bf16.mxu1 %v7605_v5 }
 0x214   : > { %3951 = vmatpush1.bf16.msra.mxu0 %v7606_v34 }
 0x215   : > { %3953 = vmatprep.subr.bf16.mxu0 %v7607_v44  ;;  %3571 = vmatpush1.bf16.msra.mxu1 %v7608_v18 }
 0x216   : > { %3573 = vmatprep.subr.bf16.mxu1 %v7609_v51 }
 0x218   : > { %3955 = vmatpush1.bf16.msra.mxu0 %v7610_v22 }
 0x219   : > { %3957 = vmatprep.subr.bf16.mxu0 %v7611_v13  ;;  %3575 = vmatpush1.bf16.msra.mxu1 %v7612_v33 }
 0x21a   : > { %3577 = vmatprep.subr.bf16.mxu1 %v7613_v26 }
 0x21c   : > { %3959 = vmatpush1.bf16.msra.mxu0 %v7614_v56 }
 0x21d   : > { %3961 = vmatprep.subr.bf16.mxu0 %v7615_v0  ;;  %3579 = vmatpush1.bf16.msra.mxu1 %v7616_v58 }
 0x21e   : > { %3581 = vmatprep.subr.bf16.mxu1 %v7617_v9 }
 0x220   : > { %3963 = vmatpush1.bf16.msra.mxu0 %v7618_v12 }
 0x221   : > { %3965 = vmatprep.subr.bf16.mxu0 %v7619_v55  ;;  %3583 = vmatpush1.bf16.msra.mxu1 %v7620_v50 }
 0x222   : > { %3585 = vmatprep.subr.bf16.mxu1 %v7621_v11 }
 0x224   : > { %3967 = vmatpush1.bf16.msra.mxu0 %v7622_v15 }
 0x225   : > { %3969 = vmatprep.subr.bf16.mxu0 %v7623_v62  ;;  %3587 = vmatpush1.bf16.msra.mxu1 %v7624_v4 }
 0x226   : > { %3589 = vmatprep.subr.bf16.mxu1 %v7625_v39 }
 0x228   : > { %3971 = vmatpush1.bf16.msra.mxu0 %v7626_v53 }
 0x229   : > { %3973 = vmatprep.subr.bf16.mxu0 %v7627_v37  ;;  %3591 = vmatpush1.bf16.msra.mxu1 %v7628_v43 }
 0x22a   : > { %3593 = vmatprep.subr.bf16.mxu1 %v7629_v6 }
 0x22c   : > { %3975 = vmatpush1.bf16.msra.mxu0 %v7630_v57 }
 0x22d   : > { %3977 = vmatprep.subr.bf16.mxu0 %v7631_v29  ;;  %3595 = vmatpush1.bf16.msra.mxu1 %v7632_v52 }
 0x22e   : > { %3597 = vmatprep.subr.bf16.mxu1 %v7633_v60 }
 0x230   : > { %3979 = vmatpush1.bf16.msra.mxu0 %v7634_v61 }
 0x231   : > { %3981 = vmatprep.subr.bf16.mxu0 %v7635_v40  ;;  %3599 = vmatpush1.bf16.msra.mxu1 %v7636_v45 }
 0x232   : > { %3601 = vmatprep.subr.bf16.mxu1 %v7637_v7 }
 0x234   : > { %3983 = vmatpush1.bf16.msra.mxu0 %v7638_v38 }
 0x235   : > { %3985 = vmatprep.subr.bf16.mxu0 %v7639_v21  ;;  %3603 = vmatpush1.bf16.msra.mxu1 %v7640_v63 }
 0x236   : > { %3605 = vmatprep.subr.bf16.mxu1 %v7641_v1 }
 0x238   : > { %3987 = vmatpush1.bf16.msra.mxu0 %v7642_v10 }
 0x239   : > { %3989 = vmatprep.subr.bf16.mxu0 %v7643_v30  ;;  %3607 = vmatpush1.bf16.msra.mxu1 %v7644_v17 }
 0x23c   : > { %3991 = vmatpush1.bf16.msra.mxu0 %v7645_v41  ;;  %1702 = vmatmul.mubr.f32.vlgmr.msra.gmra.mrb[0].mxu1 %v7577_v27 }
 0x23d   : > { %1708 = vmatprep.mubr.f32.mxu1 %v7581_v35 }
 0x23f   : > { %3048 = vmatmul.mubr.f32.vlgmr.msra.gmra.mrb[0].mxu0 %v7582_v3 }
 0x240   : > { %3054 = vmatprep.mubr.f32.mxu0 %v7584_v28  ;;  %1710 = vmatmul.mubr.f32.gmra.mrb[2].mxu1 %v7588_v32 }
 0x243   : > { %3056 = vmatmul.mubr.f32.gmra.mrb[2].mxu0 %v7589_v31 }
 0x30f   : > { %v1703_v46 = vpop.f32.mrb[0].mxu1 }
 0x310   : > { %v1705_v47 = vpop.f32.mrb[1].mxu1 }
 0x312   : > { %v3049_v23 = vpop.f32.mrb[0].mxu0 }
 0x313   : > { %v3992_v48 = vadd.f32 %v3049_v23, %v1703_v46  ;;  %v3051_v27 = vpop.f32.mrb[1].mxu0  ;;  %v1711_v49 = vpop.f32.mrb[2].mxu1 }
 0x314   : > { %v3993_v35 = vadd.f32 %v3051_v27, %v1705_v47  ;;  %v1713_v24 = vpop.f32.mrb[3].mxu1 }
 0x315   : > { %3077 = vst [vmem:[%s215_s19] sm:$0xff] %v3992_v48 }
 0x316   : > { %3078 = vst [vmem:[%s215_s19 + $0x8] sm:$0xff] %v3993_v35  ;;  %v3057_v3 = vpop.f32.mrb[2].mxu0 }
 0x317   : > { %v3994_v28 = vadd.f32 %v3057_v3, %v1711_v49  ;;  %v3059_v32 = vpop.f32.mrb[3].mxu0 }
 0x318   : > { %v3995_v31 = vadd.f32 %v3059_v32, %v1713_v24 }
 0x319   : > { %3079 = vst [vmem:[%s215_s19 + $0x10] sm:$0xff] %v3994_v28 }
 0x31a   : > { %3080 = vst [vmem:[%s215_s19 + $0x18] sm:$0xff] %v3995_v31 }
 0x31b   : > { %4188 = shalt.err (!%p4185_p6)
}
 0x31c   : > { %s4189_s24 = scalar_lea.hbm %s6256_s8, 512  ;;  %s4193_s30 = scalar_lea.hbm %s6306_s2, 1536 }
 0x31d   : > { %p4190_p12 = scmp.ne.s32.totalorder %s6256_s8, %s4189_s24  ;;  %p4194_p10 = scmp.lt.u32.totalorder %s6256_s8, %s6306_s2 }
 0x31e   : > { %p4195_p1 = scmp.lt.u32.totalorder %s4193_s30, %s4189_s24  ;;  %p4197_p9 = scmp.lt.u32.totalorder %s4189_s24, %s6256_s8 }
 0x31f   : > { %p4191_p2 = pnand %p4190_p12, %p7646_p11 }
 0x320   : > { %p4196_p8 = por %p4195_p1, %p4194_p10 }
 0x321   : > { %p4192_p7 = pneg %p4191_p2 }
 0x322   : > { %p4198_p4 = por %p4197_p9, %p4196_p8 }
 0x324   : > { %p4199_p13 = pnand %p4198_p4, %p4192_p7 }
 0x326   : > { %4202 = shalt.err (!%p4199_p13)
}
 0x327   : > { %s4271_s17 = smov 256   ;;  %s4272_s19 = smov 768  }
 0x328   : > { %s4273_s26 = smov 16  }
 0x329   : > { %4042 = dma.vmem_to_hbm [thread:$0]  (%p7646_p11), %s6251_s22, 512, %s6256_s8, %s3082_s23, %s4271_s17, %s4272_s19, %s4273_s26  }
 0x32a PF: > { %p4059_p0 = scmp.ge.s32.totalorder %s4261_s14, 2  ;;  %s3113_s25 = sand.u32 1, %s4241_s9  }
 0x32b   : > { %p7647_p5 = scmp.ne.s32.totalorder %s6844_s21, 0  ;;  %s3114_s6 = scalar_lea.sflag [#allocation5], %s3113_s25 }
 0x32d   : > { %p4053_p3 = pnand %p4059_p0, %p7647_p5 }
 0x32f   : > { %4236 = dma.done.wait (!%p4053_p3), %s3114_s6, 512  }
 0x330   : > { %4238 = vsyncadd (!%p4053_p3), %s3114_s6, 4294966784  ;;  %s19_s14 = sadd.s32 1, %s4261_s14   ;;  %s7648_s9 = smov %s4245_s10 }
 0x331   : > { %p16_p6 = scmp.ge.s32.totalorder %s19_s14, 5   ;;  %s7649_s10 = smov %s4249_s11 }
 0x332   : > { %s7650_s11 = smov %s4399_s7  ;;  %s7651_s12 = smov %s4257_s13 }
 0x333   : > { %s7652_s13 = smov %s7654_s27  ;;  %18 = sbr.rel (!%p16_p6) target bundleno = 7 (0x7), region = 87 }
 0x33a   :  { %3119 = vsyncpa [#allocation4], 1 }
 0x33b   :  { %3121 = vsyncpa [#allocation4 + $0x1], 1 }
 0x33c   :  { %3122 = vsyncpa [#allocation7], 1 }
 0x33d   :  { %3124 = vsyncpa [#allocation7 + $0x1], 1 }
 0x33e   :  { %3125 = vsyncpa [#allocation5], 1 }
 0x33f   :  { %3127 = vsyncpa [#allocation5 + $0x1], 1 }

</bundles_post_ra>
